<compile_context>
chip_gen: v5e
topology: v5e:2x2
jax: 0.10.0
libtpu: 0.0.40
codegen_flags: <defaults>
</compile_context>

<pallas_src>
import functools

import jax
import jax.numpy as jnp
from jax.experimental import pallas as pl
from jax.experimental.pallas import tpu as pltpu

MiB = 1 << 20


# ----------------------------------------------------------------------------
# Fused Pallas kernel: one grid step == full GmpnnBlock forward for one graph.
# ----------------------------------------------------------------------------
def _gmpnn_fused_kernel(
    # per-graph VMEM tensors
    x_ref, eraw_ref, ed_col_ref, dst_row_ref, lg0_col_ref, lg1_row_ref,
    # VMEM-resident weights (bf16) / biases (f32)
    wij_ref, bias_ref, eemb_w_ref, eemb_b_ref, sml_w_ref, sml_b_ref,
    l1w_ref, l1b_ref, l2w_ref, l2b_ref, l3w_ref, l3b_ref, l4w_ref, l4b_ref,
    # SMEM scalars: [sml_prelu_a, p2, p3, p4]
    scal_ref,
    # output
    out_ref,
    *, n_iter):
  f32 = jnp.float32
  bf16 = jnp.bfloat16

  x = x_ref[...]                                   # [N, F] f32
  N, F = x.shape
  E = ed_col_ref.shape[0]
  LE = lg0_col_ref.shape[0]
  xb = x.astype(bf16)

  def mm(a, b):
    return jnp.dot(a, b, preferred_element_type=f32)

  # --- one-hot gather/scatter operands, built in-register (never in HBM) ----
  ed_col = ed_col_ref[...]                         # [E, 2] int32: (src, dst)
  src_col = ed_col[:, 0:1]
  dst_col = ed_col[:, 1:2]
  iota_en = jax.lax.broadcasted_iota(jnp.int32, (E, N), 1)
  g_src = (src_col == iota_en).astype(bf16)        # [E, N]  gather at src
  g_dst = (dst_col == iota_en).astype(bf16)        # [E, N]  gather at dst
  iota_ne = jax.lax.broadcasted_iota(jnp.int32, (N, E), 0)
  s_dst = (iota_ne == dst_row_ref[...]).astype(f32)  # [N, E] scatter (exact f32)
  iota_le = jax.lax.broadcasted_iota(jnp.int32, (LE, E), 1)
  g_lg0 = (lg0_col_ref[...] == iota_le).astype(bf16)  # [LE, E]
  iota_el = jax.lax.broadcasted_iota(jnp.int32, (E, LE), 0)
  s_lg1 = (iota_el == lg1_row_ref[...]).astype(bf16)  # [E, LE]

  # --- degree(dst) via MXU ones-matmul, gathered at the *source* node --------
  ones_e1 = jnp.ones((E, 1), f32)
  deg_col = mm(s_dst, ones_e1)                     # [N, 1]  exact counts
  deg_src = mm(g_src, deg_col.astype(bf16))        # [E, 1]  exact for deg<=256
  inv_deg_src = 1.0 / jnp.maximum(deg_src, 1.0)    # deg==0 guard

  # --- fused node transforms + gathers ---------------------------------------
  a_ij = mm(xb, wij_ref[...])                      # x @ [w_i | w_j]  -> [N, 2F]
  alpha_i = a_ij[:, :F]
  alpha_j = a_ij[:, F:]
  cat_jx = jnp.concatenate([alpha_j.astype(bf16), xb], axis=-1)   # [N, 2F]
  src_g = mm(g_src, cat_jx)                        # [alpha_j | x][src] -> [E, 2F]
  aj_src = src_g[:, :F]
  x_src = src_g[:, F:]
  ai_dst = mm(g_dst, alpha_i.astype(bf16))         # alpha_i[dst] -> [E, F]

  # --- edge embedding + attention gate ---------------------------------------
  ef = mm(eraw_ref[...].astype(bf16), eemb_w_ref[...]) + eemb_b_ref[...]
  a_sml = scal_ref[0]
  alpha = ai_dst + aj_src + bias_ref[...]
  alpha = jnp.where(alpha >= 0, alpha, a_sml * alpha)           # PReLU
  alpha = mm(alpha.astype(bf16), sml_w_ref[...]) + sml_b_ref[...]
  ones_f1 = jnp.ones((F, 1), f32)
  s = mm(alpha * ef, ones_f1) * inv_deg_src        # feature sum on the MXU
  w = jax.nn.sigmoid(s)                            # [E, 1], stays in VMEM
  edge_attr = x_src * w                            # [E, F]

  # --- n_iter rounds of line-graph message passing ---------------------------
  # scatter_add(out[lg0], lg1, E) == S_lg1 @ (G_lg0 @ out): the dense E x E
  # line-graph adjacency is never materialized.
  out = edge_attr
  for _ in range(n_iter):                          # small static trip count
    gath = mm(g_lg0, out.astype(bf16))             # out[lg0]   [LE, F]
    scat = mm(s_lg1, gath.astype(bf16))            # -> edges   [E, F]
    out = edge_attr + scat * w

  # --- aggregate to nodes (exact f32 scatter) + residual ---------------------
  h = x + mm(s_dst, out)                           # [N, F]

  # --- MLP: lin1; (lin3(lin2(x)) + x)/2; (lin4(x) + x)/2 ---------------------
  def bn(t):                                       # two-pass batch statistics
    mu = jnp.mean(t, axis=0, keepdims=True)
    c = t - mu
    var = jnp.mean(c * c, axis=0, keepdims=True)
    return c * jax.lax.rsqrt(var + 1e-5)

  def prelu(t, a):
    return jnp.where(t >= 0, t, a * t)

  def lin(t, w_ref, b_ref):
    return mm(t.astype(bf16), w_ref[...]) + b_ref[...]

  h1 = lin(bn(h), l1w_ref, l1b_ref)
  t2 = lin(prelu(bn(h1), scal_ref[1]), l2w_ref, l2b_ref)
  t3 = lin(prelu(bn(t2), scal_ref[2]), l3w_ref, l3b_ref)
  h2 = (t3 + h1) * 0.5
  t4 = lin(prelu(bn(h2), scal_ref[3]), l4w_ref, l4b_ref)
  out_ref[...] = (t4 + h2) * 0.5


# ----------------------------------------------------------------------------
# Parameters (deterministic glorot-style init; shapes from __init__)
# ----------------------------------------------------------------------------
def init_params(key, edge_feats_dim, n_feats):
  snd = 2 * n_feats
  ks = jax.random.split(key, 14)

  def glorot(k, shape):
    lim = (6.0 / (shape[0] + shape[1])) ** 0.5
    return jax.random.uniform(k, shape, jnp.float32, -lim, lim)

  # Linear weights stored pre-transposed as [in, out] so the kernel does x @ W.
  return dict(
      w_i=glorot(ks[0], (n_feats, n_feats)),
      w_j=glorot(ks[1], (n_feats, n_feats)),
      bias=jnp.zeros((1, n_feats), jnp.float32),
      edge_emb_w=glorot(ks[2], (edge_feats_dim, n_feats)),
      edge_emb_b=glorot(ks[3], (1, n_feats)),
      sml_prelu_a=jnp.array(0.25, jnp.float32),
      sml_w=glorot(ks[4], (n_feats, n_feats)),
      sml_b=glorot(ks[5], (1, n_feats)),
      lin1_w=glorot(ks[6], (n_feats, snd)),
      lin1_b=glorot(ks[7], (1, snd)),
      p2=jnp.array(0.25, jnp.float32),
      lin2_w=glorot(ks[8], (snd, snd)),
      lin2_b=glorot(ks[9], (1, snd)),
      p3=jnp.array(0.25, jnp.float32),
      lin3_w=glorot(ks[10], (snd, snd)),
      lin3_b=glorot(ks[11], (1, snd)),
      p4=jnp.array(0.25, jnp.float32),
      lin4_w=glorot(ks[12], (snd, snd)),
      lin4_b=glorot(ks[13], (1, snd)),
  )


# ----------------------------------------------------------------------------
# Forward pass: one pallas_call, grid over the graph batch.
# ----------------------------------------------------------------------------
def gmpnn_block_forward(params, x, edge_index, edge_feats_raw,
                        line_graph_edge_index, n_iter):
  """x:[B,N,F] f32, edge_index:[B,2,E] int, edge_feats_raw:[B,E,ED] f32,
     line_graph_edge_index:[B,2,LE] int  ->  [B,N,2F] f32."""
  B, N, F = x.shape
  E = edge_index.shape[-1]
  LE = line_graph_edge_index.shape[-1]
  ED = edge_feats_raw.shape[-1]
  snd = 2 * F
  bf16 = jnp.bfloat16

  # --- index tensors, packed lane-dense where possible -----------------------
  ei = edge_index.astype(jnp.int32)
  lgi = line_graph_edge_index.astype(jnp.int32)
  ed_col = jnp.swapaxes(ei, 1, 2)                     # [B, E, 2] (src, dst)
  dst_row = ei[:, 1:2, :]                             # [B, 1, E]
  lg0_col = jnp.swapaxes(lgi[:, 0:1, :], 1, 2)        # [B, LE, 1]
  lg1_row = lgi[:, 1:2, :]                            # [B, 1, LE]

  # --- pre-cast learned weights to bf16 once (f32 biases added post-matmul) --
  wij = jnp.concatenate([params["w_i"], params["w_j"]], axis=1).astype(bf16)
  eemb_w = params["edge_emb_w"].astype(bf16)
  sml_w = params["sml_w"].astype(bf16)
  l1w = params["lin1_w"].astype(bf16)
  l2w = params["lin2_w"].astype(bf16)
  l3w = params["lin3_w"].astype(bf16)
  l4w = params["lin4_w"].astype(bf16)
  scal = jnp.stack([params["sml_prelu_a"], params["p2"],
                    params["p3"], params["p4"]]).astype(jnp.float32)  # f32[4]

  tensor_args = [
      x, edge_feats_raw, ed_col, dst_row, lg0_col, lg1_row,
      wij, params["bias"], eemb_w, params["edge_emb_b"],
      sml_w, params["sml_b"],
      l1w, params["lin1_b"], l2w, params["lin2_b"],
      l3w, params["lin3_b"], l4w, params["lin4_b"],
      scal,
  ]

  def per_graph(shape):       # squeezed batch dim, one graph per grid step
    return pl.BlockSpec((None,) + shape, lambda b: (b,) + (0,) * len(shape))

  def resident(shape):        # constant block index -> stays in VMEM
    return pl.BlockSpec(shape, lambda b: (0,) * len(shape))

  in_specs = [
      per_graph((N, F)), per_graph((E, ED)), per_graph((E, 2)),
      per_graph((1, E)), per_graph((LE, 1)), per_graph((1, LE)),
      resident((F, 2 * F)), resident((1, F)),
      resident((ED, F)), resident((1, F)),
      resident((F, F)), resident((1, F)),
      resident((F, snd)), resident((1, snd)),
      resident((snd, snd)), resident((1, snd)),
      resident((snd, snd)), resident((1, snd)),
      resident((snd, snd)), resident((1, snd)),
      pl.BlockSpec(memory_space=pltpu.MemorySpace.SMEM),
  ]
  out_spec = pl.BlockSpec((None, N, snd), lambda b: (b, 0, 0))

  # --- VMEM limit derived from the actual working set, capped per chip -------
  weight_bytes = (F * 2 * F + ED * F + F * F + F * snd + 3 * snd * snd) * 2 \
      + (4 * F + 4 * snd) * 4
  per_graph_io = (N * F + E * ED + N * snd) * 4 + (E * 3 + LE * 2) * 4
  onehot_bytes = (2 * E * N + LE * E + E * LE) * 2 + N * E * 4
  interm_bytes = (2 * N * 2 * F + 3 * E * F + E * 2 * F + LE * F
                  + 6 * N * snd) * 4
  need = 2 * per_graph_io + weight_bytes + 2 * (onehot_bytes + interm_bytes)
  try:
    vmem_cap = int(pltpu.get_tpu_info().vmem_capacity_bytes)
  except Exception:
    vmem_cap = 64 * MiB        # conservative (v7x per-core) fallback
  vmem_limit = int(min(int(0.75 * vmem_cap), max(32 * MiB, 2 * need)))

  # --- advisory cost estimate -------------------------------------------------
  flops = int(B * (
      2 * N * F * 2 * F                          # x @ [w_i|w_j]
      + 2 * (E * N * 2 * F + E * N * F)          # one-hot gathers
      + 2 * E * ED * F + 2 * E * F * F           # edge emb + sml linear
      + 2 * (N * E + E * N) + 2 * E * F          # degree + feature sum
      + n_iter * 4 * LE * E * F                  # line-graph propagation
      + 2 * N * E * F                            # node scatter
      + 2 * N * F * snd + 6 * N * snd * snd))    # MLP
  transcendentals = int(B * (E + 6 * N))
  bytes_accessed = int(
      sum(int(a.size) * a.dtype.itemsize for a in tensor_args)
      + B * N * snd * 4)

  kernel = functools.partial(_gmpnn_fused_kernel, n_iter=n_iter)
  return pl.pallas_call(
      kernel,
      grid=(B,),
      out_shape=jax.ShapeDtypeStruct((B, N, snd), jnp.float32),
      in_specs=in_specs,
      out_specs=out_spec,
      compiler_params=pltpu.CompilerParams(
          dimension_semantics=("parallel",),     # shards over 2 TCs on v7x
          vmem_limit_bytes=vmem_limit),
      cost_estimate=pl.CostEstimate(
          flops=flops, transcendentals=transcendentals,
          bytes_accessed=bytes_accessed),
  )(*tensor_args)


# ----------------------------------------------------------------------------
if __name__ == "__main__":
  B = 4           # graphs per call (grid / megacore axis)
  N = 32          # nodes per graph
  F = 64          # n_feats  -> snd_n_feats = 128 (lane-dense output)
  ED = 16         # raw edge feature dim
  N_ITER = 3
  # dropout = 0  -> CustomDropout is the identity

  # Bidirectional ring graph (same topology per graph): every node appears as
  # both src and dst, so deg[src] is never zero (kernel also guards deg==0).
  idx = jnp.arange(N, dtype=jnp.int32)
  src = jnp.concatenate([idx, (idx + 1) % N])
  dst = jnp.concatenate([(idx + 1) % N, idx])
  E = 2 * N
  LE = 2 * E
  edge_index = jnp.broadcast_to(jnp.stack([src, dst]), (B, 2, E)).astype(jnp.int32)

  key = jax.random.PRNGKey(0)
  k_x, k_ef, k_lg, k_p = jax.random.split(key, 4)
  x = jax.random.normal(k_x, (B, N, F), jnp.float32)
  edge_feats_raw = jax.random.normal(k_ef, (B, E, ED), jnp.float32)
  line_graph_edge_index = jax.random.randint(
      k_lg, (B, 2, LE), 0, E, dtype=jnp.int32)

  params = init_params(k_p, ED, F)

  fwd = jax.jit(functools.partial(gmpnn_block_forward, n_iter=N_ITER))
  out = fwd(params, x, edge_index, edge_feats_raw, line_graph_edge_index)
  jax.block_until_ready(out)
  assert out.shape == (B, N, 2 * F) and out.dtype == jnp.float32
  assert bool(jnp.all(jnp.isfinite(out)))
  print("KERNEL_OK")
</pallas_src>

<mosaic_0001>
module attributes {stable_mosaic.version = 11 : i64} {
  func.func @_gmpnn_fused_kernel(%arg0: i32, %arg1: memref<1x32x64xf32, #tpu.memory_space<vmem>>, %arg2: memref<1x64x16xf32, #tpu.memory_space<vmem>>, %arg3: memref<1x64x2xi32, #tpu.memory_space<vmem>>, %arg4: memref<1x1x64xi32, #tpu.memory_space<vmem>>, %arg5: memref<1x128x1xi32, #tpu.memory_space<vmem>>, %arg6: memref<1x1x128xi32, #tpu.memory_space<vmem>>, %arg7: memref<64x128xbf16, #tpu.memory_space<vmem>>, %arg8: memref<1x64xf32, #tpu.memory_space<vmem>>, %arg9: memref<16x64xbf16, #tpu.memory_space<vmem>>, %arg10: memref<1x64xf32, #tpu.memory_space<vmem>>, %arg11: memref<64x64xbf16, #tpu.memory_space<vmem>>, %arg12: memref<1x64xf32, #tpu.memory_space<vmem>>, %arg13: memref<64x128xbf16, #tpu.memory_space<vmem>>, %arg14: memref<1x128xf32, #tpu.memory_space<vmem>>, %arg15: memref<128x128xbf16, #tpu.memory_space<vmem>>, %arg16: memref<1x128xf32, #tpu.memory_space<vmem>>, %arg17: memref<128x128xbf16, #tpu.memory_space<vmem>>, %arg18: memref<1x128xf32, #tpu.memory_space<vmem>>, %arg19: memref<128x128xbf16, #tpu.memory_space<vmem>>, %arg20: memref<1x128xf32, #tpu.memory_space<vmem>>, %arg21: memref<4xf32, #tpu.memory_space<smem>>, %arg22: memref<1x32x128xf32, #tpu.memory_space<vmem>>) attributes {dimension_semantics = [#tpu.dimension_semantics<parallel>], iteration_bounds = array<i64: 4>, scalar_prefetch = 0 : i64, scratch_operands = 0 : i64, tpu.core_type = #tpu.core_type<tc>, window_params = [{transform_indices = @transform_0, window_bounds = array<i64: 1, 32, 64>}, {transform_indices = @transform_1, window_bounds = array<i64: 1, 64, 16>}, {transform_indices = @transform_2, window_bounds = array<i64: 1, 64, 2>}, {transform_indices = @transform_3, window_bounds = array<i64: 1, 1, 64>}, {transform_indices = @transform_4, window_bounds = array<i64: 1, 128, 1>}, {transform_indices = @transform_5, window_bounds = array<i64: 1, 1, 128>}, {pipeline_mode = #tpu.pipeline_mode<synchronous>, transform_indices = @transform_6, window_bounds = array<i64: 64, 128>}, {pipeline_mode = #tpu.pipeline_mode<synchronous>, transform_indices = @transform_7, window_bounds = array<i64: 1, 64>}, {pipeline_mode = #tpu.pipeline_mode<synchronous>, transform_indices = @transform_8, window_bounds = array<i64: 16, 64>}, {pipeline_mode = #tpu.pipeline_mode<synchronous>, transform_indices = @transform_9, window_bounds = array<i64: 1, 64>}, {pipeline_mode = #tpu.pipeline_mode<synchronous>, transform_indices = @transform_10, window_bounds = array<i64: 64, 64>}, {pipeline_mode = #tpu.pipeline_mode<synchronous>, transform_indices = @transform_11, window_bounds = array<i64: 1, 64>}, {pipeline_mode = #tpu.pipeline_mode<synchronous>, transform_indices = @transform_12, window_bounds = array<i64: 64, 128>}, {pipeline_mode = #tpu.pipeline_mode<synchronous>, transform_indices = @transform_13, window_bounds = array<i64: 1, 128>}, {pipeline_mode = #tpu.pipeline_mode<synchronous>, transform_indices = @transform_14, window_bounds = array<i64: 128, 128>}, {pipeline_mode = #tpu.pipeline_mode<synchronous>, transform_indices = @transform_15, window_bounds = array<i64: 1, 128>}, {pipeline_mode = #tpu.pipeline_mode<synchronous>, transform_indices = @transform_16, window_bounds = array<i64: 128, 128>}, {pipeline_mode = #tpu.pipeline_mode<synchronous>, transform_indices = @transform_17, window_bounds = array<i64: 1, 128>}, {pipeline_mode = #tpu.pipeline_mode<synchronous>, transform_indices = @transform_18, window_bounds = array<i64: 128, 128>}, {pipeline_mode = #tpu.pipeline_mode<synchronous>, transform_indices = @transform_19, window_bounds = array<i64: 1, 128>}, {transform_indices = @transform_20, window_bounds = array<i64: 4>}, {transform_indices = @transform_21, window_bounds = array<i64: 1, 32, 128>}]} {
    %c0 = arith.constant 0 : index
    %c0_0 = arith.constant 0 : index
    %c0_1 = arith.constant 0 : index
    %0 = vector.load %arg1[%c0, %c0_0, %c0_1] : memref<1x32x64xf32, #tpu.memory_space<vmem>>, vector<1x32x64xf32>
    %1 = vector.shape_cast %0 : vector<1x32x64xf32> to vector<32x64xf32>
    %2 = arith.truncf %1 : vector<32x64xf32> to vector<32x64xbf16>
    %c0_2 = arith.constant 0 : index
    %c0_3 = arith.constant 0 : index
    %c0_4 = arith.constant 0 : index
    %3 = vector.load %arg3[%c0_2, %c0_3, %c0_4] : memref<1x64x2xi32, #tpu.memory_space<vmem>>, vector<1x64x2xi32>
    %4 = vector.shape_cast %3 : vector<1x64x2xi32> to vector<64x2xi32>
    %5 = vector.extract_strided_slice %4 {offsets = [0, 0], sizes = [64, 1], strides = [1, 1]} : vector<64x2xi32> to vector<64x1xi32>
    %6 = vector.extract_strided_slice %4 {offsets = [0, 1], sizes = [64, 1], strides = [1, 1]} : vector<64x2xi32> to vector<64x1xi32>
    %7 = tpu.iota {dimensions = array<i32: 1>} : vector<64x32xi32>
    %8 = vector.broadcast %5 : vector<64x1xi32> to vector<64x32xi32>
    %9 = arith.cmpi eq, %8, %7 : vector<64x32xi32>
    %10 = arith.extui %9 : vector<64x32xi1> to vector<64x32xi32>
    %11 = arith.sitofp %10 : vector<64x32xi32> to vector<64x32xf32>
    %12 = arith.truncf %11 : vector<64x32xf32> to vector<64x32xbf16>
    %13 = vector.broadcast %6 : vector<64x1xi32> to vector<64x32xi32>
    %14 = arith.cmpi eq, %13, %7 : vector<64x32xi32>
    %15 = arith.extui %14 : vector<64x32xi1> to vector<64x32xi32>
    %16 = arith.sitofp %15 : vector<64x32xi32> to vector<64x32xf32>
    %17 = arith.truncf %16 : vector<64x32xf32> to vector<64x32xbf16>
    %18 = tpu.iota {dimensions = array<i32: 0>} : vector<32x64xi32>
    %c0_5 = arith.constant 0 : index
    %c0_6 = arith.constant 0 : index
    %c0_7 = arith.constant 0 : index
    %19 = vector.load %arg4[%c0_5, %c0_6, %c0_7] : memref<1x1x64xi32, #tpu.memory_space<vmem>>, vector<1x1x64xi32>
    %20 = vector.shape_cast %19 : vector<1x1x64xi32> to vector<1x64xi32>
    %21 = vector.broadcast %20 : vector<1x64xi32> to vector<32x64xi32>
    %22 = arith.cmpi eq, %18, %21 : vector<32x64xi32>
    %23 = arith.extui %22 : vector<32x64xi1> to vector<32x64xi32>
    %24 = arith.sitofp %23 : vector<32x64xi32> to vector<32x64xf32>
    %25 = tpu.iota {dimensions = array<i32: 1>} : vector<128x64xi32>
    %c0_8 = arith.constant 0 : index
    %c0_9 = arith.constant 0 : index
    %c0_10 = arith.constant 0 : index
    %26 = vector.load %arg5[%c0_8, %c0_9, %c0_10] : memref<1x128x1xi32, #tpu.memory_space<vmem>>, vector<1x128x1xi32>
    %27 = vector.shape_cast %26 : vector<1x128x1xi32> to vector<128x1xi32>
    %28 = vector.broadcast %27 : vector<128x1xi32> to vector<128x64xi32>
    %29 = arith.cmpi eq, %28, %25 : vector<128x64xi32>
    %30 = arith.extui %29 : vector<128x64xi1> to vector<128x64xi32>
    %31 = arith.sitofp %30 : vector<128x64xi32> to vector<128x64xf32>
    %32 = arith.truncf %31 : vector<128x64xf32> to vector<128x64xbf16>
    %33 = tpu.iota {dimensions = array<i32: 0>} : vector<64x128xi32>
    %c0_11 = arith.constant 0 : index
    %c0_12 = arith.constant 0 : index
    %c0_13 = arith.constant 0 : index
    %34 = vector.load %arg6[%c0_11, %c0_12, %c0_13] : memref<1x1x128xi32, #tpu.memory_space<vmem>>, vector<1x1x128xi32>
    %35 = vector.shape_cast %34 : vector<1x1x128xi32> to vector<1x128xi32>
    %36 = vector.broadcast %35 : vector<1x128xi32> to vector<64x128xi32>
    %37 = arith.cmpi eq, %33, %36 : vector<64x128xi32>
    %38 = arith.extui %37 : vector<64x128xi1> to vector<64x128xi32>
    %39 = arith.sitofp %38 : vector<64x128xi32> to vector<64x128xf32>
    %40 = arith.truncf %39 : vector<64x128xf32> to vector<64x128xbf16>
    %cst = arith.constant 1.000000e+00 : f32
    %41 = vector.broadcast %cst : f32 to vector<64x1xf32>
    %cst_14 = arith.constant dense<0.000000e+00> : vector<32x1xf32>
    %42 = tpu.matmul %24, %41, %cst_14 {dimension_numbers = #tpu.dot_dimension_numbers<[1], [0], [0], [1], [0, 0, 1, 1], [], []>} : vector<32x64xf32>, vector<64x1xf32>, vector<32x1xf32> -> vector<32x1xf32>
    %43 = arith.truncf %42 : vector<32x1xf32> to vector<32x1xbf16>
    %cst_15 = arith.constant dense<0.000000e+00> : vector<64x1xf32>
    %44 = tpu.matmul %12, %43, %cst_15 {dimension_numbers = #tpu.dot_dimension_numbers<[1], [0], [0], [1], [0, 0, 1, 1], [], []>} : vector<64x32xbf16>, vector<32x1xbf16>, vector<64x1xf32> -> vector<64x1xf32>
    %cst_16 = arith.constant 1.000000e+00 : f32
    %45 = vector.broadcast %cst_16 : f32 to vector<64x1xf32>
    %46 = arith.maximumf %44, %45 : vector<64x1xf32>
    %cst_17 = arith.constant 1.000000e+00 : f32
    %47 = vector.broadcast %cst_17 : f32 to vector<64x1xf32>
    %48 = arith.divf %47, %46 : vector<64x1xf32>
    %c0_18 = arith.constant 0 : index
    %c0_19 = arith.constant 0 : index
    %49 = vector.load %arg7[%c0_18, %c0_19] : memref<64x128xbf16, #tpu.memory_space<vmem>>, vector<64x128xbf16>
    %cst_20 = arith.constant dense<0.000000e+00> : vector<32x128xf32>
    %50 = tpu.matmul %2, %49, %cst_20 {dimension_numbers = #tpu.dot_dimension_numbers<[1], [0], [0], [1], [0, 0, 1, 1], [], []>} : vector<32x64xbf16>, vector<64x128xbf16>, vector<32x128xf32> -> vector<32x128xf32>
    %51 = vector.extract_strided_slice %50 {offsets = [0, 0], sizes = [32, 64], strides = [1, 1]} : vector<32x128xf32> to vector<32x64xf32>
    %52 = vector.extract_strided_slice %50 {offsets = [0, 64], sizes = [32, 64], strides = [1, 1]} : vector<32x128xf32> to vector<32x64xf32>
    %53 = arith.truncf %52 : vector<32x64xf32> to vector<32x64xbf16>
    %54 = tpu.concatenate %53, %2 in 1 : vector<32x64xbf16>, vector<32x64xbf16> -> vector<32x128xbf16>
    %cst_21 = arith.constant dense<0.000000e+00> : vector<64x128xf32>
    %55 = tpu.matmul %12, %54, %cst_21 {dimension_numbers = #tpu.dot_dimension_numbers<[1], [0], [0], [1], [0, 0, 1, 1], [], []>} : vector<64x32xbf16>, vector<32x128xbf16>, vector<64x128xf32> -> vector<64x128xf32>
    %56 = vector.extract_strided_slice %55 {offsets = [0, 0], sizes = [64, 64], strides = [1, 1]} : vector<64x128xf32> to vector<64x64xf32>
    %57 = vector.extract_strided_slice %55 {offsets = [0, 64], sizes = [64, 64], strides = [1, 1]} : vector<64x128xf32> to vector<64x64xf32>
    %58 = arith.truncf %51 : vector<32x64xf32> to vector<32x64xbf16>
    %cst_22 = arith.constant dense<0.000000e+00> : vector<64x64xf32>
    %59 = tpu.matmul %17, %58, %cst_22 {dimension_numbers = #tpu.dot_dimension_numbers<[1], [0], [0], [1], [0, 0, 1, 1], [], []>} : vector<64x32xbf16>, vector<32x64xbf16>, vector<64x64xf32> -> vector<64x64xf32>
    %c0_23 = arith.constant 0 : index
    %c0_24 = arith.constant 0 : index
    %c0_25 = arith.constant 0 : index
    %60 = vector.load %arg2[%c0_23, %c0_24, %c0_25] : memref<1x64x16xf32, #tpu.memory_space<vmem>>, vector<1x64x16xf32>
    %61 = vector.shape_cast %60 : vector<1x64x16xf32> to vector<64x16xf32>
    %62 = arith.truncf %61 : vector<64x16xf32> to vector<64x16xbf16>
    %c0_26 = arith.constant 0 : index
    %c0_27 = arith.constant 0 : index
    %63 = vector.load %arg9[%c0_26, %c0_27] : memref<16x64xbf16, #tpu.memory_space<vmem>>, vector<16x64xbf16>
    %cst_28 = arith.constant dense<0.000000e+00> : vector<64x64xf32>
    %64 = tpu.matmul %62, %63, %cst_28 {dimension_numbers = #tpu.dot_dimension_numbers<[1], [0], [0], [1], [0, 0, 1, 1], [], []>} : vector<64x16xbf16>, vector<16x64xbf16>, vector<64x64xf32> -> vector<64x64xf32>
    %c0_29 = arith.constant 0 : index
    %c0_30 = arith.constant 0 : index
    %65 = vector.load %arg10[%c0_29, %c0_30] : memref<1x64xf32, #tpu.memory_space<vmem>>, vector<1x64xf32>
    %66 = vector.broadcast %65 : vector<1x64xf32> to vector<64x64xf32>
    %67 = arith.addf %64, %66 : vector<64x64xf32>
    %c0_31 = arith.constant 0 : index
    %68 = memref.load %arg21[%c0_31] : memref<4xf32, #tpu.memory_space<smem>>
    %69 = arith.addf %59, %56 : vector<64x64xf32>
    %c0_32 = arith.constant 0 : index
    %c0_33 = arith.constant 0 : index
    %70 = vector.load %arg8[%c0_32, %c0_33] : memref<1x64xf32, #tpu.memory_space<vmem>>, vector<1x64xf32>
    %71 = vector.broadcast %70 : vector<1x64xf32> to vector<64x64xf32>
    %72 = arith.addf %69, %71 : vector<64x64xf32>
    %cst_34 = arith.constant 0.000000e+00 : f32
    %73 = vector.broadcast %cst_34 : f32 to vector<64x64xf32>
    %74 = arith.cmpf oge, %72, %73 : vector<64x64xf32>
    %75 = vector.broadcast %68 : f32 to vector<64x64xf32>
    %76 = arith.mulf %75, %72 : vector<64x64xf32>
    %77 = arith.select %74, %72, %76 : vector<64x64xi1>, vector<64x64xf32>
    %78 = arith.truncf %77 : vector<64x64xf32> to vector<64x64xbf16>
    %c0_35 = arith.constant 0 : index
    %c0_36 = arith.constant 0 : index
    %79 = vector.load %arg11[%c0_35, %c0_36] : memref<64x64xbf16, #tpu.memory_space<vmem>>, vector<64x64xbf16>
    %cst_37 = arith.constant dense<0.000000e+00> : vector<64x64xf32>
    %80 = tpu.matmul %78, %79, %cst_37 {dimension_numbers = #tpu.dot_dimension_numbers<[1], [0], [0], [1], [0, 0, 1, 1], [], []>} : vector<64x64xbf16>, vector<64x64xbf16>, vector<64x64xf32> -> vector<64x64xf32>
    %c0_38 = arith.constant 0 : index
    %c0_39 = arith.constant 0 : index
    %81 = vector.load %arg12[%c0_38, %c0_39] : memref<1x64xf32, #tpu.memory_space<vmem>>, vector<1x64xf32>
    %82 = vector.broadcast %81 : vector<1x64xf32> to vector<64x64xf32>
    %83 = arith.addf %80, %82 : vector<64x64xf32>
    %cst_40 = arith.constant 1.000000e+00 : f32
    %84 = vector.broadcast %cst_40 : f32 to vector<64x1xf32>
    %85 = arith.mulf %83, %67 : vector<64x64xf32>
    %cst_41 = arith.constant dense<0.000000e+00> : vector<64x1xf32>
    %86 = tpu.matmul %85, %84, %cst_41 {dimension_numbers = #tpu.dot_dimension_numbers<[1], [0], [0], [1], [0, 0, 1, 1], [], []>} : vector<64x64xf32>, vector<64x1xf32>, vector<64x1xf32> -> vector<64x1xf32>
    %87 = arith.mulf %86, %48 : vector<64x1xf32>
    %88 = arith.negf %87 : vector<64x1xf32>
    %89 = math.exp %88 : vector<64x1xf32>
    %cst_42 = arith.constant 1.000000e+00 : f32
    %90 = vector.broadcast %cst_42 : f32 to vector<64x1xf32>
    %91 = arith.addf %90, %89 : vector<64x1xf32>
    %92 = arith.divf %90, %91 : vector<64x1xf32>
    %93 = vector.broadcast %92 : vector<64x1xf32> to vector<64x64xf32>
    %94 = arith.mulf %57, %93 : vector<64x64xf32>
    %95 = arith.truncf %94 : vector<64x64xf32> to vector<64x64xbf16>
    %cst_43 = arith.constant dense<0.000000e+00> : vector<128x64xf32>
    %96 = tpu.matmul %32, %95, %cst_43 {dimension_numbers = #tpu.dot_dimension_numbers<[1], [0], [0], [1], [0, 0, 1, 1], [], []>} : vector<128x64xbf16>, vector<64x64xbf16>, vector<128x64xf32> -> vector<128x64xf32>
    %97 = arith.truncf %96 : vector<128x64xf32> to vector<128x64xbf16>
    %cst_44 = arith.constant dense<0.000000e+00> : vector<64x64xf32>
    %98 = tpu.matmul %40, %97, %cst_44 {dimension_numbers = #tpu.dot_dimension_numbers<[1], [0], [0], [1], [0, 0, 1, 1], [], []>} : vector<64x128xbf16>, vector<128x64xbf16>, vector<64x64xf32> -> vector<64x64xf32>
    %99 = vector.broadcast %92 : vector<64x1xf32> to vector<64x64xf32>
    %100 = arith.mulf %98, %99 : vector<64x64xf32>
    %101 = arith.addf %94, %100 : vector<64x64xf32>
    %102 = arith.truncf %101 : vector<64x64xf32> to vector<64x64xbf16>
    %cst_45 = arith.constant dense<0.000000e+00> : vector<128x64xf32>
    %103 = tpu.matmul %32, %102, %cst_45 {dimension_numbers = #tpu.dot_dimension_numbers<[1], [0], [0], [1], [0, 0, 1, 1], [], []>} : vector<128x64xbf16>, vector<64x64xbf16>, vector<128x64xf32> -> vector<128x64xf32>
    %104 = arith.truncf %103 : vector<128x64xf32> to vector<128x64xbf16>
    %cst_46 = arith.constant dense<0.000000e+00> : vector<64x64xf32>
    %105 = tpu.matmul %40, %104, %cst_46 {dimension_numbers = #tpu.dot_dimension_numbers<[1], [0], [0], [1], [0, 0, 1, 1], [], []>} : vector<64x128xbf16>, vector<128x64xbf16>, vector<64x64xf32> -> vector<64x64xf32>
    %106 = vector.broadcast %92 : vector<64x1xf32> to vector<64x64xf32>
    %107 = arith.mulf %105, %106 : vector<64x64xf32>
    %108 = arith.addf %94, %107 : vector<64x64xf32>
    %109 = arith.truncf %108 : vector<64x64xf32> to vector<64x64xbf16>
    %cst_47 = arith.constant dense<0.000000e+00> : vector<128x64xf32>
    %110 = tpu.matmul %32, %109, %cst_47 {dimension_numbers = #tpu.dot_dimension_numbers<[1], [0], [0], [1], [0, 0, 1, 1], [], []>} : vector<128x64xbf16>, vector<64x64xbf16>, vector<128x64xf32> -> vector<128x64xf32>
    %111 = arith.truncf %110 : vector<128x64xf32> to vector<128x64xbf16>
    %cst_48 = arith.constant dense<0.000000e+00> : vector<64x64xf32>
    %112 = tpu.matmul %40, %111, %cst_48 {dimension_numbers = #tpu.dot_dimension_numbers<[1], [0], [0], [1], [0, 0, 1, 1], [], []>} : vector<64x128xbf16>, vector<128x64xbf16>, vector<64x64xf32> -> vector<64x64xf32>
    %113 = vector.broadcast %92 : vector<64x1xf32> to vector<64x64xf32>
    %114 = arith.mulf %112, %113 : vector<64x64xf32>
    %115 = arith.addf %94, %114 : vector<64x64xf32>
    %cst_49 = arith.constant dense<0.000000e+00> : vector<32x64xf32>
    %116 = tpu.matmul %24, %115, %cst_49 {dimension_numbers = #tpu.dot_dimension_numbers<[1], [0], [0], [1], [0, 0, 1, 1], [], []>} : vector<32x64xf32>, vector<64x64xf32>, vector<32x64xf32> -> vector<32x64xf32>
    %117 = arith.addf %1, %116 : vector<32x64xf32>
    %cst_50 = arith.constant dense<0.000000e+00> : vector<64xf32>
    %118 = vector.multi_reduction <add>, %117, %cst_50 [0] : vector<32x64xf32> to vector<64xf32>
    %119 = vector.shape_cast %118 : vector<64xf32> to vector<1x64xf32>
    %cst_51 = arith.constant 3.200000e+01 : f32
    %120 = vector.broadcast %cst_51 : f32 to vector<1x64xf32>
    %121 = arith.divf %119, %120 : vector<1x64xf32>
    %122 = vector.broadcast %121 : vector<1x64xf32> to vector<32x64xf32>
    %123 = arith.subf %117, %122 : vector<32x64xf32>
    %124 = arith.mulf %123, %123 : vector<32x64xf32>
    %cst_52 = arith.constant dense<0.000000e+00> : vector<64xf32>
    %125 = vector.multi_reduction <add>, %124, %cst_52 [0] : vector<32x64xf32> to vector<64xf32>
    %126 = vector.shape_cast %125 : vector<64xf32> to vector<1x64xf32>
    %cst_53 = arith.constant 3.200000e+01 : f32
    %127 = vector.broadcast %cst_53 : f32 to vector<1x64xf32>
    %128 = arith.divf %126, %127 : vector<1x64xf32>
    %cst_54 = arith.constant 9.99999974E-6 : f32
    %129 = vector.broadcast %cst_54 : f32 to vector<1x64xf32>
    %130 = arith.addf %128, %129 : vector<1x64xf32>
    %131 = math.rsqrt %130 : vector<1x64xf32>
    %132 = vector.broadcast %131 : vector<1x64xf32> to vector<32x64xf32>
    %133 = arith.mulf %123, %132 : vector<32x64xf32>
    %134 = arith.truncf %133 : vector<32x64xf32> to vector<32x64xbf16>
    %c0_55 = arith.constant 0 : index
    %c0_56 = arith.constant 0 : index
    %135 = vector.load %arg13[%c0_55, %c0_56] : memref<64x128xbf16, #tpu.memory_space<vmem>>, vector<64x128xbf16>
    %cst_57 = arith.constant dense<0.000000e+00> : vector<32x128xf32>
    %136 = tpu.matmul %134, %135, %cst_57 {dimension_numbers = #tpu.dot_dimension_numbers<[1], [0], [0], [1], [0, 0, 1, 1], [], []>} : vector<32x64xbf16>, vector<64x128xbf16>, vector<32x128xf32> -> vector<32x128xf32>
    %c0_58 = arith.constant 0 : index
    %c0_59 = arith.constant 0 : index
    %137 = vector.load %arg14[%c0_58, %c0_59] : memref<1x128xf32, #tpu.memory_space<vmem>>, vector<1x128xf32>
    %138 = vector.broadcast %137 : vector<1x128xf32> to vector<32x128xf32>
    %139 = arith.addf %136, %138 : vector<32x128xf32>
    %cst_60 = arith.constant dense<0.000000e+00> : vector<128xf32>
    %140 = vector.multi_reduction <add>, %139, %cst_60 [0] : vector<32x128xf32> to vector<128xf32>
    %141 = vector.shape_cast %140 : vector<128xf32> to vector<1x128xf32>
    %cst_61 = arith.constant 3.200000e+01 : f32
    %142 = vector.broadcast %cst_61 : f32 to vector<1x128xf32>
    %143 = arith.divf %141, %142 : vector<1x128xf32>
    %144 = vector.broadcast %143 : vector<1x128xf32> to vector<32x128xf32>
    %145 = arith.subf %139, %144 : vector<32x128xf32>
    %146 = arith.mulf %145, %145 : vector<32x128xf32>
    %cst_62 = arith.constant dense<0.000000e+00> : vector<128xf32>
    %147 = vector.multi_reduction <add>, %146, %cst_62 [0] : vector<32x128xf32> to vector<128xf32>
    %148 = vector.shape_cast %147 : vector<128xf32> to vector<1x128xf32>
    %cst_63 = arith.constant 3.200000e+01 : f32
    %149 = vector.broadcast %cst_63 : f32 to vector<1x128xf32>
    %150 = arith.divf %148, %149 : vector<1x128xf32>
    %cst_64 = arith.constant 9.99999974E-6 : f32
    %151 = vector.broadcast %cst_64 : f32 to vector<1x128xf32>
    %152 = arith.addf %150, %151 : vector<1x128xf32>
    %153 = math.rsqrt %152 : vector<1x128xf32>
    %154 = vector.broadcast %153 : vector<1x128xf32> to vector<32x128xf32>
    %155 = arith.mulf %145, %154 : vector<32x128xf32>
    %c1 = arith.constant 1 : index
    %156 = memref.load %arg21[%c1] : memref<4xf32, #tpu.memory_space<smem>>
    %cst_65 = arith.constant 0.000000e+00 : f32
    %157 = vector.broadcast %cst_65 : f32 to vector<32x128xf32>
    %158 = arith.cmpf oge, %155, %157 : vector<32x128xf32>
    %159 = vector.broadcast %156 : f32 to vector<32x128xf32>
    %160 = arith.mulf %159, %155 : vector<32x128xf32>
    %161 = arith.select %158, %155, %160 : vector<32x128xi1>, vector<32x128xf32>
    %162 = arith.truncf %161 : vector<32x128xf32> to vector<32x128xbf16>
    %c0_66 = arith.constant 0 : index
    %c0_67 = arith.constant 0 : index
    %163 = vector.load %arg15[%c0_66, %c0_67] : memref<128x128xbf16, #tpu.memory_space<vmem>>, vector<128x128xbf16>
    %cst_68 = arith.constant dense<0.000000e+00> : vector<32x128xf32>
    %164 = tpu.matmul %162, %163, %cst_68 {dimension_numbers = #tpu.dot_dimension_numbers<[1], [0], [0], [1], [0, 0, 1, 1], [], []>} : vector<32x128xbf16>, vector<128x128xbf16>, vector<32x128xf32> -> vector<32x128xf32>
    %c0_69 = arith.constant 0 : index
    %c0_70 = arith.constant 0 : index
    %165 = vector.load %arg16[%c0_69, %c0_70] : memref<1x128xf32, #tpu.memory_space<vmem>>, vector<1x128xf32>
    %166 = vector.broadcast %165 : vector<1x128xf32> to vector<32x128xf32>
    %167 = arith.addf %164, %166 : vector<32x128xf32>
    %cst_71 = arith.constant dense<0.000000e+00> : vector<128xf32>
    %168 = vector.multi_reduction <add>, %167, %cst_71 [0] : vector<32x128xf32> to vector<128xf32>
    %169 = vector.shape_cast %168 : vector<128xf32> to vector<1x128xf32>
    %cst_72 = arith.constant 3.200000e+01 : f32
    %170 = vector.broadcast %cst_72 : f32 to vector<1x128xf32>
    %171 = arith.divf %169, %170 : vector<1x128xf32>
    %172 = vector.broadcast %171 : vector<1x128xf32> to vector<32x128xf32>
    %173 = arith.subf %167, %172 : vector<32x128xf32>
    %174 = arith.mulf %173, %173 : vector<32x128xf32>
    %cst_73 = arith.constant dense<0.000000e+00> : vector<128xf32>
    %175 = vector.multi_reduction <add>, %174, %cst_73 [0] : vector<32x128xf32> to vector<128xf32>
    %176 = vector.shape_cast %175 : vector<128xf32> to vector<1x128xf32>
    %cst_74 = arith.constant 3.200000e+01 : f32
    %177 = vector.broadcast %cst_74 : f32 to vector<1x128xf32>
    %178 = arith.divf %176, %177 : vector<1x128xf32>
    %cst_75 = arith.constant 9.99999974E-6 : f32
    %179 = vector.broadcast %cst_75 : f32 to vector<1x128xf32>
    %180 = arith.addf %178, %179 : vector<1x128xf32>
    %181 = math.rsqrt %180 : vector<1x128xf32>
    %182 = vector.broadcast %181 : vector<1x128xf32> to vector<32x128xf32>
    %183 = arith.mulf %173, %182 : vector<32x128xf32>
    %c2 = arith.constant 2 : index
    %184 = memref.load %arg21[%c2] : memref<4xf32, #tpu.memory_space<smem>>
    %cst_76 = arith.constant 0.000000e+00 : f32
    %185 = vector.broadcast %cst_76 : f32 to vector<32x128xf32>
    %186 = arith.cmpf oge, %183, %185 : vector<32x128xf32>
    %187 = vector.broadcast %184 : f32 to vector<32x128xf32>
    %188 = arith.mulf %187, %183 : vector<32x128xf32>
    %189 = arith.select %186, %183, %188 : vector<32x128xi1>, vector<32x128xf32>
    %190 = arith.truncf %189 : vector<32x128xf32> to vector<32x128xbf16>
    %c0_77 = arith.constant 0 : index
    %c0_78 = arith.constant 0 : index
    %191 = vector.load %arg17[%c0_77, %c0_78] : memref<128x128xbf16, #tpu.memory_space<vmem>>, vector<128x128xbf16>
    %cst_79 = arith.constant dense<0.000000e+00> : vector<32x128xf32>
    %192 = tpu.matmul %190, %191, %cst_79 {dimension_numbers = #tpu.dot_dimension_numbers<[1], [0], [0], [1], [0, 0, 1, 1], [], []>} : vector<32x128xbf16>, vector<128x128xbf16>, vector<32x128xf32> -> vector<32x128xf32>
    %c0_80 = arith.constant 0 : index
    %c0_81 = arith.constant 0 : index
    %193 = vector.load %arg18[%c0_80, %c0_81] : memref<1x128xf32, #tpu.memory_space<vmem>>, vector<1x128xf32>
    %194 = vector.broadcast %193 : vector<1x128xf32> to vector<32x128xf32>
    %195 = arith.addf %192, %194 : vector<32x128xf32>
    %196 = arith.addf %195, %139 : vector<32x128xf32>
    %cst_82 = arith.constant 5.000000e-01 : f32
    %197 = vector.broadcast %cst_82 : f32 to vector<32x128xf32>
    %198 = arith.mulf %196, %197 : vector<32x128xf32>
    %cst_83 = arith.constant dense<0.000000e+00> : vector<128xf32>
    %199 = vector.multi_reduction <add>, %198, %cst_83 [0] : vector<32x128xf32> to vector<128xf32>
    %200 = vector.shape_cast %199 : vector<128xf32> to vector<1x128xf32>
    %cst_84 = arith.constant 3.200000e+01 : f32
    %201 = vector.broadcast %cst_84 : f32 to vector<1x128xf32>
    %202 = arith.divf %200, %201 : vector<1x128xf32>
    %203 = vector.broadcast %202 : vector<1x128xf32> to vector<32x128xf32>
    %204 = arith.subf %198, %203 : vector<32x128xf32>
    %205 = arith.mulf %204, %204 : vector<32x128xf32>
    %cst_85 = arith.constant dense<0.000000e+00> : vector<128xf32>
    %206 = vector.multi_reduction <add>, %205, %cst_85 [0] : vector<32x128xf32> to vector<128xf32>
    %207 = vector.shape_cast %206 : vector<128xf32> to vector<1x128xf32>
    %cst_86 = arith.constant 3.200000e+01 : f32
    %208 = vector.broadcast %cst_86 : f32 to vector<1x128xf32>
    %209 = arith.divf %207, %208 : vector<1x128xf32>
    %cst_87 = arith.constant 9.99999974E-6 : f32
    %210 = vector.broadcast %cst_87 : f32 to vector<1x128xf32>
    %211 = arith.addf %209, %210 : vector<1x128xf32>
    %212 = math.rsqrt %211 : vector<1x128xf32>
    %213 = vector.broadcast %212 : vector<1x128xf32> to vector<32x128xf32>
    %214 = arith.mulf %204, %213 : vector<32x128xf32>
    %c3 = arith.constant 3 : index
    %215 = memref.load %arg21[%c3] : memref<4xf32, #tpu.memory_space<smem>>
    %cst_88 = arith.constant 0.000000e+00 : f32
    %216 = vector.broadcast %cst_88 : f32 to vector<32x128xf32>
    %217 = arith.cmpf oge, %214, %216 : vector<32x128xf32>
    %218 = vector.broadcast %215 : f32 to vector<32x128xf32>
    %219 = arith.mulf %218, %214 : vector<32x128xf32>
    %220 = arith.select %217, %214, %219 : vector<32x128xi1>, vector<32x128xf32>
    %221 = arith.truncf %220 : vector<32x128xf32> to vector<32x128xbf16>
    %c0_89 = arith.constant 0 : index
    %c0_90 = arith.constant 0 : index
    %222 = vector.load %arg19[%c0_89, %c0_90] : memref<128x128xbf16, #tpu.memory_space<vmem>>, vector<128x128xbf16>
    %cst_91 = arith.constant dense<0.000000e+00> : vector<32x128xf32>
    %223 = tpu.matmul %221, %222, %cst_91 {dimension_numbers = #tpu.dot_dimension_numbers<[1], [0], [0], [1], [0, 0, 1, 1], [], []>} : vector<32x128xbf16>, vector<128x128xbf16>, vector<32x128xf32> -> vector<32x128xf32>
    %c0_92 = arith.constant 0 : index
    %c0_93 = arith.constant 0 : index
    %224 = vector.load %arg20[%c0_92, %c0_93] : memref<1x128xf32, #tpu.memory_space<vmem>>, vector<1x128xf32>
    %225 = vector.broadcast %224 : vector<1x128xf32> to vector<32x128xf32>
    %226 = arith.addf %223, %225 : vector<32x128xf32>
    %227 = arith.addf %226, %198 : vector<32x128xf32>
    %cst_94 = arith.constant 5.000000e-01 : f32
    %228 = vector.broadcast %cst_94 : f32 to vector<32x128xf32>
    %229 = arith.mulf %227, %228 : vector<32x128xf32>
    %c0_95 = arith.constant 0 : index
    %c0_96 = arith.constant 0 : index
    %c0_97 = arith.constant 0 : index
    %230 = vector.load %arg22[%c0_95, %c0_96, %c0_97] : memref<1x32x128xf32, #tpu.memory_space<vmem>>, vector<1x32x128xf32>
    %231 = vector.shape_cast %230 : vector<1x32x128xf32> to vector<32x128xf32>
    %232 = vector.shape_cast %229 : vector<32x128xf32> to vector<1x32x128xf32>
    tpu.vector_store %arg22[%c0_95, %c0_96, %c0_97], %232 {strides = array<i32>} : memref<1x32x128xf32, #tpu.memory_space<vmem>>, vector<1x32x128xf32>,
    return
  }
  func.func @transform_0(%arg0: i32) -> (i32, i32, i32) {
    %c0_i32 = arith.constant 0 : i32
    %c0_i32_0 = arith.constant 0 : i32
    %c0_i32_1 = arith.constant 0 : i32
    return %arg0, %c0_i32, %c0_i32_0 : i32, i32, i32
  }
  func.func @transform_1(%arg0: i32) -> (i32, i32, i32) {
    %c0_i32 = arith.constant 0 : i32
    %c0_i32_0 = arith.constant 0 : i32
    %c0_i32_1 = arith.constant 0 : i32
    return %arg0, %c0_i32, %c0_i32_0 : i32, i32, i32
  }
  func.func @transform_2(%arg0: i32) -> (i32, i32, i32) {
    %c0_i32 = arith.constant 0 : i32
    %c0_i32_0 = arith.constant 0 : i32
    %c0_i32_1 = arith.constant 0 : i32
    return %arg0, %c0_i32, %c0_i32_0 : i32, i32, i32
  }
  func.func @transform_3(%arg0: i32) -> (i32, i32, i32) {
    %c0_i32 = arith.constant 0 : i32
    %c0_i32_0 = arith.constant 0 : i32
    %c0_i32_1 = arith.constant 0 : i32
    return %arg0, %c0_i32, %c0_i32_0 : i32, i32, i32
  }
  func.func @transform_4(%arg0: i32) -> (i32, i32, i32) {
    %c0_i32 = arith.constant 0 : i32
    %c0_i32_0 = arith.constant 0 : i32
    %c0_i32_1 = arith.constant 0 : i32
    return %arg0, %c0_i32, %c0_i32_0 : i32, i32, i32
  }
  func.func @transform_5(%arg0: i32) -> (i32, i32, i32) {
    %c0_i32 = arith.constant 0 : i32
    %c0_i32_0 = arith.constant 0 : i32
    %c0_i32_1 = arith.constant 0 : i32
    return %arg0, %c0_i32, %c0_i32_0 : i32, i32, i32
  }
  func.func @transform_6(%arg0: i32) -> (i32, i32) {
    %c0_i32 = arith.constant 0 : i32
    %c0_i32_0 = arith.constant 0 : i32
    %c0_i32_1 = arith.constant 0 : i32
    return %c0_i32, %c0_i32_0 : i32, i32
  }
  func.func @transform_7(%arg0: i32) -> (i32, i32) {
    %c0_i32 = arith.constant 0 : i32
    %c0_i32_0 = arith.constant 0 : i32
    %c0_i32_1 = arith.constant 0 : i32
    return %c0_i32, %c0_i32_0 : i32, i32
  }
  func.func @transform_8(%arg0: i32) -> (i32, i32) {
    %c0_i32 = arith.constant 0 : i32
    %c0_i32_0 = arith.constant 0 : i32
    %c0_i32_1 = arith.constant 0 : i32
    return %c0_i32, %c0_i32_0 : i32, i32
  }
  func.func @transform_9(%arg0: i32) -> (i32, i32) {
    %c0_i32 = arith.constant 0 : i32
    %c0_i32_0 = arith.constant 0 : i32
    %c0_i32_1 = arith.constant 0 : i32
    return %c0_i32, %c0_i32_0 : i32, i32
  }
  func.func @transform_10(%arg0: i32) -> (i32, i32) {
    %c0_i32 = arith.constant 0 : i32
    %c0_i32_0 = arith.constant 0 : i32
    %c0_i32_1 = arith.constant 0 : i32
    return %c0_i32, %c0_i32_0 : i32, i32
  }
  func.func @transform_11(%arg0: i32) -> (i32, i32) {
    %c0_i32 = arith.constant 0 : i32
    %c0_i32_0 = arith.constant 0 : i32
    %c0_i32_1 = arith.constant 0 : i32
    return %c0_i32, %c0_i32_0 : i32, i32
  }
  func.func @transform_12(%arg0: i32) -> (i32, i32) {
    %c0_i32 = arith.constant 0 : i32
    %c0_i32_0 = arith.constant 0 : i32
    %c0_i32_1 = arith.constant 0 : i32
    return %c0_i32, %c0_i32_0 : i32, i32
  }
  func.func @transform_13(%arg0: i32) -> (i32, i32) {
    %c0_i32 = arith.constant 0 : i32
    %c0_i32_0 = arith.constant 0 : i32
    %c0_i32_1 = arith.constant 0 : i32
    return %c0_i32, %c0_i32_0 : i32, i32
  }
  func.func @transform_14(%arg0: i32) -> (i32, i32) {
    %c0_i32 = arith.constant 0 : i32
    %c0_i32_0 = arith.constant 0 : i32
    %c0_i32_1 = arith.constant 0 : i32
    return %c0_i32, %c0_i32_0 : i32, i32
  }
  func.func @transform_15(%arg0: i32) -> (i32, i32) {
    %c0_i32 = arith.constant 0 : i32
    %c0_i32_0 = arith.constant 0 : i32
    %c0_i32_1 = arith.constant 0 : i32
    return %c0_i32, %c0_i32_0 : i32, i32
  }
  func.func @transform_16(%arg0: i32) -> (i32, i32) {
    %c0_i32 = arith.constant 0 : i32
    %c0_i32_0 = arith.constant 0 : i32
    %c0_i32_1 = arith.constant 0 : i32
    return %c0_i32, %c0_i32_0 : i32, i32
  }
  func.func @transform_17(%arg0: i32) -> (i32, i32) {
    %c0_i32 = arith.constant 0 : i32
    %c0_i32_0 = arith.constant 0 : i32
    %c0_i32_1 = arith.constant 0 : i32
    return %c0_i32, %c0_i32_0 : i32, i32
  }
  func.func @transform_18(%arg0: i32) -> (i32, i32) {
    %c0_i32 = arith.constant 0 : i32
    %c0_i32_0 = arith.constant 0 : i32
    %c0_i32_1 = arith.constant 0 : i32
    return %c0_i32, %c0_i32_0 : i32, i32
  }
  func.func @transform_19(%arg0: i32) -> (i32, i32) {
    %c0_i32 = arith.constant 0 : i32
    %c0_i32_0 = arith.constant 0 : i32
    %c0_i32_1 = arith.constant 0 : i32
    return %c0_i32, %c0_i32_0 : i32, i32
  }
  func.func @transform_20(%arg0: i32) -> i32 {
    %c0_i32 = arith.constant 0 : i32
    %c0_i32_0 = arith.constant 0 : i32
    return %c0_i32 : i32
  }
  func.func @transform_21(%arg0: i32) -> (i32, i32, i32) {
    %c0_i32 = arith.constant 0 : i32
    %c0_i32_0 = arith.constant 0 : i32
    %c0_i32_1 = arith.constant 0 : i32
    return %arg0, %c0_i32, %c0_i32_0 : i32, i32, i32
  }
}

</mosaic_0001>

<bundles_post_ra>
// kernel: gmpnn_block_forward.1
= control target key start
LH: loop header
LB: loop body
LE: loop exit
PB: predicated region body
PF: predicated region fallthrough
CT: control target
= control target key end

     0   :  { %s4945_s0 = inlined_call_operand.vmem [shape: f32[4,32,64], index: 0, kind: input, shape index: {}]   ;;  %s4946_s1 = inlined_call_operand.vmem [shape: f32[4,64,16], index: 1, kind: input, shape index: {}]   ;;  %s4947_s2 = inlined_call_operand.vmem [shape: s32[4,64,2], index: 2, kind: input, shape index: {}]   ;;  %s4948_s3 = inlined_call_operand.vmem [shape: s32[4,1,64], index: 3, kind: input, shape index: {}]   ;;  %s4949_s4 = inlined_call_operand.vmem [shape: s32[4,128,1], index: 4, kind: input, shape index: {}]   ;;  %s4950_s5 = inlined_call_operand.vmem [shape: s32[4,1,128], index: 5, kind: input, shape index: {}]   ;;  %s4951_s6 = inlined_call_operand.vmem [shape: bf16[64,128], index: 6, kind: input, shape index: {}]   ;;  %s4952_s7 = inlined_call_operand.vmem [shape: f32[1,64], index: 7, kind: input, shape index: {}]   ;;  %s4953_s8 = inlined_call_operand.vmem [shape: bf16[16,64], index: 8, kind: input, shape index: {}]   ;;  %s4954_s9 = inlined_call_operand.vmem [shape: f32[1,64], index: 9, kind: input, shape index: {}]   ;;  %s4955_s10 = inlined_call_operand.vmem [shape: bf16[64,64], index: 10, kind: input, shape index: {}]   ;;  %s4956_s11 = inlined_call_operand.vmem [shape: f32[1,64], index: 11, kind: input, shape index: {}]   ;;  %s4957_s12 = inlined_call_operand.vmem [shape: bf16[64,128], index: 12, kind: input, shape index: {}]   ;;  %s4958_s13 = inlined_call_operand.vmem [shape: f32[1,128], index: 13, kind: input, shape index: {}]   ;;  %s4959_s14 = inlined_call_operand.vmem [shape: bf16[128,128], index: 14, kind: input, shape index: {}]   ;;  %s4960_s15 = inlined_call_operand.vmem [shape: f32[1,128], index: 15, kind: input, shape index: {}]   ;;  %s4961_s16 = inlined_call_operand.vmem [shape: bf16[128,128], index: 16, kind: input, shape index: {}]   ;;  %s4962_s17 = inlined_call_operand.vmem [shape: f32[1,128], index: 17, kind: input, shape index: {}]   ;;  %s4963_s18 = inlined_call_operand.vmem [shape: bf16[128,128], index: 18, kind: input, shape index: {}]   ;;  %s4964_s19 = inlined_call_operand.vmem [shape: f32[1,128], index: 19, kind: input, shape index: {}]   ;;  %s4965_s20 = inlined_call_operand.vmem [shape: f32[4], index: 20, kind: input, shape index: {}]   ;;  %s4966_s21 = inlined_call_operand.hbm [shape: f32[4,32,128], index: 21, kind: output, shape index: {}]  }
   0x1   :  { %4976 = sst [smem:[#allocation14_spill]] %s4945_s0 }
   0x2   :  { %4977 = sst [smem:[#allocation15_spill]] %s4946_s1 }
   0x3   :  { %4978 = sst [smem:[#allocation16_spill]] %s4947_s2 }
   0x4   :  { %4979 = sst [smem:[#allocation17_spill]] %s4948_s3 }
   0x5   :  { %4980 = sst [smem:[#allocation18_spill]] %s4949_s4 }
   0x6   :  { %4981 = sst [smem:[#allocation19_spill]] %s4950_s5 }
   0x7   :  { %4982 = sst [smem:[#allocation20_spill]] %s4951_s6 }
   0x8   :  { %4983 = sst [smem:[#allocation21_spill]] %s4952_s7 }
   0x9   :  { %4984 = sst [smem:[#allocation22_spill]] %s4965_s20 }
   0xa   :  { %26 = vsyncpa [#allocation4], 0 }
   0xb   :  { %27 = vsyncpa [#allocation3], 0 }
   0xc   :  { %29 = vsyncpa [#allocation3 + $0x1], 0  ;;  %s3898_s2 = smov 0   ;;  %s3900_s25 = smov 0  }
   0xd   :  { %s3902_s26 = smov 0   ;;  %s3904_s27 = smov 0  }
   0xe LB: > { %4985 = sst [smem:[#allocation8_spill]] %s3764_s2  ;;  %s3919_s3 = sadd.s32 4294967295, %s3776_s27   ;;  %s3776_s27 = sphi %s3904_s27, %s5027_s27   ;;  %s3772_s26 = sphi %s3902_s26, %s5029_s26   ;;  %s3768_s25 = sphi %s3900_s25, %s5031_s25   ;;  %s3764_s2 = sphi %s3898_s2, %s5030_s2  }
   0xf   : > { %4986 = sst [smem:[#allocation9_spill]] %s3772_s26  ;;  %s3176_s28 = sadd.s32 4294967294, %s3776_s27  }
  0x10   : > { %4987 = sst [smem:[#allocation10_spill]] %s3776_s27  ;;  %s3923_s29 = sadd.s32 1, %s3776_s27  }
  0x11   : > { %4988 = sst [smem:[#allocation11_spill]] %s3923_s29  ;;  %s513_s0 = sadd.s32 1, %s3772_s26 }
  0x12   : > { %s510_s4 = ssub.s32 %s3776_s27, %s3923_s29  ;;  %p523_p0 = scmp.ne.s32.totalorder %s3772_s26, %s3768_s25 }
  0x13   : > { %p511_p1 = scmp.eq.s32.totalorder %s510_s4, 0  ;;  %p524_p2 = scmp.eq.s32.totalorder %s3919_s3, 3 }
  0x14   : > { %p529_p3 = scmp.ne.s32.totalorder %s3768_s25, %s3764_s2  ;;  %p530_p4 = scmp.eq.s32.totalorder %s3176_s28, 3 }
  0x15   : > { %s3934_s30 = scalar_select %p511_p1, %s3772_s26, %s513_s0  }
  0x16   : > { %p3936_p5 = por %p524_p2, %p523_p0  ;;  %p3940_p6 = por %p530_p4, %p529_p3 }
  0x17   : > { %4989 = sst [smem:[#allocation12_spill]] %s3934_s30  ;;  %p3177_p7 = scmp.ge.s32.totalorder %s3776_s27, 1 }
  0x18   : > { %s4991_s22 = scalar_select %p3940_p6, 1, 0 }
  0x19   : > { %p537_p8 = scmp.lt.s32.totalorder %s3776_s27, 5  ;;  %p3545_p9 = scmp.eq.s32.totalorder %s3919_s3, 0 }
  0x1a   : > { %4992 = sst [smem:[#allocation13_spill]] %s4991_s22  ;;  %s3778_s28 = smov [#allocation2]  }
  0x1b   : > { %p538_p10 = pnand %p3177_p7, %p537_p8  ;;  %s4993_s20 = sld [smem:[#allocation22_spill]] }
  0x1d   : > { %p3537_p11 = pneg %p538_p10 }
  0x1e   : > { %648 = sbr.rel (%p538_p10) target bundleno = 4295 (0x10c7), region = 104 }
  0x1f   : > { %p3538_p12 = pnand %p3545_p9, %p3537_p11 }
  0x21   : > { %s591_s24 = sshll.u32 %s4993_s20, 4  ;;  %s592_s24 = int_to_ptr.vmem [resolvable:$true] %s591_s24 }
  0x22   : > { %3540 = dma.vmem_to_smem (!%p3538_p12), %s592_s24, 16, %s3778_s28, [#allocation4]  }
  0x23   : > { %3755 = dma.done.wait (%p3545_p9), [#allocation4], 16  }
  0x24   : > { %3757 = vsyncadd (%p3545_p9), [#allocation4], 4294967280 }
  0x25   : > { %655 = sfence }
  0x26   : > { %s4994_s6 = sld [smem:[#allocation20_spill]]  ;;  %p731_p13 = scmp.lt.s32.totalorder %s3919_s3, 3  ;;  %v3779_v2 = vmov 1.0   ;;  %v774_v3 = vlaneseq  ;;  %v3780_v17 = vmov 0   ;;  %v3781_v20 = vmov 1  }
  0x27   : > { %1074 = vmatpush.msra.mxu0 %v3779_v2  ;;  %s4995_s4 = sld [smem:[#allocation14_spill]]  ;;  %3590 = vset.pattern.permute.xlu0 %v3780_v17  ;;  %vm1053_vm1 = vcmask 523264   ;;  %v3782_v23 = vmov 0.0   ;;  %vm1097_vm9 = vcmask 261120  }
  0x28   : > { %s3958_s1 = scalar_select %p731_p13, %s3919_s3, 3  ;;  %v3983_v9 = vshrl.u32 %v774_v3, 7  ;;  %3591 = vset.pattern.permute.xlu2 %v3780_v17  ;;  %3593 = vset.pattern.permute.xlu1 %v3781_v20  ;;  %v4074_v61 = vand.u32 127, %v774_v3 }
  0x29   : > { %1075 = vmatpush.msra.mxu0 %v3779_v2  ;;  %s4996_s22 = sld [smem:[#allocation19_spill]] }
  0x2a   : > { %s3487_s24 = sshll.u32 %s3958_s1, 5  ;;  %s4998_s30 = sld [smem:[#allocation16_spill]]  ;;  %v4019_v25 = vadd.s32 8, %v3983_v9  ;;  %v4035_v31 = vadd.s32 16, %v3983_v9  ;;  %v4046_v33 = vadd.s32 24, %v3983_v9 }
  0x2b   : > { %1076 = vmatpush.msra.mxu0 %v3779_v2  ;;  %s5000_s7 = sld [smem:[#allocation21_spill]] }
  0x2c   : > { %v3494_v0 = vld [vmem:[%s4994_s6 + $0x18] sm:$0xff]  ;;  %v3493_v1 = vld [vmem:[%s4994_s6 + $0x10] sm:$0xff]  ;;  %v3492_v4 = vld [vmem:[%s4994_s6 + $0x8] sm:$0xff]  ;;  %s3416_s2 = sld [smem:[#allocation2 + $0x2]] }
  0x2d   : > { %1319 = vmatpush.bf16.msra.mxu2 %v3494_v0  ;;  %s3966_s20 = scalar_lea.vmem %s4995_s4, %s3487_s24  ;;  %s4997_s24 = sld [smem:[#allocation17_spill]]  ;;  %1077 = vmatpush.msra.mxu0 %v3779_v2  ;;  %v3491_v14 = vld [vmem:[%s4994_s6] sm:$0xff] }
  0x2e   : > { %v758_v5 = vld [vmem:[%s3966_s20] sm:$0xff]  ;;  %v759_v6 = vld [vmem:[%s3966_s20 + $0x8] sm:$0xff]  ;;  %s3488_s4 = sshll.u32 %s3958_s1, 6  ;;  %v760_v15 = vld [vmem:[%s3966_s20 + $0x10] sm:$0xff]  ;;  %s1461_s6 = sld [smem:[#allocation2]] }
  0x2f   : > { %v762_v7 = vpack.c.bf16 %v758_v5, %v758_v5  ;;  %v763_v8 = vpack.c.bf16 %v759_v6, %v759_v6  ;;  %1078 = vmatpush.msra.mxu0 %v3779_v2  ;;  %v761_v16 = vld [vmem:[%s3966_s20 + $0x18] sm:$0xff]  ;;  %v764_v21 = vpack.c.bf16 %v760_v15, %v760_v15 }
  0x30   : > { %s3992_s23 = scalar_lea.vmem %s4998_s30, %s3488_s4  ;;  %v765_v22 = vpack.c.bf16 %v761_v16, %v761_v16 }
  0x31   : > { %1320 = vmatpush.bf16.msra.mxu2 %v3493_v1  ;;  %v1279_v11 = vunpack.c.l.b16 %v762_v7  ;;  %v1280_v12 = vunpack.c.l.b16 %v763_v8  ;;  %v3995_v13 = vld [vmem:[%s3992_s23 + $0x30] sm:$0xff]  ;;  %1079 = vmatpush.msra.mxu0 %v3779_v2  ;;  %v766_v18 = vld [vmem:[%s3992_s23] sm:$0xff]  ;;  %v4027_v26 = vld [vmem:[%s3992_s23 + $0x38] sm:$0xff]  ;;  %v1281_v27 = vunpack.c.l.b16 %v764_v21 }
  0x32   : > { %795 = vperm.xlu0 %3590, %v3995_v13   ;;  %777 = vperm.xlu2 %3591, %v766_v18   ;;  %v1282_v28 = vunpack.c.l.b16 %v765_v22  ;;  %v769_v35 = vld [vmem:[%s3992_s23 + $0x18] sm:$0xff]  ;;  %v767_v36 = vld [vmem:[%s3992_s23 + $0x8] sm:$0xff]  ;;  %v768_v45 = vld [vmem:[%s3992_s23 + $0x10] sm:$0xff] }
  0x33   : > { %s748_s0 = scalar_lea.vmem %s4997_s24, %s3958_s1  ;;  %v4009_v19 = vpack.c.b16 %v1280_v12, %v1279_v11  ;;  %1080 = vmatpush.msra.mxu0 %v3779_v2  ;;  %s4974_s24 = smov 64   ;;  %v770_v47 = vld [vmem:[%s3992_s23 + $0x20] sm:$0xff]  ;;  %v771_v56 = vld [vmem:[%s3992_s23 + $0x28] sm:$0xff] }
  0x34   : > { %v3625_v10 = vld [vmem:[%s748_s0] ss:$0 sm:$0xff]  ;;  %v1284_v29 = vpack.c.b16 %v1282_v28, %v1281_v27  ;;  %s4999_s23 = sld [smem:[#allocation15_spill]]  ;;  %s5013_s0 = smov 64  }
  0x35   : > { %1321 = vmatpush.bf16.msra.mxu2 %v3492_v4  ;;  %vm887_vm0 = vcmp.eq.s32.totalorder %v3983_v9, %v3625_v10  ;;  %1081 = vmatpush.msra.mxu0 %v3779_v2  ;;  %vm888_vm2 = vcmp.eq.s32.totalorder %v4019_v25, %v3625_v10  ;;  %vm889_vm3 = vcmp.eq.s32.totalorder %v4035_v31, %v3625_v10 }
  0x36   : > { %v4016_v24 = vsel %vm887_vm0, 1.0, %v3782_v23  ;;  %v4032_v30 = vsel %vm888_vm2, 1.0, %v3782_v23  ;;  %1354 = vrot.lane.b32.xlu1 %v1284_v29, %s4974_s24  ;;  %v4043_v32 = vsel %vm889_vm3, 1.0, %v3782_v23  ;;  %vm890_vm4 = vcmp.eq.s32.totalorder %v4046_v33, %v3625_v10 }
  0x37   : > { %3235 = vmatmul.msk.f32.vlgmr.msra.gmra.mxu0 %vm1053_vm1, %v4016_v24  ;;  %v4054_v34 = vsel %vm890_vm4, 1.0, %v3782_v23 }
  0x39   : > { %1322 = vmatpush.bf16.msra.mxu2 %v3491_v14 }
  0x3a   : > { %798 = vperm.xlu0 %3590, %v4027_v26   ;;  %780 = vperm.xlu2 %3591, %v767_v36   ;;  %s4147_s27 = scalar_lea.vmem %s4999_s23, %s3488_s4  ;;  %s3490_s4 = sshll.u32 %s3958_s1, 7 }
  0x3b   : > { %s5015_s23 = scalar_lea.vmem %s4996_s22, %s3958_s1 }
  0x3c   : > { %3259 = vmatmul.msk.bf16.vlgmr.msra.gmra.mxu2 %vm1053_vm1, %v4009_v19 }
  0x3e   : > { %832 = vperm.xlu1 %3593, %v767_v36  }
  0x3f   : > { %3236 = vmatmul.msk.f32.gmra.mxu0 %vm1053_vm1, %v4032_v30 }
  0x42   : > { %3592 = vset.pattern.permute.xlu0 %v3781_v20 }
  0x43   : > { %829 = vperm.xlu0 %3592, %v766_v18  }
  0x47   : > { %3237 = vmatmul.msk.f32.gmra.mxu0 %vm1053_vm1, %v4043_v32 }
  0x4b   : > { %3594 = vset.pattern.permute.xlu0 %v3780_v17 }
  0x4c   : > { %3260 = vmatmul.msk.bf16.gmra.mxu2 %vm1053_vm1, %v1284_v29  ;;  %786 = vperm.xlu0 %3594, %v769_v35  }
  0x4f   : > { %3238 = vmatmul.msk.f32.gmra.mxu0 %vm1053_vm1, %v4054_v34 }
  0x54   : > { %3598 = vset.pattern.permute.xlu0 %v3781_v20 }
  0x55   : > { %841 = vperm.xlu0 %3598, %v770_v47  }
  0x5d   : > { %3602 = vset.pattern.permute.xlu0 %v3780_v17 }
  0x8c   : > { %v778_v60 = vpop.permute.xlu2 %777 }
  0x8d   : > { %vm800_vm7 = vcmp.eq.s32.totalorder %v778_v60, %v4074_v61  ;;  %v3497_v60 = vld [vmem:[%s4955_s10 + $0x8] sm:$0xff] }
  0x8e   : > { %v3191_v5 = vsel %vm800_vm7, 1.0, %v3782_v23  ;;  %vm1419_vm7 = vcmask 130048  }
  0x94   : > { %v781_v6 = vpop.permute.xlu2 %780 }
  0x95   : > { %vm801_vm8 = vcmp.eq.s32.totalorder %v781_v6, %v4074_v61 }
  0x96   : > { %v3192_v7 = vsel %vm801_vm8, 1.0, %v3782_v23 }
  0x97   : > { %v824_v10 = vpack.c.bf16 %v3192_v7, %v3191_v5 }
  0xa4   : > { %v796_v58 = vpop.permute.xlu0 %795 }
  0xa5   : > { %vm806_vm5 = vcmp.eq.s32.totalorder %v796_v58, %v4074_v61  ;;  %v1396_v58 = vld [vmem:[%s4147_s27 + $0x8] sm:$0xff] }
  0xa6   : > { %v3197_v3 = vsel %vm806_vm5, 1.0, %v3782_v23 }
  0xa8   : > { %v1355_v11 = vpop.permute.xlu1 %1354 }
  0xac   : > { %v799_v63 = vpop.permute.xlu0 %798 }
  0xad   : > { %vm807_vm6 = vcmp.eq.s32.totalorder %v799_v63, %v4074_v61 }
  0xae   : > { %v3198_v4 = vsel %vm807_vm6, 1.0, %v3782_v23 }
  0xaf   : > { %v4087_v8 = vpack.c.bf16 %v3198_v4, %v3197_v3  ;;  %v1398_v3 = vld [vmem:[%s4147_s27 + $0x18] sm:$0xff] }
  0xb0   : > { %v833_v14 = vpop.permute.xlu1 %832 }
  0xb1   : > { %vm853_vm11 = vcmp.eq.s32.totalorder %v833_v14, %v4074_v61  ;;  %v1523_v14 = vstv %s1461_s6  ;;  %s5014_s6 = sld [smem:[#allocation18_spill]] }
  0xb2   : > { %v3200_v15 = vsel %vm853_vm11, 1.0, %v3782_v23 }
  0xb4   : > { %v1083_v55 = vpop.f32.mrf.mxu0 }
  0xb5   : > { %v830_v12 = vpop.permute.xlu0 %829 }
  0xb6   : > { %vm852_vm10 = vcmp.eq.s32.totalorder %v830_v12, %v4074_v61  ;;  %v1399_v12 = vld [vmem:[%s4147_s27 + $0x20] sm:$0xff] }
  0xbc   : > { %v1086_v57 = vpop.f32.mrf.mxu0 }
  0xbd   : > { %v1095_v1 = vpack.c.bf16 %v1086_v57, %v1083_v55  ;;  %v3495_v55 = vld [vmem:[%s4953_s8] sm:$0xff] }
  0xbe   : > { %1439 = vmatpush.bf16.msrb.mxu0 %v3495_v55  ;;  %v1395_v57 = vld [vmem:[%s4147_s27] sm:$0xff] }
  0xbf   : > { %v1324_v37 = vpop.f32.mrf.mxu2 }
  0xc0   : > { %v1334_v38 = vpack.c.bf16 %v1324_v37, %v1324_v37 }
  0xc2   : > { %v1342_v41 = vunpack.c.l.b16 %v1334_v38 }
  0xc4   : > { %v1089_v59 = vpop.f32.mrf.mxu0 }
  0xc7   : > { %v1326_v39 = vpop.f32.mrf.mxu2 }
  0xc8   : > { %v1335_v40 = vpack.c.bf16 %v1326_v39, %v1326_v39  ;;  %v1393_v53 = vpack.c.bf16 %v1326_v39, %v1324_v37 }
  0xca   : > { %v1343_v42 = vunpack.c.l.b16 %v1335_v40 }
  0xcc   : > { %v1346_v43 = vpack.c.b16 %v1343_v42, %v1342_v41  ;;  %v1092_v62 = vpop.f32.mrf.mxu0 }
  0xcd   : > { %v1096_v0 = vpack.c.bf16 %v1092_v62, %v1089_v59  ;;  %v1403_v59 = vpack.c.bf16 %v1396_v58, %v1395_v57  ;;  %v3496_v62 = vld [vmem:[%s4955_s10] sm:$0xff] }
  0xce   : > { %1348 = vrot.lane.b32.xlu2 %v1346_v43, %s4974_s24 }
  0xcf   : > { %v1329_v44 = vpop.f32.mrf.mxu2  ;;  %1116 = vmatpush.bf16.msra.mxu1 %v1096_v0  ;;  %3529 = vmatpush.bf16.msra.mxu3 %v1096_v0 }
  0xd0   : > { %v1336_v46 = vpack.c.bf16 %v1329_v44, %v1329_v44  ;;  %3269 = vmatmul.msk.bf16.vlgmr.msrb.gmra.mxu0 %vm1419_vm7, %v1403_v59 }
  0xd2   : > { %v1344_v51 = vunpack.c.l.b16 %v1336_v46 }
  0xd3   : > { %1117 = vmatpush.bf16.msra.mxu1 %v1095_v1  ;;  %3530 = vmatpush.bf16.msra.mxu3 %v1095_v1  ;;  %v1397_v1 = vld [vmem:[%s4147_s27 + $0x10] sm:$0xff] }
  0xd4   : > { %v1404_v5 = vpack.c.bf16 %v1398_v3, %v1397_v1 }
  0xd6   : > { %783 = vperm.xlu2 %3591, %v768_v45   ;;  %3239 = vmatmul.msk.bf16.vlgmr.msra.gmra.mxu1 %vm1097_vm9, %v824_v10 }
  0xd7   : > { %v1331_v48 = vpop.f32.mrf.mxu2  ;;  %3242 = vmatmul.msk.bf16.vlgmr.msra.gmra.mxu3 %vm1097_vm9, %v4087_v8 }
  0xd8   : > { %v1337_v49 = vpack.c.bf16 %v1331_v48, %v1331_v48  ;;  %v1394_v50 = vpack.c.bf16 %v1331_v48, %v1329_v44 }
  0xda   : > { %v1345_v52 = vunpack.c.l.b16 %v1337_v49  ;;  %1480 = vmatpush.bf16.msrb.mxu2 %v1394_v50 }
  0xdc   : > { %v1347_v54 = vpack.c.b16 %v1345_v52, %v1344_v51 }
  0xde   : > { %1481 = vmatpush.bf16.msrb.mxu2 %v1393_v53  ;;  %1350 = vrot.lane.b32.xlu1 %v1347_v54, %s4974_s24  ;;  %v3499_v54 = vld [vmem:[%s4955_s10 + $0x18] sm:$0xff] }
  0xdf   : > { %3595 = vset.pattern.permute.xlu2 %v3781_v20  ;;  %1596 = vmatpush.bf16.msrb.mxu1 %v3499_v54 }
  0xe0   : > { %838 = vperm.xlu2 %3595, %v769_v35   ;;  %3270 = vmatmul.msk.bf16.gmra.mxu0 %vm1419_vm7, %v1404_v5 }
  0xe6   : > { %1352 = vrot.lane.b32.xlu1 %v4009_v19, %s4974_s24  ;;  %v787_v19 = vpop.permute.xlu0 %786  ;;  %s4439_s24 = scalar_lea.vmem %s5014_s6, %s3490_s4 }
  0xe7   : > { %vm803_vm12 = vcmp.eq.s32.totalorder %v787_v19, %v4074_v61 }
  0xe8   : > { %3597 = vset.pattern.permute.xlu2 %v3780_v17 }
  0xe9   : > { %792 = vperm.xlu2 %3597, %v771_v56  }
  0xee   : > { %835 = vperm.xlu1 %3593, %v768_v45   ;;  %v842_v45 = vpop.permute.xlu0 %841 }
  0xef   : > { %vm856_vm3 = vcmp.eq.s32.totalorder %v842_v45, %v4074_v61 }
  0xf0   : > { %v3203_v46 = vsel %vm856_vm3, 1.0, %v3782_v23 }
  0xf1   : > { %3600 = vset.pattern.permute.xlu2 %v3781_v20 }
  0xf2   : > { %847 = vperm.xlu2 %3600, %v3995_v13   ;;  %v3199_v13 = vsel %vm852_vm10, 1.0, %v3782_v23 }
  0xf3   : > { %v876_v16 = vpack.c.bf16 %v3200_v15, %v3199_v13  ;;  %v1400_v13 = vld [vmem:[%s4147_s27 + $0x28] sm:$0xff] }
  0xf5   : > { %3273 = vmatmul.msk.bf16.vlgmr.msrb.gmra.mxu2 %vm1097_vm9, %v876_v16 }
  0xf6   : > { %3596 = vset.pattern.permute.xlu1 %v3780_v17 }
  0xf7   : > { %789 = vperm.xlu1 %3596, %v770_v47  }
  0xfa   : > { %3601 = vset.pattern.permute.xlu2 %v3780_v17 }
  0xff   : > { %3599 = vset.pattern.permute.xlu1 %v3781_v20 }
 0x100   : > { %844 = vperm.xlu1 %3599, %v771_v56   ;;  %v3498_v56 = vld [vmem:[%s4955_s10 + $0x10] sm:$0xff] }
 0x101   : > { %1597 = vmatpush.bf16.msrb.mxu1 %v3498_v56 }
 0x105   : > { %1598 = vmatpush.bf16.msrb.mxu1 %v3497_v60 }
 0x108   : > { %850 = vperm.xlu1 %3599, %v4027_v26  }
 0x109   : > { %1599 = vmatpush.bf16.msrb.mxu1 %v3496_v62 }
 0x110   : > { %3603 = vset.pattern.permute.xlu1 %v3780_v17  ;;  %v3194_v17 = vsel %vm803_vm12, 1.0, %v3782_v23 }
 0x128   : > { %v1349_v18 = vpop.permute.xlu2 %1348 }
 0x130   : > { %v784_v20 = vpop.permute.xlu2 %783 }
 0x131   : > { %vm802_vm13 = vcmp.eq.s32.totalorder %v784_v20, %v4074_v61 }
 0x132   : > { %v3193_v21 = vsel %vm802_vm13, 1.0, %v3782_v23 }
 0x133   : > { %v825_v22 = vpack.c.bf16 %v3194_v17, %v3193_v21 }
 0x135   : > { %3240 = vmatmul.msk.bf16.gmra.mxu1 %vm1097_vm9, %v825_v22 }
 0x13a   : > { %v839_v35 = vpop.permute.xlu2 %838 }
 0x13b   : > { %vm855_vm14 = vcmp.eq.s32.totalorder %v839_v35, %v4074_v61 }
 0x13c   : > { %v3202_v36 = vsel %vm855_vm14, 1.0, %v3782_v23 }
 0x143   : > { %v793_v40 = vpop.permute.xlu2 %792 }
 0x144   : > { %vm805_vm0 = vcmp.eq.s32.totalorder %v793_v40, %v4074_v61 }
 0x145   : > { %v3196_v41 = vsel %vm805_vm0, 1.0, %v3782_v23 }
 0x150   : > { %v1351_v26 = vpop.permute.xlu1 %1350 }
 0x151   : > { %v1362_v27 = vsel %vm1053_vm1, %v1351_v26, %v1355_v11 }
 0x152   : > { %1370 = vmatpush.bf16.msrb.mxu3 %v1362_v27 }
 0x158   : > { %v1353_v28 = vpop.permute.xlu1 %1352 }
 0x159   : > { %v1358_v29 = vsel %vm1053_vm1, %v1349_v18, %v1353_v28  ;;  %v1405_v18 = vpack.c.bf16 %v1400_v13, %v1399_v12 }
 0x15a   : > { %1371 = vmatpush.bf16.msrb.mxu3 %v1358_v29  ;;  %v4164_v63 = vpop.f32.mrf.mxu3 }
 0x15b   : > { %3271 = vmatmul.msk.bf16.gmra.mxu0 %vm1419_vm7, %v1405_v18 }
 0x15d   : > { %3261 = vmatmul.msk.bf16.vlgmr.msrb.gmra.mxu3 %vm1097_vm9, %v824_v10  ;;  %v3626_v10 = vld [vmem:[%s5000_s7] ss:$0 sm:$0xff] }
 0x15e   : > { %1661 = vmatpush.msra.mxu3 %v3779_v2 }
 0x160   : > { %1662 = vmatpush.msra.mxu3 %v3779_v2  ;;  %v836_v37 = vpop.permute.xlu1 %835 }
 0x161   : > { %vm854_vm15 = vcmp.eq.s32.totalorder %v836_v37, %v4074_v61  ;;  %v1401_v37 = vld [vmem:[%s4147_s27 + $0x30] sm:$0xff] }
 0x162   : > { %1663 = vmatpush.msra.mxu3 %v3779_v2  ;;  %v3201_v38 = vsel %vm854_vm15, 1.0, %v3782_v23  ;;  %v4168_v4 = vpop.f32.mrf.mxu3 }
 0x163   : > { %v877_v39 = vpack.c.bf16 %v3202_v36, %v3201_v38  ;;  %v1402_v38 = vld [vmem:[%s4147_s27 + $0x38] sm:$0xff]  ;;  %s728_s27 = sand.u32 1, %s3768_s25  }
 0x164   : > { %1664 = vmatpush.msra.mxu3 %v3779_v2  ;;  %v1406_v40 = vpack.c.bf16 %v1402_v38, %v1401_v37  ;;  %s3182_s28 = sshll.u32 %s728_s27, 5  ;;  %s3033_s30 = scalar_lea.sflag [#allocation3], %s728_s27 }
 0x165   : > { %3274 = vmatmul.msk.bf16.gmra.mxu2 %vm1097_vm9, %v877_v39  ;;  %s730_s4 = scalar_lea.vmem [#allocation5], %s3182_s28  ;;  %s3730_s28 = scalar_lea.hbm %s4966_s21, 128 }
 0x166   : > { %1665 = vmatpush.msra.mxu3 %v3779_v2 }
 0x168   : > { %1666 = vmatpush.msra.mxu3 %v3779_v2 }
 0x169   : > { %v790_v42 = vpop.permute.xlu1 %789 }
 0x16a   : > { %1667 = vmatpush.msra.mxu3 %v3779_v2  ;;  %vm804_vm2 = vcmp.eq.s32.totalorder %v790_v42, %v4074_v61 }
 0x16b   : > { %v3195_v43 = vsel %vm804_vm2, 1.0, %v3782_v23  ;;  %3272 = vmatmul.msk.bf16.gmra.mxu0 %vm1419_vm7, %v1406_v40 }
 0x16c   : > { %1668 = vmatpush.msra.mxu3 %v3779_v2  ;;  %v826_v44 = vpack.c.bf16 %v3196_v41, %v3195_v43  ;;  %v848_v2 = vpop.permute.xlu2 %847 }
 0x16d   : > { %3262 = vmatmul.msk.bf16.gmra.mxu3 %vm1097_vm9, %v825_v22  ;;  %vm858_vm5 = vcmp.eq.s32.totalorder %v848_v2, %v4074_v61 }
 0x16e   : > { %3241 = vmatmul.msk.bf16.gmra.mxu1 %vm1097_vm9, %v826_v44  ;;  %v3205_v51 = vsel %vm858_vm5, 1.0, %v3782_v23 }
 0x172   : > { %v845_v47 = vpop.permute.xlu1 %844 }
 0x173   : > { %vm857_vm4 = vcmp.eq.s32.totalorder %v845_v47, %v4074_v61 }
 0x174   : > { %v3204_v48 = vsel %vm857_vm4, 1.0, %v3782_v23 }
 0x175   : > { %v878_v49 = vpack.c.bf16 %v3204_v48, %v3203_v46 }
 0x177   : > { %3275 = vmatmul.msk.bf16.gmra.mxu2 %vm1097_vm9, %v878_v49 }
 0x178   : > { %v1483_v0 = vpop.f32.mrf.mxu2 }
 0x17a   : > { %v851_v50 = vpop.permute.xlu1 %850 }
 0x17b   : > { %vm859_vm6 = vcmp.eq.s32.totalorder %v851_v50, %v4074_v61 }
 0x17c   : > { %v3206_v52 = vsel %vm859_vm6, 1.0, %v3782_v23 }
 0x17d   : > { %3263 = vmatmul.msk.bf16.gmra.mxu3 %vm1097_vm9, %v826_v44  ;;  %v879_v53 = vpack.c.bf16 %v3206_v52, %v3205_v51 }
 0x180   : > { %v1485_v6 = vpop.f32.mrf.mxu2 }
 0x187   : > { %3276 = vmatmul.msk.bf16.gmra.mxu2 %vm1097_vm9, %v879_v53 }
 0x18d   : > { %3264 = vmatmul.msk.bf16.gmra.mxu3 %vm1097_vm9, %v4087_v8 }
 0x1e0   : > { %v4171_v7 = vpop.f32.mrf.mxu3 }
 0x1e1   : > { %v1484_v8 = vadd.f32 %v1483_v0, %v4171_v7 }
 0x1e3   : > { %v1507_v11 = vadd.f32 %v3626_v10, %v1484_v8 }
 0x1e5   : > { %v1524_v17 = vmul.f32 %v1523_v14, %v1507_v11  ;;  %vm1515_vm8 = vcmp.ge.f32.partialorder %v1507_v11, 0.0 }
 0x1e7   : > { %v1532_v22 = vsel %vm1515_vm8, %v1507_v11, %v1524_v17 }
 0x1e8   : > { %v4179_v15 = vpop.f32.mrf.mxu3  ;;  %v1488_v16 = vpop.f32.mrf.mxu2 }
 0x1e9   : > { %v1486_v19 = vadd.f32 %v1485_v6, %v4179_v15 }
 0x1eb   : > { %v1508_v20 = vadd.f32 %v3626_v10, %v1486_v19  ;;  %v1119_v19 = vpop.f32.mrf.mxu1 }
 0x1ed   : > { %vm1516_vm9 = vcmp.ge.f32.partialorder %v1508_v20, 0.0  ;;  %v1525_v21 = vmul.f32 %v1523_v14, %v1508_v20 }
 0x1ef   : > { %v1533_v26 = vsel %vm1516_vm9, %v1508_v20, %v1525_v21 }
 0x1f0   : > { %v4183_v27 = vpop.f32.mrf.mxu3  ;;  %v1540_v28 = vpack.c.bf16 %v1533_v26, %v1532_v22  ;;  %v1490_v29 = vpop.f32.mrf.mxu2 }
 0x1f1   : > { %v1489_v35 = vadd.f32 %v1488_v16, %v4183_v27  ;;  %v1441_v26 = vpop.f32.mrf.mxu0 }
 0x1f2   : > { %3293 = vmatmul.msk.bf16.vlgmr.msrb.gmra.mxu1 %vm1053_vm1, %v1540_v28 }
 0x1f3   : > { %v1509_v36 = vadd.f32 %v3626_v10, %v1489_v35  ;;  %v4208_v17 = vpop.f32.mrf.mxu1 }
 0x1f5   : > { %v1526_v43 = vmul.f32 %v1523_v14, %v1509_v36  ;;  %vm1517_vm10 = vcmp.ge.f32.partialorder %v1509_v36, 0.0 }
 0x1f7   : > { %v1534_v46 = vsel %vm1517_vm10, %v1509_v36, %v1526_v43 }
 0x1f8   : > { %v4189_v39 = vpop.f32.mrf.mxu3 }
 0x1f9   : > { %v1491_v41 = vadd.f32 %v1490_v29, %v4189_v39  ;;  %v3628_v29 = vld [vmem:[%s4956_s11] ss:$0 sm:$0xff] }
 0x1fa   : > { %v1493_v42 = vpop.f32.mrf.mxu2 }
 0x1fb   : > { %v1510_v44 = vadd.f32 %v3626_v10, %v1491_v41  ;;  %v1124_v20 = vpop.f32.mrf.mxu1 }
 0x1fd   : > { %vm1518_vm11 = vcmp.ge.f32.partialorder %v1510_v44, 0.0  ;;  %v1527_v45 = vmul.f32 %v1523_v14, %v1510_v44 }
 0x1ff   : > { %v1535_v47 = vsel %vm1518_vm11, %v1510_v44, %v1527_v45 }
 0x200   : > { %v4193_v48 = vpop.f32.mrf.mxu3  ;;  %v1541_v49 = vpack.c.bf16 %v1535_v47, %v1534_v46 }
 0x201   : > { %v1494_v2 = vadd.f32 %v1493_v42, %v4193_v48 }
 0x202   : > { %3294 = vmatmul.msk.bf16.gmra.mxu1 %vm1053_vm1, %v1541_v49  ;;  %v1495_v50 = vpop.f32.mrf.mxu2 }
 0x203   : > { %v1511_v51 = vadd.f32 %v3626_v10, %v1494_v2  ;;  %v4210_v21 = vpop.f32.mrf.mxu1 }
 0x205   : > { %v1528_v54 = vmul.f32 %v1523_v14, %v1511_v51  ;;  %vm1519_vm12 = vcmp.ge.f32.partialorder %v1511_v51, 0.0 }
 0x207   : > { %v1536_v58 = vsel %vm1519_vm12, %v1511_v51, %v1528_v54 }
 0x208   : > { %v4197_v52 = vpop.f32.mrf.mxu3 }
 0x209   : > { %v1496_v53 = vadd.f32 %v1495_v50, %v4197_v52 }
 0x20a   : > { %v1498_v57 = vpop.f32.mrf.mxu2 }
 0x20b   : > { %v1512_v55 = vadd.f32 %v3626_v10, %v1496_v53  ;;  %v4212_v22 = vpop.f32.mrf.mxu1 }
 0x20d   : > { %vm1520_vm13 = vcmp.ge.f32.partialorder %v1512_v55, 0.0  ;;  %v1529_v56 = vmul.f32 %v1523_v14, %v1512_v55 }
 0x20f   : > { %v1537_v59 = vsel %vm1520_vm13, %v1512_v55, %v1529_v56 }
 0x210   : > { %v4200_v60 = vpop.f32.mrf.mxu3  ;;  %v1542_v62 = vpack.c.bf16 %v1537_v59, %v1536_v58 }
 0x211   : > { %v1499_v0 = vadd.f32 %v1498_v57, %v4200_v60 }
 0x212   : > { %3295 = vmatmul.msk.bf16.gmra.mxu1 %vm1053_vm1, %v1542_v62  ;;  %v1500_v3 = vpop.f32.mrf.mxu2 }
 0x213   : > { %v1513_v1 = vadd.f32 %v3626_v10, %v1499_v0  ;;  %v4214_v28 = vpop.f32.mrf.mxu1 }
 0x215   : > { %v1530_v8 = vmul.f32 %v1523_v14, %v1513_v1  ;;  %vm1521_vm14 = vcmp.ge.f32.partialorder %v1513_v1, 0.0 }
 0x217   : > { %v1538_v13 = vsel %vm1521_vm14, %v1513_v1, %v1530_v8 }
 0x218   : > { %v4204_v5 = vpop.f32.mrf.mxu3 }
 0x219   : > { %v1501_v6 = vadd.f32 %v1500_v3, %v4204_v5 }
 0x21b   : > { %v1514_v11 = vadd.f32 %v3626_v10, %v1501_v6  ;;  %v1443_v10 = vpop.f32.mrf.mxu0 }
 0x21d   : > { %vm1522_vm15 = vcmp.ge.f32.partialorder %v1514_v11, 0.0  ;;  %v1531_v12 = vmul.f32 %v1523_v14, %v1514_v11  ;;  %v3627_v14 = vld [vmem:[%s4954_s9] ss:$0 sm:$0xff] }
 0x21e   : > { %v1442_v35 = vadd.f32 %v3627_v14, %v1441_v26  ;;  %v1444_v42 = vadd.f32 %v3627_v14, %v1443_v10 }
 0x21f   : > { %v1539_v16 = vsel %vm1522_vm15, %v1514_v11, %v1531_v12 }
 0x220   : > { %v1543_v18 = vpack.c.bf16 %v1539_v16, %v1538_v13 }
 0x222   : > { %3296 = vmatmul.msk.bf16.gmra.mxu1 %vm1053_vm1, %v1543_v18 }
 0x223   : > { %v1446_v40 = vpop.f32.mrf.mxu0 }
 0x224   : > { %v1447_v46 = vadd.f32 %v3627_v14, %v1446_v40 }
 0x22b   : > { %v1448_v45 = vpop.f32.mrf.mxu0 }
 0x22c   : > { %v1449_v53 = vadd.f32 %v3627_v14, %v1448_v45 }
 0x233   : > { %v1451_v50 = vpop.f32.mrf.mxu0 }
 0x234   : > { %v1452_v56 = vadd.f32 %v3627_v14, %v1451_v50 }
 0x23b   : > { %v1453_v59 = vpop.f32.mrf.mxu0 }
 0x23c   : > { %v1454_v1 = vadd.f32 %v3627_v14, %v1453_v59  ;;  %v4241_v59 = vmax.f32 %v4210_v21, 1.0 }
 0x243   : > { %v1456_v8 = vpop.f32.mrf.mxu0 }
 0x244   : > { %v1457_v11 = vadd.f32 %v3627_v14, %v1456_v8 }
 0x24b   : > { %v1458_v18 = vpop.f32.mrf.mxu0 }
 0x24c   : > { %v1459_v10 = vadd.f32 %v3627_v14, %v1458_v18  ;;  %v1140_v14 = vmax.f32 %v4208_v17, 1.0  ;;  %v4258_v18 = vmax.f32 %v4168_v4, 1.0 }
 0x24e   : > { %vm1167_vm9 = vweird.f32 %v1140_v14 }
 0x26f   : > { %v1601_v36 = vpop.f32.mrf.mxu1 }
 0x270   : > { %v1602_v37 = vadd.f32 %v3628_v29, %v1601_v36 }
 0x272   : > { %v1621_v38 = vmul.f32 %v1602_v37, %v1442_v35  ;;  %v1139_v37 = vmax.f32 %v1119_v19, 1.0  ;;  %v4232_v19 = vmax.f32 %v4212_v22, 1.0 }
 0x274   : > { %3297 = vmatmul.msk.f32.vlgmr.msra.gmra.mxu3 %vm1053_vm1, %v1621_v38  ;;  %3633 = vrcp.f32 %v1139_v37  ;;  %vm1152_vm0 = vweird.f32 %v1139_v37  ;;  %vm1212_vm13 = vweird.f32 %v4232_v19 }
 0x277   : > { %v1603_v41 = vpop.f32.mrf.mxu1 }
 0x278   : > { %v1604_v43 = vadd.f32 %v3628_v29, %v1603_v41 }
 0x27a   : > { %v1622_v44 = vmul.f32 %v1604_v43, %v1444_v42  ;;  %v3634_v38 = vpop.eup %3633  ;;  %v1141_v42 = vmax.f32 %v1124_v20, 1.0 }
 0x27b   : > { %v1148_v40 = vmul.f32 %v3634_v38, %v1139_v37  ;;  %vm1153_vm2 = vweird.f32 %v3634_v38 }
 0x27c   : > { %3298 = vmatmul.msk.f32.gmra.mxu3 %vm1053_vm1, %v1622_v44  ;;  %3635 = vrcp.f32 %v1141_v42  ;;  %v1158_v44 = vand.u32 2147483648, %v1139_v37  ;;  %vm1154_vm3 = vmor %vm1152_vm0, %vm1153_vm2  ;;  %vm1182_vm5 = vweird.f32 %v1141_v42 }
 0x27d   : > { %v1149_v41 = vsub.f32 1.0, %v1148_v40  ;;  %3637 = vrcp.f32 %v1140_v14 }
 0x27e   : > { %3639 = vrcp.f32 %v4232_v19 }
 0x27f   : > { %v1606_v47 = vpop.f32.mrf.mxu1  ;;  %v1150_v43 = vmul.f32 %v3634_v38, %v1149_v41 }
 0x280   : > { %v1607_v49 = vadd.f32 %v3628_v29, %v1606_v47 }
 0x281   : > { %v1151_v45 = vadd.f32 %v3634_v38, %v1150_v43 }
 0x282   : > { %v1623_v2 = vmul.f32 %v1607_v49, %v1447_v46  ;;  %v1156_v46 = vand.u32 2147483647, %v1139_v37  ;;  %v3636_v49 = vpop.eup %3635 }
 0x283   : > { %v1155_v47 = vsel %vm1154_vm3, %v3634_v38, %v1151_v45  ;;  %vm1183_vm6 = vweird.f32 %v3636_v49  ;;  %vm1197_vm3 = vweird.f32 %v4241_v59 }
 0x284   : > { %3299 = vmatmul.msk.f32.gmra.mxu3 %vm1053_vm1, %v1623_v2  ;;  %vm1157_vm4 = vcmp.eq.f32.partialorder %v1156_v46, 8.507059e+37  ;;  %vm4245_vm7 = vmor %vm1182_vm5, %vm1183_vm6 }
 0x287   : > { %v1608_v51 = vpop.f32.mrf.mxu1 }
 0x288   : > { %v1609_v54 = vadd.f32 %v3628_v29, %v1608_v51  ;;  %v1178_v51 = vmul.f32 %v3636_v49, %v1141_v42 }
 0x28a   : > { %v1624_v55 = vmul.f32 %v1609_v54, %v1449_v53  ;;  %v3638_v53 = vpop.eup %3637  ;;  %v1179_v54 = vsub.f32 1.0, %v1178_v51 }
 0x28b   : > { %v1163_v17 = vmul.f32 %v3638_v53, %v1140_v14  ;;  %vm1168_vm10 = vweird.f32 %v3638_v53 }
 0x28c   : > { %3300 = vmatmul.msk.f32.gmra.mxu3 %vm1053_vm1, %v1624_v55  ;;  %v4238_v55 = vmax.f32 %v4214_v28, 1.0  ;;  %vm4263_vm11 = vmor %vm1167_vm9, %vm1168_vm10 }
 0x28d   : > { %v1164_v22 = vsub.f32 1.0, %v1163_v17 }
 0x28e   : > { %3641 = vrcp.f32 %v4238_v55  ;;  %vm1227_vm5 = vweird.f32 %v4238_v55 }
 0x28f   : > { %v1611_v57 = vpop.f32.mrf.mxu1  ;;  %3643 = vrcp.f32 %v4241_v59  ;;  %v1165_v21 = vmul.f32 %v3638_v53, %v1164_v22 }
 0x290   : > { %v1612_v58 = vadd.f32 %v3628_v29, %v1611_v57  ;;  %v1180_v57 = vmul.f32 %v3636_v49, %v1179_v54 }
 0x292   : > { %v1625_v62 = vmul.f32 %v1612_v58, %v1452_v56  ;;  %v3640_v58 = vpop.eup %3639 }
 0x293   : > { %vm1213_vm14 = vweird.f32 %v3640_v58 }
 0x294   : > { %3301 = vmatmul.msk.f32.gmra.mxu3 %vm1053_vm1, %v1625_v62  ;;  %v1188_v62 = vand.u32 2147483648, %v1141_v42  ;;  %vm1214_vm15 = vmor %vm1212_vm13, %vm1213_vm14  ;;  %vm1257_vm14 = vweird.f32 %v4258_v18 }
 0x296   : > { %v1189_v8 = vor.u32 1.1754944e-38, %v1188_v62 }
 0x297   : > { %v1613_v0 = vpop.f32.mrf.mxu1 }
 0x298   : > { %v1614_v3 = vadd.f32 %v3628_v29, %v1613_v0  ;;  %v1181_v0 = vadd.f32 %v3636_v49, %v1180_v57 }
 0x29a   : > { %v1626_v6 = vmul.f32 %v1614_v3, %v1454_v1  ;;  %v1186_v1 = vand.u32 2147483647, %v1141_v42  ;;  %v1208_v3 = vmul.f32 %v3640_v58, %v4232_v19 }
 0x29c   : > { %3302 = vmatmul.msk.f32.gmra.mxu3 %vm1053_vm1, %v1626_v6  ;;  %v4251_v6 = vmax.f32 %v4164_v63, 1.0  ;;  %vm1187_vm8 = vcmp.eq.f32.partialorder %v1186_v1, 8.507059e+37  ;;  %v1166_v63 = vadd.f32 %v3638_v53, %v1165_v21 }
 0x29e   : > { %3645 = vrcp.f32 %v4251_v6  ;;  %v1170_v42 = vsel %vm4263_vm11, %v3638_v53, %v1166_v63  ;;  %v1201_v63 = vand.u32 2147483647, %v4241_v59  ;;  %vm1242_vm9 = vweird.f32 %v4251_v6 }
 0x29f   : > { %v1616_v12 = vpop.f32.mrf.mxu1  ;;  %3647 = vrcp.f32 %v4258_v18 }
 0x2a0   : > { %v1617_v13 = vadd.f32 %v3628_v29, %v1616_v12  ;;  %v1185_v12 = vsel %vm4245_vm7, %v3636_v49, %v1181_v0  ;;  %vm1202_vm11 = vcmp.eq.f32.partialorder %v1201_v63, 8.507059e+37 }
 0x2a2   : > { %v1627_v16 = vmul.f32 %v1617_v13, %v1457_v11  ;;  %v1209_v13 = vsub.f32 1.0, %v1208_v3 }
 0x2a4   : > { %3303 = vmatmul.msk.f32.gmra.mxu3 %vm1053_vm1, %v1627_v16  ;;  %v4255_v16 = vpop.eup %3641  ;;  %v1210_v40 = vmul.f32 %v3640_v58, %v1209_v13  ;;  %v1231_v13 = vand.u32 2147483647, %v4238_v55 }
 0x2a5   : > { %v1223_v41 = vmul.f32 %v4255_v16, %v4238_v55  ;;  %vm1228_vm2 = vweird.f32 %v4255_v16 }
 0x2a6   : > { %v1211_v46 = vadd.f32 %v3640_v58, %v1210_v40  ;;  %vm1229_vm6 = vmor %vm1227_vm5, %vm1228_vm2 }
 0x2a7   : > { %v1618_v26 = vpop.f32.mrf.mxu1 }
 0x2a8   : > { %v1619_v35 = vadd.f32 %v3628_v29, %v1618_v26  ;;  %v1159_v29 = vor.u32 1.1754944e-38, %v1158_v44  ;;  %v1173_v26 = vand.u32 2147483648, %v1140_v14  ;;  %v1215_v54 = vsel %vm1214_vm15, %v3640_v58, %v1211_v46 }
 0x2a9   : > { %v1233_v58 = vand.u32 2147483648, %v4238_v55  ;;  %v1246_v46 = vand.u32 2147483647, %v4251_v6 }
 0x2aa   : > { %v1628_v36 = vmul.f32 %v1619_v35, %v1459_v10  ;;  %v1160_v2 = vsel %vm1157_vm4, %v1159_v29, %v1155_v47  ;;  %v1171_v10 = vand.u32 2147483647, %v1140_v14  ;;  %v1190_v35 = vsel %vm1187_vm8, %v1189_v8, %v1185_v12 }
 0x2ab   : > { %v1174_v4 = vor.u32 1.1754944e-38, %v1173_v26  ;;  %v1224_v14 = vsub.f32 1.0, %v1223_v41  ;;  %v1218_v47 = vand.u32 2147483648, %v4232_v19  ;;  %v1234_v40 = vor.u32 1.1754944e-38, %v1233_v58 }
 0x2ac   : > { %3304 = vmatmul.msk.f32.gmra.mxu3 %vm1053_vm1, %v1628_v36  ;;  %v4261_v36 = vpop.eup %3643  ;;  %vm1172_vm12 = vcmp.eq.f32.partialorder %v1171_v10, 8.507059e+37  ;;  %vm1232_vm8 = vcmp.eq.f32.partialorder %v1231_v13, 8.507059e+37  ;;  %vm1247_vm13 = vcmp.eq.f32.partialorder %v1246_v46, 8.507059e+37 }
 0x2ad   : > { %v1193_v43 = vmul.f32 %v4261_v36, %v4241_v59  ;;  %v4277_v29 = vpop.eup %3645  ;;  %v1175_v49 = vsel %vm1172_vm12, %v1174_v4, %v1170_v42  ;;  %v1225_v17 = vmul.f32 %v4255_v16, %v1224_v14  ;;  %v1219_v22 = vor.u32 1.1754944e-38, %v1218_v47 }
 0x2ae   : > { %v4281_v53 = vpop.eup %3647  ;;  %v1238_v57 = vmul.f32 %v4277_v29, %v4251_v6  ;;  %vm1198_vm4 = vweird.f32 %v4261_v36  ;;  %vm1243_vm10 = vweird.f32 %v4277_v29 }
 0x2af   : > { %v1194_v51 = vsub.f32 1.0, %v1193_v43  ;;  %v1253_v21 = vmul.f32 %v4281_v53, %v4258_v18  ;;  %vm4299_vm7 = vmor %vm1197_vm3, %vm1198_vm4  ;;  %vm1258_vm15 = vweird.f32 %v4281_v53 }
 0x2b0   : > { %v1239_v28 = vsub.f32 1.0, %v1238_v57  ;;  %vm4316_vm12 = vmor %vm1242_vm9, %vm1243_vm10 }
 0x2b1   : > { %v1195_v0 = vmul.f32 %v4261_v36, %v1194_v51  ;;  %v1254_v41 = vsub.f32 1.0, %v1253_v21 }
 0x2b2   : > { %v1240_v37 = vmul.f32 %v4277_v29, %v1239_v28 }
 0x2b3   : > { %v1196_v26 = vadd.f32 %v4261_v36, %v1195_v0 }
 0x2f7   : > { %v1670_v20 = vpop.f32.mrf.mxu3 }
 0x2f8   : > { %v4234_v50 = vmul.f32 %v1670_v20, %v1160_v2  ;;  %v1216_v2 = vand.u32 2147483647, %v4232_v19 }
 0x2fa   : > { %vm1217_vm0 = vcmp.eq.f32.partialorder %v1216_v2, 8.507059e+37 }
 0x2fb   : > { %v1220_v1 = vsel %vm1217_vm0, %v1219_v22, %v1215_v54  ;;  %v3305_v22 = vmul.f32 -1.442695, %v4234_v50  ;;  %vm4336_vm0 = vmor %vm1257_vm14, %vm1258_vm15 }
 0x2ff   : > { %v1673_v56 = vpop.f32.mrf.mxu3 }
 0x300   : > { %v1695_v20 = vmul.f32 %v1673_v56, %v1175_v49  ;;  %v1226_v56 = vadd.f32 %v4255_v16, %v1225_v17  ;;  %v1255_v17 = vmul.f32 %v4281_v53, %v1254_v41 }
 0x302   : > { %v3306_v62 = vmul.f32 -1.442695, %v1695_v20 }
 0x307   : > { %v1676_v11 = vpop.f32.mrf.mxu3 }
 0x308   : > { %v1696_v38 = vmul.f32 %v1676_v11, %v1190_v35  ;;  %v1203_v11 = vand.u32 2147483648, %v4241_v59  ;;  %v1230_v35 = vsel %vm1229_vm6, %v4255_v16, %v1226_v56  ;;  %v1200_v59 = vsel %vm4299_vm7, %v4261_v36, %v1196_v26 }
 0x309   : > { %v1235_v4 = vsel %vm1232_vm8, %v1234_v40, %v1230_v35  ;;  %v1248_v16 = vand.u32 2147483648, %v4251_v6  ;;  %v1261_v56 = vand.u32 2147483647, %v4258_v18 }
 0x30a   : > { %v3307_v45 = vmul.f32 -1.442695, %v1696_v38  ;;  %v1204_v55 = vor.u32 1.1754944e-38, %v1203_v11 }
 0x30b   : > { %v1249_v54 = vor.u32 1.1754944e-38, %v1248_v16  ;;  %vm1262_vm2 = vcmp.eq.f32.partialorder %v1261_v56, 8.507059e+37 }
 0x30c   : > { %3649 = vpow2.f32 %v3307_v45  ;;  %v1241_v45 = vadd.f32 %v4277_v29, %v1240_v37  ;;  %v1205_v2 = vsel %vm1202_vm11, %v1204_v55, %v1200_v59 }
 0x30d   : > { %3651 = vpow2.f32 %v3306_v62 }
 0x30e   : > { %v1245_v6 = vsel %vm4316_vm12, %v4277_v29, %v1241_v45  ;;  %v1256_v29 = vadd.f32 %v4281_v53, %v1255_v17 }
 0x30f   : > { %v4274_v44 = vpop.f32.mrf.mxu3  ;;  %v1250_v0 = vsel %vm1247_vm13, %v1249_v54, %v1245_v6 }
 0x310   : > { %v1697_v20 = vmul.f32 %v4274_v44, %v1205_v2 }
 0x312   : > { %v3650_v8 = vpop.eup %3649  ;;  %v3308_v62 = vmul.f32 -1.442695, %v1697_v20 }
 0x313   : > { %v4305_v38 = vadd.f32 1.0, %v3650_v8  ;;  %v3652_v14 = vpop.eup %3651 }
 0x314   : > { %v4322_v57 = vadd.f32 1.0, %v3652_v14 }
 0x315   : > { %v1775_v6 = vand.u32 2147483648, %v4305_v38  ;;  %vm1769_vm8 = vweird.f32 %v4305_v38 }
 0x316   : > { %vm1754_vm12 = vweird.f32 %v4322_v57 }
 0x317   : > { %v1682_v3 = vpop.f32.mrf.mxu3  ;;  %v1776_v56 = vor.u32 1.1754944e-38, %v1775_v6 }
 0x318   : > { %v1698_v19 = vmul.f32 %v1682_v3, %v1220_v1  ;;  %v1263_v3 = vand.u32 2147483648, %v4258_v18 }
 0x31a   : > { %v3309_v12 = vmul.f32 -1.442695, %v1698_v19  ;;  %v1264_v11 = vor.u32 1.1754944e-38, %v1263_v3 }
 0x31c   : > { %3653 = vpow2.f32 %v3309_v12  ;;  %v1260_v12 = vsel %vm4336_vm0, %v4281_v53, %v1256_v29 }
 0x31d   : > { %3655 = vrcp.f32 %v4305_v38  ;;  %v1265_v35 = vsel %vm1262_vm2, %v1264_v11, %v1260_v12  ;;  %v1760_v11 = vand.u32 2147483648, %v4322_v57 }
 0x31f   : > { %v1685_v42 = vpop.f32.mrf.mxu3 }
 0x320   : > { %v1699_v43 = vmul.f32 %v1685_v42, %v1235_v4 }
 0x322   : > { %v3654_v49 = vpop.eup %3653  ;;  %v3310_v36 = vmul.f32 -1.442695, %v1699_v43 }
 0x323   : > { %v1730_v51 = vadd.f32 1.0, %v3654_v49  ;;  %v4330_v44 = vpop.eup %3655 }
 0x324   : > { %3657 = vpow2.f32 %v3310_v36  ;;  %v1765_v21 = vmul.f32 %v4330_v44, %v4305_v38  ;;  %vm1770_vm7 = vweird.f32 %v4330_v44 }
 0x325   : > { %3659 = vrcp.f32 %v1730_v51  ;;  %v1805_v40 = vand.u32 2147483648, %v1730_v51  ;;  %v1803_v4 = vand.u32 2147483647, %v1730_v51  ;;  %vm1799_vm4 = vweird.f32 %v1730_v51  ;;  %vm1771_vm9 = vmor %vm1769_vm8, %vm1770_vm7 }
 0x326   : > { %3661 = vrcp.f32 %v4322_v57  ;;  %v1766_v10 = vsub.f32 1.0, %v1765_v21 }
 0x327   : > { %v1688_v1 = vpop.f32.mrf.mxu3  ;;  %3663 = vpow2.f32 %v3305_v22  ;;  %v1806_v47 = vor.u32 1.1754944e-38, %v1805_v40  ;;  %vm1804_vm6 = vcmp.eq.f32.partialorder %v1803_v4, 8.507059e+37  ;;  %v1773_v22 = vand.u32 2147483647, %v4305_v38 }
 0x328   : > { %v1700_v19 = vmul.f32 %v1688_v1, %v1250_v0  ;;  %3665 = vpow2.f32 %v3308_v62  ;;  %v1767_v46 = vmul.f32 %v4330_v44, %v1766_v10 }
 0x329   : > { %vm1774_vm10 = vcmp.eq.f32.partialorder %v1773_v22, 8.507059e+37 }
 0x32a   : > { %v3658_v28 = vpop.eup %3657  ;;  %v3311_v58 = vmul.f32 -1.442695, %v1700_v19  ;;  %v1768_v17 = vadd.f32 %v4330_v44, %v1767_v46 }
 0x32b   : > { %v3660_v8 = vpop.eup %3659  ;;  %v4345_v13 = vadd.f32 1.0, %v3658_v28 }
 0x32c   : > { %3667 = vpow2.f32 %v3311_v58  ;;  %v1795_v18 = vmul.f32 %v3660_v8, %v1730_v51  ;;  %v4347_v26 = vpop.eup %3661  ;;  %vm1800_vm3 = vweird.f32 %v3660_v8  ;;  %v1772_v1 = vsel %vm1771_vm9, %v4330_v44, %v1768_v17 }
 0x32d   : > { %v3664_v41 = vpop.eup %3663  ;;  %3669 = vrcp.f32 %v4345_v13  ;;  %v1750_v53 = vmul.f32 %v4347_v26, %v4322_v57  ;;  %vm1801_vm5 = vmor %vm1799_vm4, %vm1800_vm3  ;;  %v1777_v38 = vsel %vm1774_vm10, %v1776_v56, %v1772_v1  ;;  %vm1755_vm11 = vweird.f32 %v4347_v26 }
 0x32e   : > { %v1796_v63 = vsub.f32 1.0, %v1795_v18  ;;  %v3666_v42 = vpop.eup %3665  ;;  %v4353_v49 = vadd.f32 1.0, %v3664_v41  ;;  %vm4381_vm13 = vmor %vm1754_vm12, %vm1755_vm11 }
 0x32f   : > { %v1691_v37 = vpop.f32.mrf.mxu3  ;;  %v4355_v36 = vadd.f32 1.0, %v3666_v42  ;;  %v1751_v54 = vsub.f32 1.0, %v1750_v53  ;;  %v1761_v42 = vor.u32 1.1754944e-38, %v1760_v11 }
 0x330   : > { %v1701_v55 = vmul.f32 %v1691_v37, %v1265_v35  ;;  %v1797_v59 = vmul.f32 %v3660_v8, %v1796_v63  ;;  %v1758_v63 = vand.u32 2147483647, %v4322_v57 }
 0x331   : > { %v1752_v62 = vmul.f32 %v4347_v26, %v1751_v54  ;;  %v1818_v54 = vand.u32 2147483647, %v4345_v13 }
 0x332   : > { %v3668_v16 = vpop.eup %3667  ;;  %v3312_v43 = vmul.f32 -1.442695, %v1701_v55  ;;  %v1798_v45 = vadd.f32 %v3660_v8, %v1797_v59  ;;  %vm1759_vm2 = vcmp.eq.f32.partialorder %v1758_v63, 8.507059e+37 }
 0x333   : > { %v1732_v14 = vadd.f32 1.0, %v3668_v16  ;;  %v4359_v51 = vpop.eup %3669  ;;  %v1753_v28 = vadd.f32 %v4347_v26, %v1752_v62  ;;  %vm1819_vm10 = vcmp.eq.f32.partialorder %v1818_v54, 8.507059e+37  ;;  %v906_v54 = vld [vmem:[%s4439_s24 + $0x38] sm:$0xff] }
 0x334   : > { %3671 = vpow2.f32 %v3312_v43  ;;  %v1802_v2 = vsel %vm1801_vm5, %v3660_v8, %v1798_v45  ;;  %v1810_v3 = vmul.f32 %v4359_v51, %v4345_v13  ;;  %vm1815_vm4 = vweird.f32 %v4359_v51 }
 0x335   : > { %3673 = vrcp.f32 %v1732_v14  ;;  %v1807_v20 = vsel %vm1804_vm6, %v1806_v47, %v1802_v2  ;;  %v1835_v12 = vand.u32 2147483648, %v1732_v14  ;;  %v1833_v35 = vand.u32 2147483647, %v1732_v14 }
 0x336   : > { %1876 = vperm.xlu1 %3603, %v1807_v20   ;;  %3675 = vrcp.f32 %v4353_v49  ;;  %v1811_v21 = vsub.f32 1.0, %v1810_v3  ;;  %v1757_v37 = vsel %vm4381_vm13, %v4347_v26, %v1753_v28  ;;  %vm1829_vm15 = vweird.f32 %v1732_v14 }
 0x337   : > { %3677 = vrcp.f32 %v4355_v36  ;;  %v1836_v57 = vor.u32 1.1754944e-38, %v1835_v12  ;;  %vm1834_vm3 = vcmp.eq.f32.partialorder %v1833_v35, 8.507059e+37  ;;  %v1762_v26 = vsel %vm1759_vm2, %v1761_v42, %v1757_v37  ;;  %v902_v42 = vld [vmem:[%s4439_s24 + $0x18] sm:$0xff] }
 0x338   : > { %v1812_v55 = vmul.f32 %v4359_v51, %v1811_v21  ;;  %vm1814_vm5 = vweird.f32 %v4345_v13  ;;  %v1820_v2 = vand.u32 2147483648, %v4345_v13  ;;  %v1745_v28 = vand.u32 2147483648, %v4353_v49 }
 0x339   : > { %vm1816_vm7 = vmor %vm1814_vm5, %vm1815_vm4  ;;  %v1743_v21 = vand.u32 2147483647, %v4353_v49 }
 0x33a   : > { %v3672_v0 = vpop.eup %3671  ;;  %v1813_v46 = vadd.f32 %v4359_v51, %v1812_v55  ;;  %v1821_v3 = vor.u32 1.1754944e-38, %v1820_v2  ;;  %v1746_v63 = vor.u32 1.1754944e-38, %v1745_v28  ;;  %v903_v2 = vld [vmem:[%s4439_s24 + $0x20] sm:$0xff] }
 0x33b   : > { %v3674_v19 = vpop.eup %3673  ;;  %v4370_v29 = vadd.f32 1.0, %v3672_v0  ;;  %vm1744_vm4 = vcmp.eq.f32.partialorder %v1743_v21, 8.507059e+37 }
 0x33c   : > { %v1825_v50 = vmul.f32 %v3674_v19, %v1732_v14  ;;  %v4375_v58 = vpop.eup %3675  ;;  %vm1830_vm14 = vweird.f32 %v3674_v19  ;;  %v1817_v62 = vsel %vm1816_vm7, %v4359_v51, %v1813_v46  ;;  %v908_v46 = vld [vmem:[%s4439_s24 + $0x48] sm:$0xff] }
 0x33d   : > { %3679 = vrcp.f32 %v4370_v29  ;;  %v4377_v8 = vpop.eup %3677  ;;  %v1735_v40 = vmul.f32 %v4375_v58, %v4353_v49  ;;  %vm1831_vm0 = vmor %vm1829_vm15, %vm1830_vm14  ;;  %v1850_v20 = vand.u32 2147483648, %v4370_v29  ;;  %v1848_v6 = vand.u32 2147483647, %v4370_v29 }
 0x33e   : > { %1866 = vperm.xlu1 %3603, %v1777_v38   ;;  %v1826_v44 = vsub.f32 1.0, %v1825_v50  ;;  %v1780_v59 = vmul.f32 %v4377_v8, %v4355_v36  ;;  %vm1844_vm8 = vweird.f32 %v4370_v29  ;;  %v1822_v13 = vsel %vm1819_vm10, %v1821_v3, %v1817_v62  ;;  %v912_v62 = vld [vmem:[%s4439_s24 + $0x68] sm:$0xff] }
 0x33f   : > { %v1736_v45 = vsub.f32 1.0, %v1735_v40  ;;  %vm1849_vm11 = vcmp.eq.f32.partialorder %v1848_v6, 8.507059e+37  ;;  %vm1740_vm12 = vweird.f32 %v4375_v58  ;;  %vm1785_vm13 = vweird.f32 %v4377_v8  ;;  %v909_v6 = vld [vmem:[%s4439_s24 + $0x50] sm:$0xff] }
 0x340   : > { %v1827_v10 = vmul.f32 %v3674_v19, %v1826_v44  ;;  %v1781_v47 = vsub.f32 1.0, %v1780_v59  ;;  %vm1739_vm14 = vweird.f32 %v4353_v49  ;;  %vm1784_vm15 = vweird.f32 %v4355_v36  ;;  %v900_v59 = vld [vmem:[%s4439_s24 + $0x8] sm:$0xff] }
 0x341   : > { %v1737_v22 = vmul.f32 %v4375_v58, %v1736_v45  ;;  %v1788_v44 = vand.u32 2147483647, %v4355_v36  ;;  %vm1786_vm2 = vmor %vm1784_vm15, %vm1785_vm13  ;;  %v899_v45 = vld [vmem:[%s4439_s24] sm:$0xff] }
 0x342   : > { %v1828_v41 = vadd.f32 %v3674_v19, %v1827_v10  ;;  %v1782_v1 = vmul.f32 %v4377_v8, %v1781_v47  ;;  %v901_v47 = vld [vmem:[%s4439_s24 + $0x10] sm:$0xff] }
 0x343   : > { %v3680_v4 = vpop.eup %3679  ;;  %v1738_v51 = vadd.f32 %v4375_v58, %v1737_v22  ;;  %v910_v22 = vld [vmem:[%s4439_s24 + $0x58] sm:$0xff] }
 0x344   : > { %v1832_v53 = vsel %vm1831_vm0, %v3674_v19, %v1828_v41  ;;  %v1840_v16 = vmul.f32 %v3680_v4, %v4370_v29  ;;  %vm1845_vm6 = vweird.f32 %v3680_v4  ;;  %v1851_v19 = vor.u32 1.1754944e-38, %v1850_v20  ;;  %vm1741_vm0 = vmor %vm1739_vm14, %vm1740_vm12  ;;  %v914_v20 = vld [vmem:[%s4439_s24 + $0x78] sm:$0xff] }
 0x345   : > { %v1837_v43 = vsel %vm1834_vm3, %v1836_v57, %v1832_v53  ;;  %vm1846_vm9 = vmor %vm1844_vm8, %vm1845_vm6  ;;  %v1783_v38 = vadd.f32 %v4377_v8, %v1782_v1  ;;  %v1790_v29 = vand.u32 2147483648, %v4355_v36  ;;  %v1742_v12 = vsel %vm1741_vm0, %v4375_v58, %v1738_v51  ;;  %v905_v53 = vld [vmem:[%s4439_s24 + $0x30] sm:$0xff] }
 0x346   : > { %1861 = vperm.xlu1 %3603, %v1762_v26   ;;  %1886 = vperm.xlu2 %3601, %v1837_v43   ;;  %v1841_v14 = vsub.f32 1.0, %v1840_v16  ;;  %vm1789_vm3 = vcmp.eq.f32.partialorder %v1788_v44, 8.507059e+37  ;;  %v1747_v35 = vsel %vm1744_vm4, %v1746_v63, %v1742_v12 }
 0x347   : > { %v1787_v11 = vsel %vm1786_vm2, %v4377_v8, %v1783_v38  ;;  %v1791_v18 = vor.u32 1.1754944e-38, %v1790_v29 }
 0x348   : > { %v1842_v17 = vmul.f32 %v3680_v4, %v1841_v14 }
 0x349   : > { %v1792_v10 = vsel %vm1789_vm3, %v1791_v18, %v1787_v11 }
 0x34a   : > { %v1843_v0 = vadd.f32 %v3680_v4, %v1842_v17  ;;  %v907_v17 = vld [vmem:[%s4439_s24 + $0x40] sm:$0xff] }
 0x34c   : > { %v1847_v56 = vsel %vm1846_vm9, %v3680_v4, %v1843_v0  ;;  %v913_v0 = vld [vmem:[%s4439_s24 + $0x70] sm:$0xff] }
 0x34d   : > { %v1852_v50 = vsel %vm1849_vm11, %v1851_v19, %v1847_v56 }
 0x34e   : > { %1881 = vperm.xlu2 %3601, %v1822_v13   ;;  %1891 = vperm.xlu0 %3602, %v1852_v50  }
 0x356   : > { %1871 = vperm.xlu2 %3601, %v1792_v10   ;;  %1856 = vperm.xlu0 %3602, %v1747_v35  }
 0x3a0   : > { %v4418_v37 = vpop.permute.xlu2 %1886 }
 0x3a8   : > { %v4420_v36 = vpop.permute.xlu2 %1881  ;;  %v4422_v40 = vpop.permute.xlu1 %1876 }
 0x3a9   : > { %v4426_v49 = vmul.f32 %v4420_v36, %v4197_v52  ;;  %v4430_v58 = vmul.f32 %v4422_v40, %v4193_v48 }
 0x3ab   : > { %v1904_v8 = vpack.c.bf16 %v4426_v49, %v4430_v58 }
 0x3ad   : > { %1914 = vrot.lane.b32.xlu0 %v1904_v8, %s5013_s0 }
 0x3b0   : > { %v4441_v52 = vpop.permute.xlu2 %1871  ;;  %v4443_v41 = vpop.permute.xlu1 %1866 }
 0x3b1   : > { %v4447_v48 = vmul.f32 %v4441_v52, %v4189_v39  ;;  %v4451_v55 = vmul.f32 %v4443_v41, %v4183_v27  ;;  %v4462_v39 = vmul.f32 %v4418_v37, %v4200_v60 }
 0x3b3   : > { %v1903_v4 = vpack.c.bf16 %v4447_v48, %v4451_v55 }
 0x3b5   : > { %919 = vperm.xlu0 %3602, %v900_v59   ;;  %1912 = vrot.lane.b32.xlu1 %v1903_v4, %s5013_s0 }
 0x3b8   : > { %v4472_v26 = vpop.permute.xlu1 %1861 }
 0x3b9   : > { %v4478_v60 = vmul.f32 %v4472_v26, %v4179_v15  ;;  %v911_v15 = vld [vmem:[%s4439_s24 + $0x60] sm:$0xff] }
 0x3bd   : > { %925 = vperm.xlu0 %3602, %v902_v42  }
 0x3c0   : > { %v4458_v57 = vpop.permute.xlu0 %1891 }
 0x3c1   : > { %v4466_v27 = vmul.f32 %v4458_v57, %v4204_v5 }
 0x3c3   : > { %v1905_v16 = vpack.c.bf16 %v4466_v27, %v4462_v39 }
 0x3c5   : > { %1916 = vrot.lane.b32.xlu2 %v1905_v16, %s5013_s0  ;;  %934 = vperm.xlu0 %3602, %v905_v53  }
 0x3c8   : > { %v4474_v43 = vpop.permute.xlu0 %1856 }
 0x3c9   : > { %v4482_v5 = vmul.f32 %v4474_v43, %v4171_v7  ;;  %v904_v7 = vld [vmem:[%s4439_s24 + $0x28] sm:$0xff]  ;;  %s3045_s24 = sshll.u32 %s730_s4, 4  ;;  %s3046_s24 = int_to_ptr.vmem [resolvable:$true] %s3045_s24 }
 0x3cb   : > { %v1902_v14 = vpack.c.bf16 %v4478_v60, %v4482_v5 }
 0x3cd   : > { %916 = vperm.xlu2 %3601, %v899_v45   ;;  %943 = vperm.xlu0 %3602, %v908_v46  }
 0x3ce   : > { %1910 = vrot.lane.b32.xlu1 %v1902_v14, %s5013_s0 }
 0x3d5   : > { %922 = vperm.xlu2 %3601, %v901_v47   ;;  %952 = vperm.xlu0 %3602, %v911_v15  }
 0x3d6   : > { %928 = vperm.xlu1 %3603, %v903_v2  }
 0x3dd   : > { %931 = vperm.xlu2 %3601, %v904_v7   ;;  %961 = vperm.xlu0 %3602, %v914_v20  }
 0x3de   : > { %937 = vperm.xlu1 %3603, %v906_v54  }
 0x3e5   : > { %940 = vperm.xlu2 %3601, %v907_v17  }
 0x3e6   : > { %946 = vperm.xlu1 %3603, %v909_v6  }
 0x3ed   : > { %949 = vperm.xlu2 %3601, %v910_v22  }
 0x3ee   : > { %955 = vperm.xlu1 %3603, %v912_v62  }
 0x3f5   : > { %958 = vperm.xlu2 %3601, %v913_v0  }
 0x41f   : > { %v1917_v1 = vpop.permute.xlu2 %1916  ;;  %v1915_v3 = vpop.permute.xlu0 %1914 }
 0x420   : > { %1950 = vmatpush.bf16.msra.mxu0 %v1917_v1 }
 0x424   : > { %1951 = vmatpush.bf16.msra.mxu0 %v1915_v3 }
 0x427   : > { %v1913_v19 = vpop.permute.xlu1 %1912  ;;  %v917_v56 = vpop.permute.xlu2 %916 }
 0x428   : > { %1952 = vmatpush.bf16.msra.mxu0 %v1913_v19  ;;  %v920_v13 = vpop.permute.xlu0 %919  ;;  %vm963_vm5 = vcmp.eq.s32.totalorder %v917_v56, %v4074_v61 }
 0x429   : > { %vm964_vm6 = vcmp.eq.s32.totalorder %v920_v13, %v4074_v61  ;;  %v3211_v50 = vsel %vm963_vm5, 1.0, %v3782_v23 }
 0x42a   : > { %v3212_v38 = vsel %vm964_vm6, 1.0, %v3782_v23 }
 0x42b   : > { %v4504_v29 = vpack.c.bf16 %v3212_v38, %v3211_v50 }
 0x42f   : > { %v923_v28 = vpop.permute.xlu2 %922 }
 0x430   : > { %v926_v44 = vpop.permute.xlu0 %925  ;;  %vm965_vm7 = vcmp.eq.s32.totalorder %v923_v28, %v4074_v61 }
 0x431   : > { %vm966_vm8 = vcmp.eq.s32.totalorder %v926_v44, %v4074_v61  ;;  %v3213_v21 = vsel %vm965_vm7, 1.0, %v3782_v23 }
 0x432   : > { %v3214_v11 = vsel %vm966_vm8, 1.0, %v3782_v23 }
 0x433   : > { %v4512_v12 = vpack.c.bf16 %v3214_v11, %v3213_v21 }
 0x437   : > { %v932_v63 = vpop.permute.xlu2 %931 }
 0x438   : > { %vm968_vm10 = vcmp.eq.s32.totalorder %v932_v63, %v4074_v61  ;;  %v935_v4 = vpop.permute.xlu0 %934 }
 0x439   : > { %v3216_v35 = vsel %vm968_vm10, 1.0, %v3782_v23  ;;  %vm969_vm12 = vcmp.eq.s32.totalorder %v935_v4, %v4074_v61 }
 0x43a   : > { %v3217_v53 = vsel %vm969_vm12, 1.0, %v3782_v23 }
 0x43f   : > { %v941_v45 = vpop.permute.xlu2 %940 }
 0x440   : > { %v1911_v51 = vpop.permute.xlu1 %1910  ;;  %v944_v46 = vpop.permute.xlu0 %943  ;;  %vm971_vm13 = vcmp.eq.s32.totalorder %v941_v45, %v4074_v61 }
 0x441   : > { %1953 = vmatpush.bf16.msra.mxu0 %v1911_v51  ;;  %vm972_vm14 = vcmp.eq.s32.totalorder %v944_v46, %v4074_v61  ;;  %v3219_v14 = vsel %vm971_vm13, 1.0, %v3782_v23 }
 0x442   : > { %v3220_v47 = vsel %vm972_vm14, 1.0, %v3782_v23 }
 0x443   : > { %v4536_v15 = vpack.c.bf16 %v3220_v47, %v3219_v14 }
 0x444   : > { %3313 = vmatmul.msk.bf16.vlgmr.msra.gmra.mxu0 %vm1053_vm1, %v4504_v29 }
 0x447   : > { %v950_v7 = vpop.permute.xlu2 %949 }
 0x448   : > { %v929_v18 = vpop.permute.xlu1 %928  ;;  %vm974_vm0 = vcmp.eq.s32.totalorder %v950_v7, %v4074_v61  ;;  %v953_v22 = vpop.permute.xlu0 %952 }
 0x449   : > { %vm967_vm9 = vcmp.eq.s32.totalorder %v929_v18, %v4074_v61  ;;  %v3222_v54 = vsel %vm974_vm0, 1.0, %v3782_v23  ;;  %vm975_vm3 = vcmp.eq.s32.totalorder %v953_v22, %v4074_v61 }
 0x44a   : > { %v3215_v10 = vsel %vm967_vm9, 1.0, %v3782_v23  ;;  %v3223_v0 = vsel %vm975_vm3, 1.0, %v3782_v23 }
 0x44b   : > { %v4520_v8 = vpack.c.bf16 %v3216_v35, %v3215_v10 }
 0x44f   : > { %v959_v3 = vpop.permute.xlu2 %958 }
 0x450   : > { %v938_v59 = vpop.permute.xlu1 %937  ;;  %v962_v19 = vpop.permute.xlu0 %961  ;;  %vm977_vm4 = vcmp.eq.s32.totalorder %v959_v3, %v4074_v61  ;;  %v1020_v3 = vadd.s32 40, %v3983_v9 }
 0x451   : > { %vm970_vm11 = vcmp.eq.s32.totalorder %v938_v59, %v4074_v61  ;;  %vm978_vm5 = vcmp.eq.s32.totalorder %v962_v19, %v4074_v61  ;;  %v3225_v56 = vsel %vm977_vm4, 1.0, %v3782_v23 }
 0x452   : > { %v3218_v42 = vsel %vm970_vm11, 1.0, %v3782_v23  ;;  %v3226_v13 = vsel %vm978_vm5, 1.0, %v3782_v23 }
 0x453   : > { %v4528_v16 = vpack.c.bf16 %v3218_v42, %v3217_v53  ;;  %v4560_v50 = vpack.c.bf16 %v3226_v13, %v3225_v56 }
 0x454   : > { %3314 = vmatmul.msk.bf16.gmra.mxu0 %vm1053_vm1, %v4512_v12 }
 0x458   : > { %v947_v2 = vpop.permute.xlu1 %946 }
 0x459   : > { %vm973_vm15 = vcmp.eq.s32.totalorder %v947_v2, %v4074_v61 }
 0x45a   : > { %v3221_v20 = vsel %vm973_vm15, 1.0, %v3782_v23 }
 0x45b   : > { %v4544_v17 = vpack.c.bf16 %v3222_v54, %v3221_v20 }
 0x460   : > { %v956_v6 = vpop.permute.xlu1 %955 }
 0x461   : > { %vm976_vm2 = vcmp.eq.s32.totalorder %v956_v6, %v4074_v61  ;;  %v3624_v6 = vld [vmem:[%s5015_s23] ss:$0 sm:$0xff]  ;;  %s3449_s23 = sld [smem:[#allocation2 + $0x3]] }
 0x462   : > { %v3224_v62 = vsel %vm976_vm2, 1.0, %v3782_v23  ;;  %vm1025_vm6 = vcmp.eq.s32.totalorder %v3983_v9, %v3624_v6  ;;  %vm1026_vm7 = vcmp.eq.s32.totalorder %v4019_v25, %v3624_v6  ;;  %vm1027_vm9 = vcmp.eq.s32.totalorder %v4035_v31, %v3624_v6 }
 0x463   : > { %v4552_v1 = vpack.c.bf16 %v3224_v62, %v3223_v0  ;;  %vm4571_vm8 = vmpackc.low %vm1026_vm7, %vm1025_vm6  ;;  %v3784_v62 = vmov 1.0|1.0   ;;  %vm1028_vm10 = vcmp.eq.s32.totalorder %v4046_v33, %v3624_v6  ;;  %v1019_v25 = vadd.s32 32, %v3983_v9 }
 0x464   : > { %3315 = vmatmul.msk.bf16.gmra.mxu0 %vm1053_vm1, %v4520_v8  ;;  %vm4580_vm11 = vmpackc.low %vm1028_vm10, %vm1027_vm9  ;;  %vm1030_vm13 = vcmp.eq.s32.totalorder %v1020_v3, %v3624_v6  ;;  %v1021_v31 = vadd.s32 48, %v3983_v9  ;;  %v1022_v33 = vadd.s32 56, %v3983_v9 }
 0x465   : > { %vm1029_vm12 = vcmp.eq.s32.totalorder %v1019_v25, %v3624_v6 }
 0x466   : > { %vm4589_vm14 = vmpackc.low %vm1030_vm13, %vm1029_vm12  ;;  %vm1031_vm15 = vcmp.eq.s32.totalorder %v1021_v31, %v3624_v6  ;;  %vm1032_vm0 = vcmp.eq.s32.totalorder %v1022_v33, %v3624_v6 }
 0x467   : > { %vm4598_vm2 = vmpackc.low %vm1032_vm0, %vm1031_vm15 }
 0x474   : > { %3316 = vmatmul.msk.bf16.gmra.mxu0 %vm1053_vm1, %v4528_v16 }
 0x484   : > { %3317 = vmatmul.msk.bf16.gmra.mxu0 %vm1053_vm1, %v4536_v15 }
 0x494   : > { %3318 = vmatmul.msk.bf16.gmra.mxu0 %vm1053_vm1, %v4544_v17 }
 0x4a4   : > { %3319 = vmatmul.msk.bf16.gmra.mxu0 %vm1053_vm1, %v4552_v1 }
 0x4b4   : > { %3320 = vmatmul.msk.bf16.gmra.mxu0 %vm1053_vm1, %v4560_v50 }
 0x4c1   : > { %v1955_v38 = vpop.f32.mrf.mxu0 }
 0x4c9   : > { %v1957_v51 = vpop.f32.mrf.mxu0 }
 0x4ca   : > { %v1995_v28 = vpack.c.bf16 %v1957_v51, %v1955_v38 }
 0x4d1   : > { %v1960_v44 = vpop.f32.mrf.mxu0 }
 0x4d9   : > { %v1962_v21 = vpop.f32.mrf.mxu0 }
 0x4da   : > { %v1996_v11 = vpack.c.bf16 %v1962_v21, %v1960_v44 }
 0x4e1   : > { %v1965_v18 = vpop.f32.mrf.mxu0 }
 0x4e9   : > { %v1967_v63 = vpop.f32.mrf.mxu0 }
 0x4ea   : > { %v1997_v10 = vpack.c.bf16 %v1967_v63, %v1965_v18 }
 0x4f1   : > { %v1970_v35 = vpop.f32.mrf.mxu0 }
 0x4f9   : > { %v1972_v61 = vpop.f32.mrf.mxu0 }
 0x4fa   : > { %v1998_v59 = vpack.c.bf16 %v1972_v61, %v1970_v35 }
 0x501   : > { %v1975_v4 = vpop.f32.mrf.mxu0 }
 0x509   : > { %v1977_v42 = vpop.f32.mrf.mxu0 }
 0x50a   : > { %v1999_v54 = vpack.c.bf16 %v1977_v42, %v1975_v4 }
 0x511   : > { %v1980_v23 = vpop.f32.mrf.mxu0 }
 0x519   : > { %v1982_v53 = vpop.f32.mrf.mxu0 }
 0x51a   : > { %v2000_v20 = vpack.c.bf16 %v1982_v53, %v1980_v23 }
 0x521   : > { %v1985_v45 = vpop.f32.mrf.mxu0 }
 0x529   : > { %v1987_v46 = vpop.f32.mrf.mxu0 }
 0x52a   : > { %v2001_v7 = vpack.c.bf16 %v1987_v46, %v1985_v45 }
 0x531   : > { %v1990_v14 = vpop.f32.mrf.mxu0 }
 0x539   : > { %v1992_v47 = vpop.f32.mrf.mxu0 }
 0x53a   : > { %v2002_v2 = vpack.c.bf16 %v1992_v47, %v1990_v14 }
 0x53c   : > { %2003 = vmatpush.bf16.msra.mxu2 %v2002_v2 }
 0x540   : > { %2004 = vmatpush.bf16.msra.mxu2 %v2001_v7 }
 0x544   : > { %2005 = vmatpush.bf16.msra.mxu2 %v2000_v20 }
 0x548   : > { %2006 = vmatpush.bf16.msra.mxu2 %v1999_v54 }
 0x54c   : > { %2007 = vmatpush.bf16.msra.mxu2 %v1998_v59 }
 0x550   : > { %2008 = vmatpush.bf16.msra.mxu2 %v1997_v10 }
 0x554   : > { %2009 = vmatpush.bf16.msra.mxu2 %v1996_v11 }
 0x558   : > { %2010 = vmatpush.bf16.msra.mxu2 %v1995_v28 }
 0x55b   : > { %3322 = vmatmul.msk.bf16.vlgmr.msra.gmra.mxu2 %vm4571_vm8, %v3784_v62 }
 0x56b   : > { %3324 = vmatmul.msk.bf16.gmra.mxu2 %vm4580_vm11, %v3784_v62 }
 0x57b   : > { %3326 = vmatmul.msk.bf16.gmra.mxu2 %vm4589_vm14, %v3784_v62 }
 0x58b   : > { %3328 = vmatmul.msk.bf16.gmra.mxu2 %vm4598_vm2, %v3784_v62 }
 0x5de   : > { %v2012_v13 = vpop.f32.mrf.mxu2 }
 0x5df   : > { %v2032_v59 = vmul.f32 %v2012_v13, %v4474_v43 }
 0x5e6   : > { %v2014_v38 = vpop.f32.mrf.mxu2 }
 0x5e7   : > { %v2033_v42 = vmul.f32 %v2014_v38, %v4472_v26 }
 0x5ee   : > { %v2017_v51 = vpop.f32.mrf.mxu2 }
 0x5ef   : > { %v2034_v4 = vmul.f32 %v2017_v51, %v4443_v41 }
 0x5f6   : > { %v2019_v28 = vpop.f32.mrf.mxu2 }
 0x5f7   : > { %v2035_v11 = vmul.f32 %v2019_v28, %v4441_v52 }
 0x5fe   : > { %v2022_v44 = vpop.f32.mrf.mxu2 }
 0x5ff   : > { %v2036_v21 = vmul.f32 %v2022_v44, %v4422_v40 }
 0x601   : > { %2056 = vrot.lane.b32.xlu0 %v2036_v21, %s5013_s0 }
 0x606   : > { %v2024_v9 = vpop.f32.mrf.mxu2 }
 0x607   : > { %v2037_v35 = vmul.f32 %v2024_v9, %v4420_v36 }
 0x609   : > { %2054 = vrot.lane.b32.xlu0 %v2035_v11, %s5013_s0 }
 0x60e   : > { %v2027_v18 = vpop.f32.mrf.mxu2 }
 0x60f   : > { %v2038_v63 = vmul.f32 %v2027_v18, %v4418_v37 }
 0x611   : > { %2060 = vrot.lane.b32.xlu1 %v2038_v63, %s5013_s0 }
 0x616   : > { %v2029_v10 = vpop.f32.mrf.mxu2 }
 0x617   : > { %v2039_v61 = vmul.f32 %v2029_v10, %v4458_v57 }
 0x619   : > { %2058 = vrot.lane.b32.xlu1 %v2037_v35, %s5013_s0  ;;  %2062 = vrot.lane.b32.xlu2 %v2039_v61, %s5013_s0 }
 0x621   : > { %2048 = vrot.lane.b32.xlu1 %v2032_v59, %s5013_s0  ;;  %2052 = vrot.lane.b32.xlu2 %v2034_v4, %s5013_s0 }
 0x629   : > { %2050 = vrot.lane.b32.xlu2 %v2033_v42, %s5013_s0 }
 0x673   : > { %v2057_v23 = vpop.permute.xlu0 %2056  ;;  %v2063_v53 = vpop.permute.xlu2 %2062 }
 0x674   : > { %v2079_v20 = vadd.f32 %v2063_v53, %v4466_v27  ;;  %v2076_v3 = vadd.f32 %v2057_v23, %v4430_v58 }
 0x67b   : > { %v2055_v45 = vpop.permute.xlu0 %2054  ;;  %v2053_v46 = vpop.permute.xlu2 %2052 }
 0x67c   : > { %v2075_v14 = vadd.f32 %v2055_v45, %v4447_v48  ;;  %v2074_v47 = vadd.f32 %v2053_v46, %v4451_v55 }
 0x67e   : > { %v2081_v2 = vpack.c.bf16 %v2075_v14, %v2074_v47 }
 0x680   : > { %2090 = vrot.lane.b32.xlu2 %v2081_v2, %s5013_s0 }
 0x683   : > { %v2061_v7 = vpop.permute.xlu1 %2060  ;;  %v2051_v13 = vpop.permute.xlu2 %2050 }
 0x684   : > { %v2078_v54 = vadd.f32 %v2061_v7, %v4462_v39  ;;  %v2073_v51 = vadd.f32 %v2051_v13, %v4478_v60 }
 0x686   : > { %v2083_v6 = vpack.c.bf16 %v2079_v20, %v2078_v54 }
 0x688   : > { %2094 = vrot.lane.b32.xlu0 %v2083_v6, %s5013_s0 }
 0x68b   : > { %v2059_v25 = vpop.permute.xlu1 %2058 }
 0x68c   : > { %v2077_v31 = vadd.f32 %v2059_v25, %v4426_v49 }
 0x68e   : > { %v2082_v33 = vpack.c.bf16 %v2077_v31, %v2076_v3 }
 0x690   : > { %2092 = vrot.lane.b32.xlu1 %v2082_v33, %s5013_s0 }
 0x693   : > { %v2049_v38 = vpop.permute.xlu1 %2048 }
 0x694   : > { %v2072_v28 = vadd.f32 %v2049_v38, %v4482_v5 }
 0x696   : > { %v2080_v44 = vpack.c.bf16 %v2073_v51, %v2072_v28 }
 0x698   : > { %2088 = vrot.lane.b32.xlu0 %v2080_v44, %s5013_s0 }
 0x6da   : > { %v2091_v11 = vpop.permute.xlu2 %2090 }
 0x6fa   : > { %v2095_v21 = vpop.permute.xlu0 %2094 }
 0x6fb   : > { %2104 = vmatpush.bf16.msra.mxu1 %v2095_v21 }
 0x702   : > { %v2093_v9 = vpop.permute.xlu1 %2092 }
 0x703   : > { %2105 = vmatpush.bf16.msra.mxu1 %v2093_v9 }
 0x707   : > { %2106 = vmatpush.bf16.msra.mxu1 %v2091_v11 }
 0x70a   : > { %v2089_v18 = vpop.permute.xlu0 %2088 }
 0x70b   : > { %2107 = vmatpush.bf16.msra.mxu1 %v2089_v18 }
 0x70e   : > { %3329 = vmatmul.msk.bf16.vlgmr.msra.gmra.mxu1 %vm1053_vm1, %v4504_v29 }
 0x71e   : > { %3330 = vmatmul.msk.bf16.gmra.mxu1 %vm1053_vm1, %v4512_v12 }
 0x72e   : > { %3331 = vmatmul.msk.bf16.gmra.mxu1 %vm1053_vm1, %v4520_v8 }
 0x73e   : > { %3332 = vmatmul.msk.bf16.gmra.mxu1 %vm1053_vm1, %v4528_v16 }
 0x74e   : > { %3333 = vmatmul.msk.bf16.gmra.mxu1 %vm1053_vm1, %v4536_v15 }
 0x75e   : > { %3334 = vmatmul.msk.bf16.gmra.mxu1 %vm1053_vm1, %v4544_v17 }
 0x76e   : > { %3335 = vmatmul.msk.bf16.gmra.mxu1 %vm1053_vm1, %v4552_v1 }
 0x77e   : > { %3336 = vmatmul.msk.bf16.gmra.mxu1 %vm1053_vm1, %v4560_v50 }
 0x78b   : > { %v2109_v63 = vpop.f32.mrf.mxu1 }
 0x793   : > { %v2111_v10 = vpop.f32.mrf.mxu1 }
 0x794   : > { %v2149_v35 = vpack.c.bf16 %v2111_v10, %v2109_v63 }
 0x79b   : > { %v2114_v61 = vpop.f32.mrf.mxu1 }
 0x7a3   : > { %v2116_v59 = vpop.f32.mrf.mxu1 }
 0x7a4   : > { %v2150_v4 = vpack.c.bf16 %v2116_v59, %v2114_v61 }
 0x7ab   : > { %v2119_v42 = vpop.f32.mrf.mxu1 }
 0x7b3   : > { %v2121_v23 = vpop.f32.mrf.mxu1 }
 0x7b4   : > { %v2151_v53 = vpack.c.bf16 %v2121_v23, %v2119_v42 }
 0x7bb   : > { %v2124_v45 = vpop.f32.mrf.mxu1 }
 0x7c3   : > { %v2126_v46 = vpop.f32.mrf.mxu1 }
 0x7c4   : > { %v2152_v14 = vpack.c.bf16 %v2126_v46, %v2124_v45 }
 0x7cb   : > { %v2129_v47 = vpop.f32.mrf.mxu1 }
 0x7d3   : > { %v2131_v2 = vpop.f32.mrf.mxu1 }
 0x7d4   : > { %v2153_v38 = vpack.c.bf16 %v2131_v2, %v2129_v47 }
 0x7db   : > { %v2134_v7 = vpop.f32.mrf.mxu1 }
 0x7e3   : > { %v2136_v20 = vpop.f32.mrf.mxu1 }
 0x7e4   : > { %v2154_v13 = vpack.c.bf16 %v2136_v20, %v2134_v7 }
 0x7eb   : > { %v2139_v54 = vpop.f32.mrf.mxu1 }
 0x7f3   : > { %v2141_v6 = vpop.f32.mrf.mxu1 }
 0x7f4   : > { %v2155_v33 = vpack.c.bf16 %v2141_v6, %v2139_v54 }
 0x7fb   : > { %v2144_v25 = vpop.f32.mrf.mxu1 }
 0x803   : > { %v2146_v3 = vpop.f32.mrf.mxu1 }
 0x804   : > { %v2156_v31 = vpack.c.bf16 %v2146_v3, %v2144_v25 }
 0x806   : > { %2157 = vmatpush.bf16.msrb.mxu3 %v2156_v31 }
 0x80a   : > { %2158 = vmatpush.bf16.msrb.mxu3 %v2155_v33 }
 0x80e   : > { %2159 = vmatpush.bf16.msrb.mxu3 %v2154_v13 }
 0x812   : > { %2160 = vmatpush.bf16.msrb.mxu3 %v2153_v38 }
 0x816   : > { %2161 = vmatpush.bf16.msrb.mxu3 %v2152_v14 }
 0x81a   : > { %2162 = vmatpush.bf16.msrb.mxu3 %v2151_v53 }
 0x81e   : > { %2163 = vmatpush.bf16.msrb.mxu3 %v2150_v4 }
 0x822   : > { %2164 = vmatpush.bf16.msrb.mxu3 %v2149_v35 }
 0x825   : > { %3338 = vmatmul.msk.bf16.vlgmr.msrb.gmra.mxu3 %vm4571_vm8, %v3784_v62 }
 0x835   : > { %3340 = vmatmul.msk.bf16.gmra.mxu3 %vm4580_vm11, %v3784_v62 }
 0x845   : > { %3342 = vmatmul.msk.bf16.gmra.mxu3 %vm4589_vm14, %v3784_v62 }
 0x855   : > { %3344 = vmatmul.msk.bf16.gmra.mxu3 %vm4598_vm2, %v3784_v62 }
 0x8a8   : > { %v2166_v51 = vpop.f32.mrf.mxu3 }
 0x8a9   : > { %v2186_v42 = vmul.f32 %v2166_v51, %v4474_v43 }
 0x8b0   : > { %v2168_v28 = vpop.f32.mrf.mxu3 }
 0x8b1   : > { %v2187_v53 = vmul.f32 %v2168_v28, %v4472_v26 }
 0x8b8   : > { %v2171_v44 = vpop.f32.mrf.mxu3 }
 0x8b9   : > { %v2188_v23 = vmul.f32 %v2171_v44, %v4443_v41 }
 0x8c0   : > { %v2173_v21 = vpop.f32.mrf.mxu3 }
 0x8c1   : > { %v2189_v63 = vmul.f32 %v2173_v21, %v4441_v52 }
 0x8c8   : > { %v2176_v9 = vpop.f32.mrf.mxu3 }
 0x8c9   : > { %v2190_v11 = vmul.f32 %v2176_v9, %v4422_v40 }
 0x8cb   : > { %2210 = vrot.lane.b32.xlu0 %v2190_v11, %s5013_s0 }
 0x8d0   : > { %v2178_v18 = vpop.f32.mrf.mxu3 }
 0x8d1   : > { %v2191_v59 = vmul.f32 %v2178_v18, %v4420_v36 }
 0x8d3   : > { %2208 = vrot.lane.b32.xlu0 %v2189_v63, %s5013_s0 }
 0x8d8   : > { %v2181_v10 = vpop.f32.mrf.mxu3 }
 0x8d9   : > { %v2192_v35 = vmul.f32 %v2181_v10, %v4418_v37 }
 0x8db   : > { %2214 = vrot.lane.b32.xlu1 %v2192_v35, %s5013_s0 }
 0x8e0   : > { %v2183_v61 = vpop.f32.mrf.mxu3 }
 0x8e1   : > { %v2193_v4 = vmul.f32 %v2183_v61, %v4458_v57 }
 0x8e3   : > { %2212 = vrot.lane.b32.xlu1 %v2191_v59, %s5013_s0  ;;  %2216 = vrot.lane.b32.xlu2 %v2193_v4, %s5013_s0 }
 0x8eb   : > { %2202 = vrot.lane.b32.xlu1 %v2186_v42, %s5013_s0  ;;  %2206 = vrot.lane.b32.xlu2 %v2188_v23, %s5013_s0 }
 0x8f3   : > { %2204 = vrot.lane.b32.xlu2 %v2187_v53, %s5013_s0 }
 0x93d   : > { %v2211_v45 = vpop.permute.xlu0 %2210  ;;  %v2217_v46 = vpop.permute.xlu2 %2216 }
 0x93e   : > { %v2233_v6 = vadd.f32 %v2217_v46, %v4466_v27  ;;  %v2230_v33 = vadd.f32 %v2211_v45, %v4430_v58 }
 0x945   : > { %v2209_v14 = vpop.permute.xlu0 %2208  ;;  %v2207_v47 = vpop.permute.xlu2 %2206 }
 0x946   : > { %v2229_v2 = vadd.f32 %v2209_v14, %v4447_v48  ;;  %v2228_v7 = vadd.f32 %v2207_v47, %v4451_v55 }
 0x948   : > { %v2235_v20 = vpack.c.bf16 %v2229_v2, %v2228_v7 }
 0x94a   : > { %2244 = vrot.lane.b32.xlu2 %v2235_v20, %s5013_s0 }
 0x94d   : > { %v2215_v54 = vpop.permute.xlu1 %2214  ;;  %v2205_v51 = vpop.permute.xlu2 %2204 }
 0x94e   : > { %v2232_v25 = vadd.f32 %v2215_v54, %v4462_v39  ;;  %v2227_v44 = vadd.f32 %v2205_v51, %v4478_v60 }
 0x950   : > { %v2237_v3 = vpack.c.bf16 %v2233_v6, %v2232_v25 }
 0x952   : > { %2248 = vrot.lane.b32.xlu0 %v2237_v3, %s5013_s0 }
 0x955   : > { %v2213_v31 = vpop.permute.xlu1 %2212 }
 0x956   : > { %v2231_v13 = vadd.f32 %v2213_v31, %v4426_v49 }
 0x958   : > { %v2236_v38 = vpack.c.bf16 %v2231_v13, %v2230_v33 }
 0x95a   : > { %2246 = vrot.lane.b32.xlu1 %v2236_v38, %s5013_s0 }
 0x95d   : > { %v2203_v28 = vpop.permute.xlu1 %2202 }
 0x95e   : > { %v2226_v21 = vadd.f32 %v2203_v28, %v4482_v5 }
 0x960   : > { %v2234_v9 = vpack.c.bf16 %v2227_v44, %v2226_v21 }
 0x962   : > { %2242 = vrot.lane.b32.xlu0 %v2234_v9, %s5013_s0 }
 0x9a4   : > { %v2245_v63 = vpop.permute.xlu2 %2244 }
 0x9c4   : > { %v2249_v11 = vpop.permute.xlu0 %2248 }
 0x9c5   : > { %2258 = vmatpush.bf16.msrb.mxu2 %v2249_v11 }
 0x9cc   : > { %v2247_v18 = vpop.permute.xlu1 %2246 }
 0x9cd   : > { %2259 = vmatpush.bf16.msrb.mxu2 %v2247_v18 }
 0x9d1   : > { %2260 = vmatpush.bf16.msrb.mxu2 %v2245_v63 }
 0x9d4   : > { %v2243_v10 = vpop.permute.xlu0 %2242 }
 0x9d5   : > { %2261 = vmatpush.bf16.msrb.mxu2 %v2243_v10 }
 0x9d8   : > { %3345 = vmatmul.msk.bf16.vlgmr.msrb.gmra.mxu2 %vm1053_vm1, %v4504_v29 }
 0x9e8   : > { %3346 = vmatmul.msk.bf16.gmra.mxu2 %vm1053_vm1, %v4512_v12 }
 0x9f8   : > { %3347 = vmatmul.msk.bf16.gmra.mxu2 %vm1053_vm1, %v4520_v8 }
 0xa08   : > { %3348 = vmatmul.msk.bf16.gmra.mxu2 %vm1053_vm1, %v4528_v16 }
 0xa18   : > { %3349 = vmatmul.msk.bf16.gmra.mxu2 %vm1053_vm1, %v4536_v15 }
 0xa28   : > { %3350 = vmatmul.msk.bf16.gmra.mxu2 %vm1053_vm1, %v4544_v17 }
 0xa38   : > { %3351 = vmatmul.msk.bf16.gmra.mxu2 %vm1053_vm1, %v4552_v1 }
 0xa48   : > { %3352 = vmatmul.msk.bf16.gmra.mxu2 %vm1053_vm1, %v4560_v50 }
 0xa5b   : > { %v2263_v29 = vpop.f32.mrf.mxu2 }
 0xa63   : > { %v2265_v12 = vpop.f32.mrf.mxu2 }
 0xa64   : > { %v2303_v35 = vpack.c.bf16 %v2265_v12, %v2263_v29 }
 0xa6b   : > { %v2268_v61 = vpop.f32.mrf.mxu2 }
 0xa73   : > { %v2270_v8 = vpop.f32.mrf.mxu2 }
 0xa74   : > { %v2304_v59 = vpack.c.bf16 %v2270_v8, %v2268_v61 }
 0xa7b   : > { %v2273_v4 = vpop.f32.mrf.mxu2 }
 0xa83   : > { %v2275_v16 = vpop.f32.mrf.mxu2 }
 0xa84   : > { %v2305_v42 = vpack.c.bf16 %v2275_v16, %v2273_v4 }
 0xa8b   : > { %v2278_v23 = vpop.f32.mrf.mxu2 }
 0xa93   : > { %v2280_v15 = vpop.f32.mrf.mxu2 }
 0xa94   : > { %v2306_v53 = vpack.c.bf16 %v2280_v15, %v2278_v23 }
 0xa9b   : > { %v2283_v45 = vpop.f32.mrf.mxu2 }
 0xaa3   : > { %v2285_v17 = vpop.f32.mrf.mxu2 }
 0xaa4   : > { %v2307_v6 = vpack.c.bf16 %v2285_v17, %v2283_v45 }
 0xaab   : > { %v2288_v46 = vpop.f32.mrf.mxu2 }
 0xab3   : > { %v2290_v14 = vpop.f32.mrf.mxu2 }
 0xab4   : > { %v2308_v54 = vpack.c.bf16 %v2290_v14, %v2288_v46  ;;  %v3785_v46 = vmov 32.0  }
 0xab5   : > { %3681 = vrcp.f32 %v3785_v46 }
 0xabb   : > { %v2293_v1 = vpop.f32.mrf.mxu2 }
 0xac3   : > { %v2295_v47 = vpop.f32.mrf.mxu2 }
 0xac4   : > { %v2309_v20 = vpack.c.bf16 %v2295_v47, %v2293_v1  ;;  %v3691_v1 = vld [vmem:[%s3966_s20 + $0x8] sm:$0xff] }
 0xacb   : > { %v2298_v2 = vpop.f32.mrf.mxu2 }
 0xad3   : > { %v2300_v50 = vpop.f32.mrf.mxu2 }
 0xad4   : > { %v2310_v7 = vpack.c.bf16 %v2300_v50, %v2298_v2  ;;  %v3692_v2 = vld [vmem:[%s3966_s20] sm:$0xff] }
 0xad6   : > { %2311 = vmatpush.bf16.msra.mxu3 %v2310_v7 }
 0xada   : > { %2312 = vmatpush.bf16.msra.mxu3 %v2309_v20  ;;  %v3682_v20 = vpop.eup %3681 }
 0xadb   : > { %vm2471_vm3 = vweird.f32 %v3682_v20 }
 0xade   : > { %2313 = vmatpush.bf16.msra.mxu3 %v2308_v54 }
 0xae2   : > { %2314 = vmatpush.bf16.msra.mxu3 %v2307_v6 }
 0xae6   : > { %2315 = vmatpush.bf16.msra.mxu3 %v2306_v53 }
 0xaea   : > { %2316 = vmatpush.bf16.msra.mxu3 %v2305_v42 }
 0xaee   : > { %2317 = vmatpush.bf16.msra.mxu3 %v2304_v59 }
 0xaf2   : > { %2318 = vmatpush.bf16.msra.mxu3 %v2303_v35 }
 0xaf5   : > { %3354 = vmatmul.msk.bf16.vlgmr.msra.gmra.mxu3 %vm4571_vm8, %v3784_v62 }
 0xb05   : > { %3356 = vmatmul.msk.bf16.gmra.mxu3 %vm4580_vm11, %v3784_v62 }
 0xb15   : > { %3358 = vmatmul.msk.bf16.gmra.mxu3 %vm4589_vm14, %v3784_v62 }
 0xb25   : > { %3360 = vmatmul.msk.bf16.gmra.mxu3 %vm4598_vm2, %v3784_v62 }
 0xb78   : > { %v2320_v25 = vpop.f32.mrf.mxu3 }
 0xb80   : > { %v2322_v3 = vpop.f32.mrf.mxu3 }
 0xb88   : > { %v2325_v31 = vpop.f32.mrf.mxu3 }
 0xb89   : > { %v2342_v51 = vmul.f32 %v2325_v31, %v4443_v41 }
 0xb90   : > { %v2327_v33 = vpop.f32.mrf.mxu3 }
 0xb91   : > { %v2343_v56 = vmul.f32 %v2327_v33, %v4441_v52 }
 0xb98   : > { %v2330_v13 = vpop.f32.mrf.mxu3 }
 0xb99   : > { %v2344_v44 = vmul.f32 %v2330_v13, %v4422_v40 }
 0xba0   : > { %v2332_v38 = vpop.f32.mrf.mxu3 }
 0xba1   : > { %v2345_v22 = vmul.f32 %v2332_v38, %v4420_v36  ;;  %v2340_v36 = vmul.f32 %v2320_v25, %v4474_v43 }
 0xba3   : > { %2366 = vrot.lane.b32.xlu0 %v2345_v22, %s5013_s0 }
 0xba8   : > { %v2335_v0 = vpop.f32.mrf.mxu3 }
 0xba9   : > { %v2346_v19 = vmul.f32 %v2335_v0, %v4418_v37  ;;  %v2341_v37 = vmul.f32 %v2322_v3, %v4472_v26  ;;  %v3694_v3 = vld [vmem:[%s3966_s20 + $0x18] sm:$0xff] }
 0xbab   : > { %2360 = vrot.lane.b32.xlu0 %v2342_v51, %s5013_s0  ;;  %2368 = vrot.lane.b32.xlu2 %v2346_v19, %s5013_s0 }
 0xbb0   : > { %v2337_v62 = vpop.f32.mrf.mxu3 }
 0xbb1   : > { %v2347_v28 = vmul.f32 %v2337_v62, %v4458_v57 }
 0xbb3   : > { %2362 = vrot.lane.b32.xlu2 %v2343_v56, %s5013_s0  ;;  %2370 = vrot.lane.b32.xlu1 %v2347_v28, %s5013_s0 }
 0xbbb   : > { %2356 = vrot.lane.b32.xlu2 %v2340_v36, %s5013_s0  ;;  %2364 = vrot.lane.b32.xlu1 %v2344_v44, %s5013_s0 }
 0xbc3   : > { %2358 = vrot.lane.b32.xlu1 %v2341_v37, %s5013_s0 }
 0xc05   : > { %v2369_v41 = vpop.permute.xlu2 %2368 }
 0xc06   : > { %v2386_v43 = vadd.f32 %v2369_v41, %v4462_v39 }
 0xc0d   : > { %v2363_v21 = vpop.permute.xlu2 %2362 }
 0xc0e   : > { %v2383_v9 = vadd.f32 %v2363_v21, %v4447_v48 }
 0xc15   : > { %v2367_v52 = vpop.permute.xlu0 %2366  ;;  %v2357_v48 = vpop.permute.xlu2 %2356 }
 0xc16   : > { %v2385_v29 = vadd.f32 %v2367_v52, %v4426_v49  ;;  %v2380_v61 = vadd.f32 %v2357_v48, %v4482_v5 }
 0xc1d   : > { %v2361_v57 = vpop.permute.xlu0 %2360 }
 0xc1e   : > { %v2382_v11 = vadd.f32 %v2361_v57, %v4451_v55 }
 0xc20   : > { %v3614_v18 = vpack.i.bf16 %v2382_v11, %v2383_v9  ;;  %v3503_v11 = vld [vmem:[%s4957_s12 + $0x18] sm:$0xff] }
 0xc21   : > { %2559 = vmatpush.bf16.msrb.mxu1 %v3503_v11 }
 0xc22   : > { %3615 = vrot.lane.b32.xlu2 %v3614_v18, %s5013_s0 }
 0xc25   : > { %v2371_v40 = vpop.permute.xlu1 %2370 }
 0xc26   : > { %v2387_v63 = vadd.f32 %v2371_v40, %v4466_v27 }
 0xc28   : > { %v3604_v10 = vpack.i.bf16 %v2386_v43, %v2387_v63 }
 0xc2a   : > { %3605 = vrot.lane.b32.xlu0 %v3604_v10, %s5013_s0 }
 0xc2d   : > { %v2365_v26 = vpop.permute.xlu1 %2364 }
 0xc2e   : > { %v2384_v12 = vadd.f32 %v2365_v26, %v4430_v58 }
 0xc30   : > { %v3609_v35 = vpack.i.bf16 %v2384_v12, %v2385_v29  ;;  %v3502_v29 = vld [vmem:[%s4957_s12 + $0x10] sm:$0xff] }
 0xc31   : > { %2560 = vmatpush.bf16.msrb.mxu1 %v3502_v29  ;;  %v3506_v29 = vld [vmem:[%s4959_s14 + $0x10] sm:$0xff] }
 0xc32   : > { %3610 = vrot.lane.b32.xlu1 %v3609_v35, %s5013_s0 }
 0xc35   : > { %v2359_v55 = vpop.permute.xlu1 %2358 }
 0xc36   : > { %v2381_v8 = vadd.f32 %v2359_v55, %v4478_v60 }
 0xc38   : > { %v3619_v39 = vpack.i.bf16 %v2380_v61, %v2381_v8  ;;  %v3501_v61 = vld [vmem:[%s4957_s12 + $0x8] sm:$0xff] }
 0xc39   : > { %2561 = vmatpush.bf16.msrb.mxu1 %v3501_v61  ;;  %v3504_v61 = vld [vmem:[%s4959_s14] sm:$0xff] }
 0xc3a   : > { %3620 = vrot.lane.b32.xlu0 %v3619_v39, %s5013_s0  ;;  %s3528_s0 = sshll.u32 %s3919_s3, 5 }
 0xc3b   : > { %s3044_s6 = scalar_lea.hbm %s4966_s21, %s3528_s0 }
 0xc3c   : > { %s3047_s29 = sshll.u32 %s3044_s6, 4  ;;  %s3048_s29 = int_to_ptr.hbm [resolvable:$true] %s3047_s29 }
 0xc7c   : > { %v3616_v58 = vpop.permute.xlu2 %3615 }
 0xc7d   : > { %v3617_v23 = vunpack.i.l.bf16 %v3616_v58  ;;  %v3618_v15 = vunpack.i.h.bf16 %v3616_v58 }
 0xc9c   : > { %v3606_v27 = vpop.permute.xlu0 %3605 }
 0xc9d   : > { %v3607_v59 = vunpack.i.l.bf16 %v3606_v27  ;;  %v3608_v4 = vunpack.i.h.bf16 %v3606_v27  ;;  %v3500_v27 = vld [vmem:[%s4957_s12] sm:$0xff] }
 0xc9e   : > { %2562 = vmatpush.bf16.msrb.mxu1 %v3500_v27 }
 0xc9f   : > { %2428 = vmatpush.msrb.mxu0 %v3607_v59 }
 0xca1   : > { %2429 = vmatpush.msrb.mxu0 %v3608_v4 }
 0xca4   : > { %v3611_v49 = vpop.permute.xlu1 %3610 }
 0xca5   : > { %v3612_v16 = vunpack.i.l.bf16 %v3611_v49  ;;  %v3613_v42 = vunpack.i.h.bf16 %v3611_v49 }
 0xca7   : > { %2430 = vmatpush.msrb.mxu0 %v3612_v16 }
 0xca9   : > { %2431 = vmatpush.msrb.mxu0 %v3613_v42 }
 0xcab   : > { %2432 = vmatpush.msrb.mxu0 %v3617_v23 }
 0xcac   : > { %v3621_v5 = vpop.permute.xlu0 %3620 }
 0xcad   : > { %v3622_v60 = vunpack.i.l.bf16 %v3621_v5  ;;  %2433 = vmatpush.msrb.mxu0 %v3618_v15  ;;  %v3623_v53 = vunpack.i.h.bf16 %v3621_v5 }
 0xcaf   : > { %2434 = vmatpush.msrb.mxu0 %v3622_v60 }
 0xcb1   : > { %2435 = vmatpush.msrb.mxu0 %v3623_v53 }
 0xcb2   : > { %3361 = vmatmul.msk.f32.vlgmr.msrb.gmra.mxu0 %vm1053_vm1, %v4016_v24  ;;  %v3693_v24 = vld [vmem:[%s3966_s20 + $0x10] sm:$0xff]  ;;  %s3383_s20 = sld [smem:[#allocation2 + $0x1]] }
 0xcba   : > { %3362 = vmatmul.msk.f32.gmra.mxu0 %vm1053_vm1, %v4032_v30 }
 0xcc2   : > { %3363 = vmatmul.msk.f32.gmra.mxu0 %vm1053_vm1, %v4043_v32 }
 0xcca   : > { %3364 = vmatmul.msk.f32.gmra.mxu0 %vm1053_vm1, %v4054_v34  ;;  %v2467_v34 = vmul.f32 32.0, %v3682_v20 }
 0xccc   : > { %v2468_v38 = vsub.f32 1.0, %v2467_v34 }
 0xcce   : > { %v2469_v51 = vmul.f32 %v3682_v20, %v2468_v38 }
 0xcd0   : > { %v2470_v56 = vadd.f32 %v3682_v20, %v2469_v51 }
 0xcd2   : > { %v4761_v44 = vsel %vm2471_vm3, %v3682_v20, %v2470_v56 }
 0xd2f   : > { %v2437_v45 = vpop.f32.mrf.mxu0 }
 0xd30   : > { %v2449_v50 = vadd.f32 %v3692_v2, %v2437_v45 }
 0xd32   : > { %v2453_v32 = vsel %vm1053_vm1, %v2449_v50, 0.0 }
 0xd37   : > { %v2440_v17 = vpop.f32.mrf.mxu0 }
 0xd38   : > { %v2450_v47 = vadd.f32 %v3691_v1, %v2440_v17 }
 0xd3a   : > { %v2454_v30 = vsel %vm1053_vm1, %v2450_v47, 0.0 }
 0xd3b   : > { %v2455_v6 = vadd.f32 %v2454_v30, %v2453_v32  ;;  %v3629_v32 = vld [vmem:[%s4958_s13] ss:$0 sm:$0xff] }
 0xd3f   : > { %v2443_v14 = vpop.f32.mrf.mxu0 }
 0xd40   : > { %v2451_v7 = vadd.f32 %v3693_v24, %v2443_v14 }
 0xd42   : > { %v2456_v54 = vsel %vm1053_vm1, %v2451_v7, 0.0 }
 0xd43   : > { %v2457_v33 = vadd.f32 %v2456_v54, %v2455_v6 }
 0xd47   : > { %v2446_v25 = vpop.f32.mrf.mxu0 }
 0xd48   : > { %v2452_v31 = vadd.f32 %v3694_v3, %v2446_v25 }
 0xd4a   : > { %v2458_v13 = vsel %vm1053_vm1, %v2452_v31, 0.0 }
 0xd4b   : > { %v2459_v22 = vadd.f32 %v2458_v13, %v2457_v33 }
 0xd4d   : > { %v2460_v0 = vrot.slane %v2459_v22, 4 }
 0xd4f   : > { %v2461_v19 = vadd.f32 %v2460_v0, %v2459_v22  ;;  %v3511_v22 = vld [vmem:[%s4959_s14 + $0x38] sm:$0xff] }
 0xd50   : > { %2701 = vmatpush.bf16.msrb.mxu3 %v3511_v22 }
 0xd51   : > { %v2462_v62 = vrot.slane %v2461_v19, 2 }
 0xd53   : > { %v2463_v28 = vadd.f32 %v2462_v62, %v2461_v19  ;;  %v3510_v19 = vld [vmem:[%s4959_s14 + $0x30] sm:$0xff] }
 0xd54   : > { %2702 = vmatpush.bf16.msrb.mxu3 %v3510_v19 }
 0xd55   : > { %v2464_v36 = vrot.slane %v2463_v28, 1 }
 0xd57   : > { %v2465_v37 = vadd.f32 %v2464_v36, %v2463_v28  ;;  %v3509_v28 = vld [vmem:[%s4959_s14 + $0x28] sm:$0xff] }
 0xd58   : > { %2703 = vmatpush.bf16.msrb.mxu3 %v3509_v28 }
 0xd59   : > { %v2473_v41 = vmul.f32 %v4761_v44, %v2465_v37 }
 0xd5b   : > { %v2474_v52 = vsub.f32 %v2449_v50, %v2473_v41  ;;  %v2475_v21 = vsub.f32 %v2450_v47, %v2473_v41  ;;  %v2476_v57 = vsub.f32 %v2451_v7, %v2473_v41  ;;  %v2477_v9 = vsub.f32 %v2452_v31, %v2473_v41  ;;  %v3508_v41 = vld [vmem:[%s4959_s14 + $0x20] sm:$0xff] }
 0xd5c   : > { %2704 = vmatpush.bf16.msrb.mxu3 %v3508_v41  ;;  %v3519_v41 = vld [vmem:[%s4961_s16 + $0x38] sm:$0xff] }
 0xd5d   : > { %v2478_v18 = vmul.f32 %v2474_v52, %v2474_v52  ;;  %v2479_v40 = vmul.f32 %v2475_v21, %v2475_v21  ;;  %v2480_v43 = vmul.f32 %v2476_v57, %v2476_v57  ;;  %v2481_v63 = vmul.f32 %v2477_v9, %v2477_v9  ;;  %2847 = vmatpush.bf16.msra.mxu0 %v3519_v41 }
 0xd5f   : > { %v2482_v10 = vsel %vm1053_vm1, %v2478_v18, 0.0  ;;  %v2483_v26 = vsel %vm1053_vm1, %v2479_v40, 0.0  ;;  %v2485_v35 = vsel %vm1053_vm1, %v2480_v43, 0.0  ;;  %v2487_v55 = vsel %vm1053_vm1, %v2481_v63, 0.0  ;;  %v3507_v40 = vld [vmem:[%s4959_s14 + $0x18] sm:$0xff] }
 0xd60   : > { %v2484_v12 = vadd.f32 %v2483_v26, %v2482_v10  ;;  %2705 = vmatpush.bf16.msrb.mxu3 %v3507_v40 }
 0xd62   : > { %v2486_v48 = vadd.f32 %v2485_v35, %v2484_v12 }
 0xd64   : > { %v2488_v8 = vadd.f32 %v2487_v55, %v2486_v48  ;;  %2706 = vmatpush.bf16.msrb.mxu3 %v3506_v29  ;;  %v3505_v48 = vld [vmem:[%s4959_s14 + $0x8] sm:$0xff] }
 0xd66   : > { %v2489_v39 = vrot.slane %v2488_v8, 4 }
 0xd68   : > { %v2490_v59 = vadd.f32 %v2489_v39, %v2488_v8  ;;  %2707 = vmatpush.bf16.msrb.mxu3 %v3505_v48 }
 0xd6a   : > { %v2491_v4 = vrot.slane %v2490_v59, 2 }
 0xd6c   : > { %v2492_v49 = vadd.f32 %v2491_v4, %v2490_v59  ;;  %2708 = vmatpush.bf16.msrb.mxu3 %v3504_v61 }
 0xd6e   : > { %v2493_v16 = vrot.slane %v2492_v49, 1 }
 0xd70   : > { %v2494_v58 = vadd.f32 %v2493_v16, %v2492_v49 }
 0xd72   : > { %v2495_v42 = vmul.f32 %v2494_v58, %v4761_v44 }
 0xd74   : > { %v2496_v23 = vadd.f32 1e-05, %v2495_v42 }
 0xd76   : > { %3683 = vrsqrt.f32 %v2496_v23  ;;  %vm2503_vm5 = vweird.f32 %v2496_v23 }
 0xd7c   : > { %v3684_v15 = vpop.eup %3683 }
 0xd7d   : > { %v2498_v5 = vmul.f32 %v3684_v15, %v2496_v23  ;;  %vm2504_vm4 = vweird.f32 %v3684_v15 }
 0xd7e   : > { %vm2505_vm6 = vmor %vm2503_vm5, %vm2504_vm4 }
 0xd7f   : > { %v2499_v60 = vmul.f32 %v3684_v15, %v2498_v5 }
 0xd81   : > { %v2500_v53 = vmul.f32 0.5, %v2499_v60 }
 0xd83   : > { %v2501_v45 = vsub.f32 1.5, %v2500_v53  ;;  %v2622_v53 = vstv %s3383_s20 }
 0xd85   : > { %v2502_v17 = vmul.f32 %v3684_v15, %v2501_v45 }
 0xd87   : > { %v2506_v46 = vsel %vm2505_vm6, %v3684_v15, %v2502_v17 }
 0xd88   : > { %v2507_v14 = vmul.f32 %v2506_v46, %v2474_v52  ;;  %v2508_v1 = vmul.f32 %v2506_v46, %v2475_v21  ;;  %v2509_v2 = vmul.f32 %v2506_v46, %v2476_v57  ;;  %v2510_v50 = vmul.f32 %v2506_v46, %v2477_v9 }
 0xd8a   : > { %v2511_v47 = vpack.c.bf16 %v2508_v1, %v2507_v14  ;;  %v2512_v24 = vpack.c.bf16 %v2510_v50, %v2509_v2 }
 0xd8c   : > { %3381 = vmatmul.msk.bf16.vlgmr.msrb.gmra.mxu1 %vm1053_vm1, %v2511_v47 }
 0xd9c   : > { %3382 = vmatmul.msk.bf16.gmra.mxu1 %vm1053_vm1, %v2512_v24 }
 0xe09   : > { %v2564_v7 = vpop.f32.mrf.mxu1 }
 0xe0a   : > { %v4788_v34 = vadd.f32 %v3629_v32, %v2564_v7 }
 0xe11   : > { %v2566_v20 = vpop.f32.mrf.mxu1 }
 0xe12   : > { %v4786_v54 = vadd.f32 %v3629_v32, %v2566_v20 }
 0xe14   : > { %v2574_v25 = vadd.f32 %v4786_v54, %v4788_v34 }
 0xe19   : > { %v2569_v30 = vpop.f32.mrf.mxu1 }
 0xe1a   : > { %v4790_v6 = vadd.f32 %v3629_v32, %v2569_v30 }
 0xe1c   : > { %v2575_v31 = vadd.f32 %v2574_v25, %v4790_v6 }
 0xe21   : > { %v2571_v3 = vpop.f32.mrf.mxu1 }
 0xe22   : > { %v4795_v33 = vadd.f32 %v3629_v32, %v2571_v3 }
 0xe24   : > { %v2576_v13 = vadd.f32 %v2575_v31, %v4795_v33 }
 0xe26   : > { %v2577_v38 = vrot.slane %v2576_v13, 4 }
 0xe28   : > { %v2578_v0 = vadd.f32 %v2577_v38, %v2576_v13  ;;  %v3630_v38 = vld [vmem:[%s4960_s15] ss:$0 sm:$0xff] }
 0xe2a   : > { %v2579_v51 = vrot.slane %v2578_v0, 2 }
 0xe2c   : > { %v2580_v62 = vadd.f32 %v2579_v51, %v2578_v0 }
 0xe2e   : > { %v2581_v56 = vrot.slane %v2580_v62, 1 }
 0xe30   : > { %v2582_v36 = vadd.f32 %v2581_v56, %v2580_v62 }
 0xe32   : > { %v2583_v37 = vmul.f32 %v2582_v36, %v4761_v44 }
 0xe34   : > { %v2584_v52 = vsub.f32 %v4788_v34, %v2583_v37  ;;  %v2585_v21 = vsub.f32 %v4786_v54, %v2583_v37  ;;  %v2586_v57 = vsub.f32 %v4790_v6, %v2583_v37  ;;  %v2587_v9 = vsub.f32 %v4795_v33, %v2583_v37 }
 0xe36   : > { %v2588_v11 = vmul.f32 %v2584_v52, %v2584_v52  ;;  %v2589_v18 = vmul.f32 %v2585_v21, %v2585_v21  ;;  %v2590_v43 = vmul.f32 %v2586_v57, %v2586_v57  ;;  %v2591_v10 = vmul.f32 %v2587_v9, %v2587_v9 }
 0xe38   : > { %v2592_v63 = vadd.f32 %v2589_v18, %v2588_v11  ;;  %v3517_v18 = vld [vmem:[%s4961_s16 + $0x28] sm:$0xff] }
 0xe3a   : > { %v2593_v26 = vadd.f32 %v2592_v63, %v2590_v43  ;;  %v3516_v63 = vld [vmem:[%s4961_s16 + $0x20] sm:$0xff] }
 0xe3c   : > { %v2594_v12 = vadd.f32 %v2593_v26, %v2591_v10 }
 0xe3e   : > { %v2595_v35 = vrot.slane %v2594_v12, 4 }
 0xe40   : > { %v2596_v55 = vadd.f32 %v2595_v35, %v2594_v12 }
 0xe42   : > { %v2597_v8 = vrot.slane %v2596_v55, 2 }
 0xe44   : > { %v2598_v39 = vadd.f32 %v2597_v8, %v2596_v55  ;;  %v3515_v55 = vld [vmem:[%s4961_s16 + $0x18] sm:$0xff] }
 0xe46   : > { %v2599_v27 = vrot.slane %v2598_v39, 1 }
 0xe48   : > { %v2600_v59 = vadd.f32 %v2599_v27, %v2598_v39 }
 0xe4a   : > { %v2601_v4 = vmul.f32 %v2600_v59, %v4761_v44  ;;  %v3514_v59 = vld [vmem:[%s4961_s16 + $0x10] sm:$0xff] }
 0xe4c   : > { %v2602_v49 = vadd.f32 1e-05, %v2601_v4 }
 0xe4e   : > { %3685 = vrsqrt.f32 %v2602_v49  ;;  %vm2609_vm7 = vweird.f32 %v2602_v49 }
 0xe54   : > { %v3686_v16 = vpop.eup %3685 }
 0xe55   : > { %v2604_v58 = vmul.f32 %v3686_v16, %v2602_v49  ;;  %vm2610_vm1 = vweird.f32 %v3686_v16 }
 0xe56   : > { %vm2611_vm8 = vmor %vm2609_vm7, %vm2610_vm1 }
 0xe57   : > { %v2605_v42 = vmul.f32 %v3686_v16, %v2604_v58 }
 0xe59   : > { %v2606_v23 = vmul.f32 0.5, %v2605_v42 }
 0xe5b   : > { %v2607_v15 = vsub.f32 1.5, %v2606_v23  ;;  %v3512_v23 = vld [vmem:[%s4961_s16] sm:$0xff] }
 0xe5d   : > { %v2608_v5 = vmul.f32 %v3686_v16, %v2607_v15 }
 0xe5f   : > { %v2612_v60 = vsel %vm2611_vm8, %v3686_v16, %v2608_v5  ;;  %v3513_v16 = vld [vmem:[%s4961_s16 + $0x8] sm:$0xff] }
 0xe60   : > { %v2613_v45 = vmul.f32 %v2612_v60, %v2584_v52  ;;  %v2614_v17 = vmul.f32 %v2612_v60, %v2585_v21  ;;  %v2616_v50 = vmul.f32 %v2612_v60, %v2587_v9  ;;  %v2615_v24 = vmul.f32 %v2612_v60, %v2586_v57  ;;  %v3518_v57 = vld [vmem:[%s4961_s16 + $0x30] sm:$0xff] }
 0xe61   : > { %2848 = vmatpush.bf16.msra.mxu0 %v3518_v57 }
 0xe62   : > { %vm2618_vm9 = vcmp.ge.f32.partialorder %v2613_v45, 0.0  ;;  %vm2619_vm10 = vcmp.ge.f32.partialorder %v2614_v17, 0.0  ;;  %v2623_v46 = vmul.f32 %v2622_v53, %v2613_v45  ;;  %v2624_v14 = vmul.f32 %v2622_v53, %v2614_v17 }
 0xe63   : > { %v2625_v7 = vmul.f32 %v2622_v53, %v2615_v24  ;;  %v2626_v20 = vmul.f32 %v2622_v53, %v2616_v50  ;;  %vm2620_vm11 = vcmp.ge.f32.partialorder %v2615_v24, 0.0  ;;  %vm2621_vm12 = vcmp.ge.f32.partialorder %v2616_v50, 0.0 }
 0xe64   : > { %v2627_v1 = vsel %vm2618_vm9, %v2613_v45, %v2623_v46  ;;  %v2628_v47 = vsel %vm2619_vm10, %v2614_v17, %v2624_v14 }
 0xe65   : > { %v2631_v2 = vpack.c.bf16 %v2628_v47, %v2627_v1  ;;  %v2629_v30 = vsel %vm2620_vm11, %v2615_v24, %v2625_v7  ;;  %v2630_v32 = vsel %vm2621_vm12, %v2616_v50, %v2626_v20  ;;  %2849 = vmatpush.bf16.msra.mxu0 %v3517_v18  ;;  %v2768_v24 = vstv %s3416_s2 }
 0xe66   : > { %v2632_v25 = vpack.c.bf16 %v2630_v32, %v2629_v30 }
 0xe67   : > { %2709 = vmatmul.bf16.vlgmr.msrb.gmra.mxu3 %v2631_v2 }
 0xe69   : > { %2850 = vmatpush.bf16.msra.mxu0 %v3516_v63 }
 0xe6d   : > { %2851 = vmatpush.bf16.msra.mxu0 %v3515_v55 }
 0xe71   : > { %2852 = vmatpush.bf16.msra.mxu0 %v3514_v59 }
 0xe75   : > { %2853 = vmatpush.bf16.msra.mxu0 %v3513_v16 }
 0xe77   : > { %2714 = vmatmul.bf16.gmra.mxu3 %v2632_v25 }
 0xe79   : > { %2854 = vmatpush.bf16.msra.mxu0 %v3512_v23 }
 0xeea   : > { %v2710_v3 = vpop.f32.mrf.mxu3 }
 0xeeb   : > { %v2711_v0 = vadd.f32 %v3630_v38, %v2710_v3 }
 0xef2   : > { %v2712_v31 = vpop.f32.mrf.mxu3 }
 0xef3   : > { %v2713_v22 = vadd.f32 %v3630_v38, %v2712_v31 }
 0xef5   : > { %v2720_v19 = vadd.f32 %v2713_v22, %v2711_v0 }
 0xefa   : > { %v2715_v13 = vpop.f32.mrf.mxu3 }
 0xefb   : > { %v2716_v51 = vadd.f32 %v3630_v38, %v2715_v13 }
 0xefd   : > { %v2721_v56 = vadd.f32 %v2720_v19, %v2716_v51 }
 0xf02   : > { %v2717_v62 = vpop.f32.mrf.mxu3 }
 0xf03   : > { %v2718_v28 = vadd.f32 %v3630_v38, %v2717_v62 }
 0xf05   : > { %v2722_v36 = vadd.f32 %v2721_v56, %v2718_v28 }
 0xf07   : > { %v2723_v37 = vrot.slane %v2722_v36, 4 }
 0xf09   : > { %v2724_v52 = vadd.f32 %v2723_v37, %v2722_v36  ;;  %v3631_v36 = vld [vmem:[%s4962_s17] ss:$0 sm:$0xff] }
 0xf0b   : > { %v2725_v21 = vrot.slane %v2724_v52, 2 }
 0xf0d   : > { %v2726_v9 = vadd.f32 %v2725_v21, %v2724_v52 }
 0xf0f   : > { %v2727_v11 = vrot.slane %v2726_v9, 1 }
 0xf11   : > { %v2728_v40 = vadd.f32 %v2727_v11, %v2726_v9 }
 0xf13   : > { %v2729_v43 = vmul.f32 %v2728_v40, %v4761_v44 }
 0xf15   : > { %v2730_v10 = vsub.f32 %v2711_v0, %v2729_v43  ;;  %v2731_v26 = vsub.f32 %v2713_v22, %v2729_v43  ;;  %v2732_v29 = vsub.f32 %v2716_v51, %v2729_v43  ;;  %v2733_v12 = vsub.f32 %v2718_v28, %v2729_v43 }
 0xf17   : > { %v2734_v35 = vmul.f32 %v2730_v10, %v2730_v10  ;;  %v2735_v48 = vmul.f32 %v2731_v26, %v2731_v26  ;;  %v2736_v61 = vmul.f32 %v2732_v29, %v2732_v29  ;;  %v2737_v39 = vmul.f32 %v2733_v12, %v2733_v12 }
 0xf19   : > { %v2738_v8 = vadd.f32 %v2735_v48, %v2734_v35  ;;  %v3527_v35 = vld [vmem:[%s4963_s18 + $0x38] sm:$0xff] }
 0xf1a   : > { %3001 = vmatpush.bf16.msra.mxu1 %v3527_v35 }
 0xf1b   : > { %v2739_v27 = vadd.f32 %v2738_v8, %v2736_v61  ;;  %v3526_v61 = vld [vmem:[%s4963_s18 + $0x30] sm:$0xff] }
 0xf1d   : > { %v2740_v4 = vadd.f32 %v2739_v27, %v2737_v39  ;;  %v3525_v39 = vld [vmem:[%s4963_s18 + $0x28] sm:$0xff] }
 0xf1e   : > { %3002 = vmatpush.bf16.msra.mxu1 %v3526_v61 }
 0xf1f   : > { %v2741_v49 = vrot.slane %v2740_v4, 4 }
 0xf21   : > { %v2742_v58 = vadd.f32 %v2741_v49, %v2740_v4  ;;  %v3524_v4 = vld [vmem:[%s4963_s18 + $0x20] sm:$0xff] }
 0xf22   : > { %3003 = vmatpush.bf16.msra.mxu1 %v3525_v39 }
 0xf23   : > { %v2743_v42 = vrot.slane %v2742_v58, 2 }
 0xf25   : > { %v2744_v15 = vadd.f32 %v2743_v42, %v2742_v58 }
 0xf26   : > { %3004 = vmatpush.bf16.msra.mxu1 %v3524_v4 }
 0xf27   : > { %v2745_v5 = vrot.slane %v2744_v15, 1 }
 0xf29   : > { %v2746_v60 = vadd.f32 %v2745_v5, %v2744_v15  ;;  %v3523_v5 = vld [vmem:[%s4963_s18 + $0x18] sm:$0xff] }
 0xf2a   : > { %3005 = vmatpush.bf16.msra.mxu1 %v3523_v5 }
 0xf2b   : > { %v2747_v53 = vmul.f32 %v2746_v60, %v4761_v44 }
 0xf2d   : > { %v2748_v45 = vadd.f32 1e-05, %v2747_v53 }
 0xf2f   : > { %3687 = vrsqrt.f32 %v2748_v45  ;;  %vm2755_vm14 = vweird.f32 %v2748_v45 }
 0xf35   : > { %v3688_v17 = vpop.eup %3687 }
 0xf36   : > { %v2750_v46 = vmul.f32 %v3688_v17, %v2748_v45  ;;  %vm2756_vm13 = vweird.f32 %v3688_v17 }
 0xf37   : > { %vm2757_vm15 = vmor %vm2755_vm14, %vm2756_vm13 }
 0xf38   : > { %v2751_v14 = vmul.f32 %v3688_v17, %v2750_v46  ;;  %v3522_v46 = vld [vmem:[%s4963_s18 + $0x10] sm:$0xff] }
 0xf39   : > { %3006 = vmatpush.bf16.msra.mxu1 %v3522_v46 }
 0xf3a   : > { %v2752_v1 = vmul.f32 0.5, %v2751_v14 }
 0xf3c   : > { %v2753_v47 = vsub.f32 1.5, %v2752_v1  ;;  %v3521_v1 = vld [vmem:[%s4963_s18 + $0x8] sm:$0xff] }
 0xf3d   : > { %3007 = vmatpush.bf16.msra.mxu1 %v3521_v1 }
 0xf3e   : > { %v2754_v2 = vmul.f32 %v3688_v17, %v2753_v47 }
 0xf40   : > { %v2758_v50 = vsel %vm2757_vm15, %v3688_v17, %v2754_v2 }
 0xf41   : > { %v2759_v7 = vmul.f32 %v2758_v50, %v2730_v10  ;;  %v2760_v20 = vmul.f32 %v2758_v50, %v2731_v26  ;;  %v2762_v13 = vmul.f32 %v2758_v50, %v2733_v12  ;;  %v2761_v38 = vmul.f32 %v2758_v50, %v2732_v29  ;;  %v3520_v50 = vld [vmem:[%s4963_s18] sm:$0xff] }
 0xf42   : > { %3008 = vmatpush.bf16.msra.mxu1 %v3520_v50 }
 0xf43   : > { %v2769_v30 = vmul.f32 %v2768_v24, %v2759_v7  ;;  %v2770_v32 = vmul.f32 %v2768_v24, %v2760_v20  ;;  %vm2764_vm0 = vcmp.ge.f32.partialorder %v2759_v7, 0.0  ;;  %vm2765_vm2 = vcmp.ge.f32.partialorder %v2760_v20, 0.0 }
 0xf44   : > { %v2772_v22 = vmul.f32 %v2768_v24, %v2762_v13  ;;  %v2771_v0 = vmul.f32 %v2768_v24, %v2761_v38  ;;  %vm2766_vm3 = vcmp.ge.f32.partialorder %v2761_v38, 0.0  ;;  %vm2767_vm4 = vcmp.ge.f32.partialorder %v2762_v13, 0.0 }
 0xf45   : > { %v2773_v25 = vsel %vm2764_vm0, %v2759_v7, %v2769_v30  ;;  %v2774_v3 = vsel %vm2765_vm2, %v2760_v20, %v2770_v32 }
 0xf46   : > { %v2777_v31 = vpack.c.bf16 %v2774_v3, %v2773_v25  ;;  %v2775_v51 = vsel %vm2766_vm3, %v2761_v38, %v2771_v0  ;;  %v2776_v19 = vsel %vm2767_vm4, %v2762_v13, %v2772_v22 }
 0xf47   : > { %v2778_v62 = vpack.c.bf16 %v2776_v19, %v2775_v51  ;;  %v2922_v19 = vstv %s3449_s23  ;;  %s3724_s23 = sshra.s32 %s3048_s29, 4  ;;  %s3725_s23 = int_to_ptr.hbm [resolvable:$true] %s3724_s23 }
 0xf48   : > { %2855 = vmatmul.bf16.vlgmr.msra.gmra.mxu0 %v2777_v31  ;;  %s3726_s3 = scalar_lea.hbm %s3725_s23, 32  ;;  %p3731_p3 = scmp.lt.s32.totalorder %s3725_s23, %s4966_s21 }
 0xf49   : > { %p3727_p0 = scmp.ne.s32.totalorder %s3725_s23, %s3726_s3  ;;  %p3732_p4 = scmp.lt.s32.totalorder %s3730_s28, %s3726_s3 }
 0xf4b   : > { %p3728_p1 = pnand %p3727_p0, %p3936_p5  ;;  %p3733_p7 = por %p3732_p4, %p3731_p3 }
 0xf4d   : > { %p3729_p2 = pneg %p3728_p1 }
 0xf4f   : > { %p3734_p8 = pnand %p3733_p7, %p3729_p2 }
 0xf58   : > { %2860 = vmatmul.bf16.gmra.mxu0 %v2778_v62 }
 0xfc5   : > { %v2856_v56 = vpop.f32.mrf.mxu0 }
 0xfc6   : > { %v2857_v52 = vadd.f32 %v3631_v36, %v2856_v56 }
 0xfc8   : > { %v2866_v9 = vadd.f32 %v2857_v52, %v4788_v34 }
 0xfca   : > { %v4865_v43 = vmul.f32 0.5, %v2866_v9 }
 0xfcd   : > { %v2858_v28 = vpop.f32.mrf.mxu0 }
 0xfce   : > { %v2859_v37 = vadd.f32 %v3631_v36, %v2858_v28 }
 0xfd0   : > { %v2867_v57 = vadd.f32 %v2859_v37, %v4786_v54 }
 0xfd2   : > { %v4863_v18 = vmul.f32 0.5, %v2867_v57 }
 0xfd4   : > { %v2874_v26 = vadd.f32 %v4863_v18, %v4865_v43 }
 0xfd5   : > { %v2861_v41 = vpop.f32.mrf.mxu0 }
 0xfd6   : > { %v2862_v21 = vadd.f32 %v3631_v36, %v2861_v41 }
 0xfd8   : > { %v2868_v11 = vadd.f32 %v2862_v21, %v4790_v6 }
 0xfda   : > { %v4867_v63 = vmul.f32 0.5, %v2868_v11 }
 0xfdc   : > { %v2875_v12 = vadd.f32 %v2874_v26, %v4867_v63  ;;  %v3632_v26 = vld [vmem:[%s4964_s19] ss:$0 sm:$0xff] }
 0xfdd   : > { %v2863_v40 = vpop.f32.mrf.mxu0 }
 0xfde   : > { %v2864_v10 = vadd.f32 %v3631_v36, %v2863_v40 }
 0xfe0   : > { %v2869_v29 = vadd.f32 %v2864_v10, %v4795_v33 }
 0xfe2   : > { %v4873_v54 = vmul.f32 0.5, %v2869_v29 }
 0xfe4   : > { %v2876_v34 = vadd.f32 %v2875_v12, %v4873_v54 }
 0xfe6   : > { %v2877_v6 = vrot.slane %v2876_v34, 4 }
 0xfe8   : > { %v2878_v48 = vadd.f32 %v2877_v6, %v2876_v34 }
 0xfea   : > { %v2879_v55 = vrot.slane %v2878_v48, 2 }
 0xfec   : > { %v2880_v8 = vadd.f32 %v2879_v55, %v2878_v48 }
 0xfee   : > { %v2881_v33 = vrot.slane %v2880_v8, 1 }
 0xff0   : > { %v2882_v27 = vadd.f32 %v2881_v33, %v2880_v8 }
 0xff2   : > { %v2883_v59 = vmul.f32 %v2882_v27, %v4761_v44 }
 0xff4   : > { %v2884_v49 = vsub.f32 %v4865_v43, %v2883_v59  ;;  %v2885_v16 = vsub.f32 %v4863_v18, %v2883_v59  ;;  %v2886_v58 = vsub.f32 %v4867_v63, %v2883_v59  ;;  %v2887_v42 = vsub.f32 %v4873_v54, %v2883_v59 }
 0xff6   : > { %v2888_v23 = vmul.f32 %v2884_v49, %v2884_v49  ;;  %v2889_v15 = vmul.f32 %v2885_v16, %v2885_v16  ;;  %v2890_v60 = vmul.f32 %v2886_v58, %v2886_v58  ;;  %v2891_v45 = vmul.f32 %v2887_v42, %v2887_v42 }
 0xff8   : > { %v2892_v53 = vadd.f32 %v2889_v15, %v2888_v23 }
 0xffa   : > { %v2893_v17 = vadd.f32 %v2892_v53, %v2890_v60 }
 0xffc   : > { %v2894_v14 = vadd.f32 %v2893_v17, %v2891_v45 }
 0xffe   : > { %v2895_v47 = vrot.slane %v2894_v14, 4 }
0x1000   : > { %v2896_v2 = vadd.f32 %v2895_v47, %v2894_v14 }
0x1002   : > { %v2897_v24 = vrot.slane %v2896_v2, 2 }
0x1004   : > { %v2898_v7 = vadd.f32 %v2897_v24, %v2896_v2 }
0x1006   : > { %v2899_v20 = vrot.slane %v2898_v7, 1 }
0x1008   : > { %v2900_v30 = vadd.f32 %v2899_v20, %v2898_v7 }
0x100a   : > { %v2901_v32 = vmul.f32 %v2900_v30, %v4761_v44 }
0x100c   : > { %v2902_v25 = vadd.f32 1e-05, %v2901_v32 }
0x100e   : > { %3689 = vrsqrt.f32 %v2902_v25  ;;  %vm2909_vm6 = vweird.f32 %v2902_v25 }
0x1014   : > { %v3690_v3 = vpop.eup %3689 }
0x1015   : > { %v2904_v31 = vmul.f32 %v3690_v3, %v2902_v25  ;;  %vm2910_vm5 = vweird.f32 %v3690_v3 }
0x1016   : > { %vm2911_vm1 = vmor %vm2909_vm6, %vm2910_vm5 }
0x1017   : > { %v2905_v13 = vmul.f32 %v3690_v3, %v2904_v31 }
0x1019   : > { %v2906_v38 = vmul.f32 0.5, %v2905_v13 }
0x101b   : > { %v2907_v22 = vsub.f32 1.5, %v2906_v38 }
0x101d   : > { %v2908_v0 = vmul.f32 %v3690_v3, %v2907_v22 }
0x101f   : > { %v2912_v51 = vsel %vm2911_vm1, %v3690_v3, %v2908_v0 }
0x1020   : > { %v2913_v62 = vmul.f32 %v2912_v51, %v2884_v49  ;;  %v2914_v56 = vmul.f32 %v2912_v51, %v2885_v16  ;;  %v2915_v52 = vmul.f32 %v2912_v51, %v2886_v58  ;;  %v2916_v21 = vmul.f32 %v2912_v51, %v2887_v42 }
0x1022   : > { %vm2918_vm7 = vcmp.ge.f32.partialorder %v2913_v62, 0.0  ;;  %vm2919_vm8 = vcmp.ge.f32.partialorder %v2914_v56, 0.0  ;;  %v2923_v28 = vmul.f32 %v2922_v19, %v2913_v62  ;;  %v2924_v44 = vmul.f32 %v2922_v19, %v2914_v56 }
0x1023   : > { %v2925_v57 = vmul.f32 %v2922_v19, %v2915_v52  ;;  %v2926_v9 = vmul.f32 %v2922_v19, %v2916_v21  ;;  %vm2920_vm9 = vcmp.ge.f32.partialorder %v2915_v52, 0.0  ;;  %vm2921_vm10 = vcmp.ge.f32.partialorder %v2916_v21, 0.0 }
0x1024   : > { %v2927_v36 = vsel %vm2918_vm7, %v2913_v62, %v2923_v28  ;;  %v2928_v37 = vsel %vm2919_vm8, %v2914_v56, %v2924_v44 }
0x1025   : > { %v2931_v41 = vpack.c.bf16 %v2928_v37, %v2927_v36  ;;  %v2929_v11 = vsel %vm2920_vm9, %v2915_v52, %v2925_v57  ;;  %v2930_v40 = vsel %vm2921_vm10, %v2916_v21, %v2926_v9 }
0x1026   : > { %v2932_v10 = vpack.c.bf16 %v2930_v40, %v2929_v11 }
0x1027   : > { %3009 = vmatmul.bf16.vlgmr.msra.gmra.mxu1 %v2931_v41 }
0x1037   : > { %3014 = vmatmul.bf16.gmra.mxu1 %v2932_v10 }
0x10a4   : > { %v3010_v29 = vpop.f32.mrf.mxu1 }
0x10a5   : > { %v3011_v12 = vadd.f32 %v3632_v26, %v3010_v29 }
0x10a7   : > { %v3020_v34 = vadd.f32 %v3011_v12, %v4865_v43 }
0x10a9   : > { %v3024_v6 = vmul.f32 0.5, %v3020_v34 }
0x10ab   : > { %3028 = vst [vmem:[%s730_s4] sm:$0xff] %v3024_v6 }
0x10ac   : > { %v3012_v35 = vpop.f32.mrf.mxu1 }
0x10ad   : > { %v3013_v48 = vadd.f32 %v3632_v26, %v3012_v35 }
0x10af   : > { %v3021_v55 = vadd.f32 %v3013_v48, %v4863_v18 }
0x10b1   : > { %v3025_v61 = vmul.f32 0.5, %v3021_v55 }
0x10b3   : > { %3029 = vst [vmem:[%s730_s4 + $0x8] sm:$0xff] %v3025_v61 }
0x10b4   : > { %v3015_v8 = vpop.f32.mrf.mxu1 }
0x10b5   : > { %v3016_v33 = vadd.f32 %v3632_v26, %v3015_v8 }
0x10b7   : > { %v3022_v39 = vadd.f32 %v3016_v33, %v4867_v63 }
0x10b9   : > { %v3026_v27 = vmul.f32 0.5, %v3022_v39 }
0x10bb   : > { %3030 = vst [vmem:[%s730_s4 + $0x10] sm:$0xff] %v3026_v27 }
0x10bc   : > { %v3017_v43 = vpop.f32.mrf.mxu1 }
0x10bd   : > { %v3018_v59 = vadd.f32 %v3632_v26, %v3017_v43 }
0x10bf   : > { %v3023_v18 = vadd.f32 %v3018_v59, %v4873_v54 }
0x10c1   : > { %v3027_v4 = vmul.f32 0.5, %v3023_v18 }
0x10c3   : > { %3031 = vst [vmem:[%s730_s4 + $0x18] sm:$0xff] %v3027_v4 }
0x10c4   : > { %3737 = shalt.err (!%p3734_p8)
}
0x10c5   : > { %s3786_s27 = smov 128   ;;  %s3787_s4 = smov 8  }
0x10c6   : > { %3535 = dma.vmem_to_hbm [thread:$0]  (%p3936_p5), %s3046_s24, 512, %s3048_s29, %s3033_s30, %s3786_s27, %s3786_s27, %s3787_s4  }
0x10c7 PF: > { %s5024_s26 = sld [smem:[#allocation10_spill]] }
0x10c8   : > { %s5025_s6 = sld [smem:[#allocation8_spill]] }
0x10cd   : > { %p3547_p9 = scmp.ge.s32.totalorder %s5024_s26, 2 }
0x10ce   : > { %s3062_s20 = sand.u32 1, %s5025_s6  }
0x10cf   : > { %p3542_p10 = pnand %p3547_p9, %p3940_p6  ;;  %s3063_s1 = scalar_lea.sflag [#allocation3], %s3062_s20 }
0x10d1   : > { %p3543_p11 = pneg %p3542_p10 }
0x10d3   : > { %3759 = dma.done.wait (%p3543_p11), %s3063_s1, 512  }
0x10d4   : > { %3761 = vsyncadd (%p3543_p11), %s3063_s1, 4294966784  ;;  %s5027_s27 = sld [smem:[#allocation11_spill]]  ;;  %s5030_s2 = smov %s3768_s25 }
0x10d5   : > { %s5028_s23 = sld [smem:[#allocation9_spill]] }
0x10d6   : > { %s5029_s26 = sld [smem:[#allocation12_spill]] }
0x10da   : > { %p32_p12 = scmp.ge.s32.totalorder %s5027_s27, 6  }
0x10db   : > { %s5031_s25 = smov %s5028_s23 }
0x10dc   :  { %34 = sbr.rel (!%p32_p12) target bundleno = 14 (0xe), region = 159 }
0x10e1   :  { %3069 = vsyncpa [#allocation3], 1 }
0x10e2   :  { %3071 = vsyncpa [#allocation3 + $0x1], 1 }
0x10e3   :  { %3072 = vsyncpa [#allocation4], 1 }
0x10e4   :  { %3074 = vsyncpa [#allocation4 + $0x1], 1 }

</bundles_post_ra>
